<compile_context>
chip_gen: v7x
topology: tpu7x:2x2x1
jax: 0.10.0
libtpu: 0.0.40
codegen_flags: <defaults>
</compile_context>

<pallas_src>
import functools

import jax
import jax.numpy as jnp
import numpy as np
from jax import lax
from jax.experimental import pallas as pl
from jax.experimental.pallas import tpu as pltpu

BN_EPS = 1e-3
SE_PAD = 8   # SE reduced-filter rows padded to one sublane tile in the packed weights


def _sigmoid_fast(x):
    # exp + approximate reciprocal both run on the EUP slot (frees VALU).
    return pl.reciprocal(1.0 + jnp.exp(-x), approx=True)


def _swish_fast(x):
    return x * _sigmoid_fast(x)


def _sigmoid_exact(x):
    return 1.0 / (1.0 + jnp.exp(-x))


def _swish_exact(x):
    return x * _sigmoid_exact(x)


def _bn_scale_shift(s, q, gamma, beta, inv_count, eps):
    # Single-pass batch statistics (biased variance, clamped at 0), folded into
    # a per-channel scale/shift so applying BN is one FMA over the slab.
    mean = s * inv_count
    var = jnp.maximum(q * inv_count - mean * mean, 0.0)
    scale = gamma * lax.rsqrt(var + eps)
    shift = beta - mean * scale
    return scale, shift


def mixnet_block_kernel(x_ref, wmm_ref, wdw_ref, bn_ref, out_ref, *,
                        height, width, dw_ksizes, dw_splits, cse_pad, eps):
    f32 = jnp.float32
    Cin, NHW = x_ref.shape
    Cmid = bn_ref.shape[0]
    Cout = out_ref.shape[0]
    HW = height * width
    N = NHW // HW
    inv_cnt = 1.0 / float(NHW)
    inv_hw = 1.0 / float(HW)

    # ---- packed parameter views (3 small operands instead of 15) -----------
    wexpT = wmm_ref[0:Cmid, 0:Cin]                                     # (Cmid, Cin)
    wsrT = wmm_ref[Cmid:Cmid + cse_pad, 0:Cmid]                        # (cse_pad, Cmid)
    wseT = wmm_ref[Cmid + cse_pad:2 * Cmid + cse_pad, 0:cse_pad]       # (Cmid, cse_pad)
    wpT = wmm_ref[2 * Cmid + cse_pad:2 * Cmid + cse_pad + Cout, 0:Cmid]  # (Cout, Cmid)
    wdw = wdw_ref[...]                                                 # (Cmid, max_k*k)
    g0 = bn_ref[:, 0:1]
    b0 = bn_ref[:, 1:2]
    g1 = bn_ref[:, 2:3]
    b1 = bn_ref[:, 3:4]
    g2 = bn_ref[0:Cout, 4:5]
    b2 = bn_ref[0:Cout, 5:6]

    # ---- hoisted depthwise boundary masks (shared by every tap & sample) ---
    flat = lax.broadcasted_iota(jnp.int32, (1, NHW), 1)
    if (HW & (HW - 1) == 0) and (width & (width - 1) == 0):
        pin = jnp.bitwise_and(flat, HW - 1)                 # pixel index in-sample
        xcol = jnp.bitwise_and(pin, width - 1)
        yrow = jnp.right_shift(pin, width.bit_length() - 1)
    else:   # TODO(synk): general (non power-of-two) fallback path
        pin = flat % HW
        xcol = pin % width
        yrow = pin // width

    rmax = max(dw_ksizes) // 2
    masks = {}
    for dy in range(-rmax, rmax + 1):
        for dx in range(-rmax, rmax + 1):
            if dy == 0 and dx == 0:
                continue
            m = None
            if dx > 0:
                m = xcol < (width - dx)
            elif dx < 0:
                m = xcol >= (-dx)
            if dy > 0:
                ym = yrow < (height - dy)
                m = ym if m is None else jnp.logical_and(m, ym)
            elif dy < 0:
                ym = yrow >= (-dy)
                m = ym if m is None else jnp.logical_and(m, ym)
            masks[(dy, dx)] = m.astype(f32)

    def dwconv(act, wg, k):
        # Depthwise k x k SAME conv on a (C, N*HW) slab: XLU lane rolls +
        # hoisted boundary-mask multiplies + broadcast FMAs.  Rolls crossing a
        # sample boundary are zeroed by the edge masks, so the fused batch is
        # handled for free.
        r = k // 2
        acc = act * wg[:, r * k + r:r * k + r + 1]          # centre tap (no mask)
        for dy in range(-r, r + 1):
            for dx in range(-r, r + 1):
                if dy == 0 and dx == 0:
                    continue
                idx = (dy + r) * k + (dx + r)
                tap = wg[:, idx:idx + 1]                    # (C, 1)
                shift = (-(dy * width + dx)) % NHW
                v = pltpu.roll(act, shift, axis=1)
                acc = acc + (v * masks[(dy, dx)]) * tap
        return acc

    # ---------------- expand 1x1 conv + BN0 + swish (whole batch) -----------
    x = x_ref[...].astype(f32)                                         # (Cin, NHW)
    h = jnp.dot(wexpT, x, preferred_element_type=f32)                  # (Cmid, NHW)
    s0 = jnp.sum(h, axis=1, keepdims=True)
    q0 = jnp.sum(h * h, axis=1, keepdims=True)
    scale0, shift0 = _bn_scale_shift(s0, q0, g0, b0, inv_cnt, eps)
    a = _swish_fast(h * scale0 + shift0)

    # ---------------- MDConv (channel-split depthwise) + BN1 + swish --------
    accs = []
    row0 = 0
    for k, cg in zip(dw_ksizes, dw_splits):
        accs.append(dwconv(a[row0:row0 + cg, :], wdw[row0:row0 + cg, :], k))
        row0 += cg
    acc = jnp.concatenate(accs, axis=0) if len(accs) > 1 else accs[0]   # (Cmid, NHW)
    s1 = jnp.sum(acc, axis=1, keepdims=True)
    q1 = jnp.sum(acc * acc, axis=1, keepdims=True)
    scale1, shift1 = _bn_scale_shift(s1, q1, g1, b1, inv_cnt, eps)
    d = _swish_fast(acc * scale1 + shift1)                              # (Cmid, NHW)

    # -------- squeeze-and-excite: per-sample means, tiny column dots --------
    # HW is a multiple of 128 here, so per-sample lane slices are aligned views.
    means = jnp.concatenate(
        [jnp.sum(d[:, n * HW:(n + 1) * HW], axis=1, keepdims=True)
         for n in range(N)], axis=1) * inv_hw                           # (Cmid, N)
    r_se = _swish_exact(jnp.dot(wsrT, means, preferred_element_type=f32))   # (cse_pad, N)
    gate = _sigmoid_exact(jnp.dot(wseT, r_se, preferred_element_type=f32))  # (Cmid, N)
    g = jnp.concatenate(
        [d[:, n * HW:(n + 1) * HW] * gate[:, n:n + 1] for n in range(N)],
        axis=1)                                                         # (Cmid, NHW)

    # ---------------- project 1x1 conv + BN2 + identity skip ----------------
    p = jnp.dot(wpT, g, preferred_element_type=f32)                     # (Cout, NHW)
    s2 = jnp.sum(p, axis=1, keepdims=True)
    q2 = jnp.sum(p * p, axis=1, keepdims=True)
    scale2, shift2 = _bn_scale_shift(s2, q2, g2, b2, inv_cnt, eps)
    out_ref[...] = (p * scale2 + shift2 + x_ref[...]).astype(out_ref.dtype)


def mixnet_block(x_nchw, params, *, dw_ksizes=(3, 5)):
    """MixnetBlock forward.  One tiny transpose at each boundary puts channels
    on sublanes and the fused (sample, pixel) index on lanes; all weights are
    packed into three small slabs (single DMA each)."""
    N, Cin, H, W = x_nchw.shape
    (w_exp, g0, b0, w3, w5, g1, b1, wsr, wse, wp, g2, b2) = params
    Cmid = w_exp.shape[1]
    Cout = wp.shape[1]
    dw_weights = (w3, w5)
    dw_splits = tuple(w.shape[1] for w in dw_weights)
    HW = H * W
    f32 = jnp.float32

    x = jnp.transpose(x_nchw, (1, 0, 2, 3)).reshape(Cin, N * HW).astype(f32)

    def pad2(a, rows, cols):
        a = a.astype(f32)
        return jnp.pad(a, ((0, rows - a.shape[0]), (0, cols - a.shape[1])))

    # Packed 1x1-conv weights: [wexpT; wsrT(pad rows); wseT(pad cols); wpT].
    w_mm = jnp.concatenate([
        pad2(jnp.transpose(w_exp), Cmid, Cmid),     # (Cmid, Cin) in cols 0:Cin
        pad2(jnp.transpose(wsr), SE_PAD, Cmid),     # (Cse, Cmid) in rows 0:Cse
        pad2(jnp.transpose(wse), Cmid, Cmid),       # (Cmid, Cse) in cols 0:Cse
        pad2(jnp.transpose(wp), Cout, Cmid),        # (Cout, Cmid)
    ], axis=0)

    # Packed depthwise taps: channel rows, tap-index columns.
    max_kk = max(k * k for k in dw_ksizes)
    w_dw = jnp.concatenate(
        [pad2(jnp.transpose(w), c, max_kk) for w, c in zip(dw_weights, dw_splits)],
        axis=0)

    # Packed BN gammas/betas: one (Cmid, 6) slab.
    def col(v, rows):
        v = v.reshape(-1, 1).astype(f32)
        return jnp.pad(v, ((0, rows - v.shape[0]), (0, 0)))
    bn = jnp.concatenate([col(g0, Cmid), col(b0, Cmid), col(g1, Cmid),
                          col(b1, Cmid), col(g2, Cmid), col(b2, Cmid)], axis=1)

    vmem = pl.BlockSpec(memory_space=pltpu.MemorySpace.VMEM)
    out2d = pl.pallas_call(
        functools.partial(mixnet_block_kernel, height=H, width=W,
                          dw_ksizes=tuple(dw_ksizes), dw_splits=dw_splits,
                          cse_pad=SE_PAD, eps=BN_EPS),
        out_shape=jax.ShapeDtypeStruct((Cout, N * HW), jnp.float32),
        in_specs=[vmem] * 4,
        out_specs=vmem,
    )(x, w_mm, w_dw, bn)
    return jnp.transpose(out2d.reshape(Cout, N, H, W), (1, 0, 2, 3))


def mixnet_block_ref(x_nchw, params):
    """Pure-JAX reference (lax.conv for the depthwise path, exact sigmoid)."""
    x = jnp.transpose(x_nchw, (0, 2, 3, 1)).astype(jnp.float32)
    N, H, W, Cin = x.shape
    (w_exp, g0, b0, w3, w5, g1, b1, wsr, wse, wp, g2, b2) = params
    Cmid = w_exp.shape[1]
    C3 = w3.shape[1]

    def bn(h2d, gamma, beta):
        m = jnp.mean(h2d, axis=0, keepdims=True)
        v = jnp.mean((h2d - m) ** 2, axis=0, keepdims=True)
        return (h2d - m) * lax.rsqrt(v + BN_EPS) * gamma + beta

    def swish(t):
        return t * jax.nn.sigmoid(t)

    xf = x.reshape(-1, Cin)
    h = swish(bn(xf @ w_exp, g0, b0))

    hs = h.reshape(N, H, W, Cmid)
    dn = ('NHWC', 'HWIO', 'NHWC')
    y3 = lax.conv_general_dilated(hs[..., :C3], w3.reshape(3, 3, 1, C3),
                                  window_strides=(1, 1), padding='SAME',
                                  dimension_numbers=dn, feature_group_count=C3)
    y5 = lax.conv_general_dilated(hs[..., C3:], w5.reshape(5, 5, 1, Cmid - C3),
                                  window_strides=(1, 1), padding='SAME',
                                  dimension_numbers=dn,
                                  feature_group_count=Cmid - C3)
    h = jnp.concatenate([y3, y5], axis=-1).reshape(-1, Cmid)
    h = swish(bn(h, g1, b1))

    se = h.reshape(N, H * W, Cmid).mean(axis=1)
    gate = jax.nn.sigmoid(swish(se @ wsr) @ wse)
    h = (h.reshape(N, H * W, Cmid) * gate[:, None, :]).reshape(-1, Cmid)

    p = bn(h @ wp, g2, b2)
    out = (p + xf).reshape(N, H, W, -1)
    return jnp.transpose(out, (0, 3, 1, 2))


if __name__ == "__main__":
    # Block hyper-parameters (see header comment).
    N, Cin, H, W = 2, 8, 16, 16
    expand_ratio = 2
    Cmid = Cin * expand_ratio                     # 16
    C3, C5 = Cmid // 2, Cmid - Cmid // 2          # splitFilters(16, 2) -> [8, 8]
    Cse = max(1, int(Cin * 0.25))                 # 2
    Cout = Cin                                    # id_skip active

    key = jax.random.PRNGKey(0)
    ks = jax.random.split(key, 13)
    x = jax.random.normal(ks[0], (N, Cin, H, W), jnp.float32)
    w_exp = 0.2 * jax.random.normal(ks[1], (Cin, Cmid), jnp.float32)
    g0 = 1.0 + 0.1 * jax.random.normal(ks[2], (1, Cmid), jnp.float32)
    b0 = 0.1 * jax.random.normal(ks[3], (1, Cmid), jnp.float32)
    w3 = 0.2 * jax.random.normal(ks[4], (9, C3), jnp.float32)    # depthwise taps (ky*kx, C3)
    w5 = 0.2 * jax.random.normal(ks[5], (25, C5), jnp.float32)   # depthwise taps (ky*kx, C5)
    g1 = 1.0 + 0.1 * jax.random.normal(ks[6], (1, Cmid), jnp.float32)
    b1 = 0.1 * jax.random.normal(ks[7], (1, Cmid), jnp.float32)
    wsr = 0.2 * jax.random.normal(ks[8], (Cmid, Cse), jnp.float32)
    wse = 0.2 * jax.random.normal(ks[9], (Cse, Cmid), jnp.float32)
    wp = 0.2 * jax.random.normal(ks[10], (Cmid, Cout), jnp.float32)
    g2 = 1.0 + 0.1 * jax.random.normal(ks[11], (1, Cout), jnp.float32)
    b2 = 0.1 * jax.random.normal(ks[12], (1, Cout), jnp.float32)
    params = (w_exp, g0, b0, w3, w5, g1, b1, wsr, wse, wp, g2, b2)

    out = jax.jit(mixnet_block)(x, params)
    out = jax.block_until_ready(out)

    ref = mixnet_block_ref(x, params)
    out_np = np.asarray(out)
    assert np.all(np.isfinite(out_np))
    # Tolerance covers the EUP approximate-reciprocal sigmoid used in the
    # HW-wide swishes (the SE gate itself is exact).
    np.testing.assert_allclose(out_np, np.asarray(ref), rtol=2e-2, atol=2e-2)
    print("KERNEL_OK")
</pallas_src>

<mosaic_0001>
module attributes {stable_mosaic.version = 11 : i64} {
  func.func @mixnet_block_kernel(%arg0: memref<8x512xf32, #tpu.memory_space<vmem>>, %arg1: memref<48x16xf32, #tpu.memory_space<vmem>>, %arg2: memref<16x25xf32, #tpu.memory_space<vmem>>, %arg3: memref<16x6xf32, #tpu.memory_space<vmem>>, %arg4: memref<8x512xf32, #tpu.memory_space<vmem>>) attributes {dimension_semantics = [], scalar_prefetch = 0 : i64, scratch_operands = 0 : i64, tpu.core_type = #tpu.core_type<tc>} {
    %c0 = arith.constant 0 : index
    %c0_0 = arith.constant 0 : index
    %0 = vector.load %arg1[%c0, %c0_0] : memref<48x16xf32, #tpu.memory_space<vmem>>, vector<16x8xf32>
    %c16 = arith.constant 16 : index
    %c0_1 = arith.constant 0 : index
    %1 = vector.load %arg1[%c16, %c0_1] : memref<48x16xf32, #tpu.memory_space<vmem>>, vector<8x16xf32>
    %c24 = arith.constant 24 : index
    %c0_2 = arith.constant 0 : index
    %2 = vector.load %arg1[%c24, %c0_2] : memref<48x16xf32, #tpu.memory_space<vmem>>, vector<16x8xf32>
    %c40 = arith.constant 40 : index
    %c0_3 = arith.constant 0 : index
    %3 = vector.load %arg1[%c40, %c0_3] : memref<48x16xf32, #tpu.memory_space<vmem>>, vector<8x16xf32>
    %c0_4 = arith.constant 0 : index
    %c0_5 = arith.constant 0 : index
    %4 = vector.load %arg2[%c0_4, %c0_5] : memref<16x25xf32, #tpu.memory_space<vmem>>, vector<16x25xf32>
    %c0_6 = arith.constant 0 : index
    %c0_7 = arith.constant 0 : index
    %5 = vector.load %arg3[%c0_6, %c0_7] : memref<16x6xf32, #tpu.memory_space<vmem>>, vector<16x1xf32>
    %c0_8 = arith.constant 0 : index
    %c1 = arith.constant 1 : index
    %6 = vector.load %arg3[%c0_8, %c1] : memref<16x6xf32, #tpu.memory_space<vmem>>, vector<16x1xf32>
    %c0_9 = arith.constant 0 : index
    %c2 = arith.constant 2 : index
    %7 = vector.load %arg3[%c0_9, %c2] : memref<16x6xf32, #tpu.memory_space<vmem>>, vector<16x1xf32>
    %c0_10 = arith.constant 0 : index
    %c3 = arith.constant 3 : index
    %8 = vector.load %arg3[%c0_10, %c3] : memref<16x6xf32, #tpu.memory_space<vmem>>, vector<16x1xf32>
    %c0_11 = arith.constant 0 : index
    %c4 = arith.constant 4 : index
    %9 = vector.load %arg3[%c0_11, %c4] : memref<16x6xf32, #tpu.memory_space<vmem>>, vector<8x1xf32>
    %c0_12 = arith.constant 0 : index
    %c5 = arith.constant 5 : index
    %10 = vector.load %arg3[%c0_12, %c5] : memref<16x6xf32, #tpu.memory_space<vmem>>, vector<8x1xf32>
    %11 = tpu.iota {dimensions = array<i32: 1>} : vector<1x512xi32>
    %c255_i32 = arith.constant 255 : i32
    %12 = vector.broadcast %c255_i32 : i32 to vector<1x512xi32>
    %13 = arith.andi %11, %12 : vector<1x512xi32>
    %c15_i32 = arith.constant 15 : i32
    %14 = vector.broadcast %c15_i32 : i32 to vector<1x512xi32>
    %15 = arith.andi %13, %14 : vector<1x512xi32>
    %c4_i32 = arith.constant 4 : i32
    %16 = vector.broadcast %c4_i32 : i32 to vector<1x512xi32>
    %17 = arith.shrsi %13, %16 : vector<1x512xi32>
    %c2_i32 = arith.constant 2 : i32
    %18 = vector.broadcast %c2_i32 : i32 to vector<1x512xi32>
    %19 = arith.cmpi sge, %15, %18 : vector<1x512xi32>
    %c2_i32_13 = arith.constant 2 : i32
    %20 = vector.broadcast %c2_i32_13 : i32 to vector<1x512xi32>
    %21 = arith.cmpi sge, %17, %20 : vector<1x512xi32>
    %22 = arith.andi %19, %21 : vector<1x512xi1>
    %23 = arith.extui %22 : vector<1x512xi1> to vector<1x512xi32>
    %24 = arith.sitofp %23 : vector<1x512xi32> to vector<1x512xf32>
    %c1_i32 = arith.constant 1 : i32
    %25 = vector.broadcast %c1_i32 : i32 to vector<1x512xi32>
    %26 = arith.cmpi sge, %15, %25 : vector<1x512xi32>
    %c2_i32_14 = arith.constant 2 : i32
    %27 = vector.broadcast %c2_i32_14 : i32 to vector<1x512xi32>
    %28 = arith.cmpi sge, %17, %27 : vector<1x512xi32>
    %29 = arith.andi %26, %28 : vector<1x512xi1>
    %30 = arith.extui %29 : vector<1x512xi1> to vector<1x512xi32>
    %31 = arith.sitofp %30 : vector<1x512xi32> to vector<1x512xf32>
    %c2_i32_15 = arith.constant 2 : i32
    %32 = vector.broadcast %c2_i32_15 : i32 to vector<1x512xi32>
    %33 = arith.cmpi sge, %17, %32 : vector<1x512xi32>
    %34 = arith.extui %33 : vector<1x512xi1> to vector<1x512xi32>
    %35 = arith.sitofp %34 : vector<1x512xi32> to vector<1x512xf32>
    %c15_i32_16 = arith.constant 15 : i32
    %36 = vector.broadcast %c15_i32_16 : i32 to vector<1x512xi32>
    %37 = arith.cmpi slt, %15, %36 : vector<1x512xi32>
    %c2_i32_17 = arith.constant 2 : i32
    %38 = vector.broadcast %c2_i32_17 : i32 to vector<1x512xi32>
    %39 = arith.cmpi sge, %17, %38 : vector<1x512xi32>
    %40 = arith.andi %37, %39 : vector<1x512xi1>
    %41 = arith.extui %40 : vector<1x512xi1> to vector<1x512xi32>
    %42 = arith.sitofp %41 : vector<1x512xi32> to vector<1x512xf32>
    %c14_i32 = arith.constant 14 : i32
    %43 = vector.broadcast %c14_i32 : i32 to vector<1x512xi32>
    %44 = arith.cmpi slt, %15, %43 : vector<1x512xi32>
    %c2_i32_18 = arith.constant 2 : i32
    %45 = vector.broadcast %c2_i32_18 : i32 to vector<1x512xi32>
    %46 = arith.cmpi sge, %17, %45 : vector<1x512xi32>
    %47 = arith.andi %44, %46 : vector<1x512xi1>
    %48 = arith.extui %47 : vector<1x512xi1> to vector<1x512xi32>
    %49 = arith.sitofp %48 : vector<1x512xi32> to vector<1x512xf32>
    %c2_i32_19 = arith.constant 2 : i32
    %50 = vector.broadcast %c2_i32_19 : i32 to vector<1x512xi32>
    %51 = arith.cmpi sge, %15, %50 : vector<1x512xi32>
    %c1_i32_20 = arith.constant 1 : i32
    %52 = vector.broadcast %c1_i32_20 : i32 to vector<1x512xi32>
    %53 = arith.cmpi sge, %17, %52 : vector<1x512xi32>
    %54 = arith.andi %51, %53 : vector<1x512xi1>
    %55 = arith.extui %54 : vector<1x512xi1> to vector<1x512xi32>
    %56 = arith.sitofp %55 : vector<1x512xi32> to vector<1x512xf32>
    %c1_i32_21 = arith.constant 1 : i32
    %57 = vector.broadcast %c1_i32_21 : i32 to vector<1x512xi32>
    %58 = arith.cmpi sge, %15, %57 : vector<1x512xi32>
    %c1_i32_22 = arith.constant 1 : i32
    %59 = vector.broadcast %c1_i32_22 : i32 to vector<1x512xi32>
    %60 = arith.cmpi sge, %17, %59 : vector<1x512xi32>
    %61 = arith.andi %58, %60 : vector<1x512xi1>
    %62 = arith.extui %61 : vector<1x512xi1> to vector<1x512xi32>
    %63 = arith.sitofp %62 : vector<1x512xi32> to vector<1x512xf32>
    %c1_i32_23 = arith.constant 1 : i32
    %64 = vector.broadcast %c1_i32_23 : i32 to vector<1x512xi32>
    %65 = arith.cmpi sge, %17, %64 : vector<1x512xi32>
    %66 = arith.extui %65 : vector<1x512xi1> to vector<1x512xi32>
    %67 = arith.sitofp %66 : vector<1x512xi32> to vector<1x512xf32>
    %c15_i32_24 = arith.constant 15 : i32
    %68 = vector.broadcast %c15_i32_24 : i32 to vector<1x512xi32>
    %69 = arith.cmpi slt, %15, %68 : vector<1x512xi32>
    %c1_i32_25 = arith.constant 1 : i32
    %70 = vector.broadcast %c1_i32_25 : i32 to vector<1x512xi32>
    %71 = arith.cmpi sge, %17, %70 : vector<1x512xi32>
    %72 = arith.andi %69, %71 : vector<1x512xi1>
    %73 = arith.extui %72 : vector<1x512xi1> to vector<1x512xi32>
    %74 = arith.sitofp %73 : vector<1x512xi32> to vector<1x512xf32>
    %c14_i32_26 = arith.constant 14 : i32
    %75 = vector.broadcast %c14_i32_26 : i32 to vector<1x512xi32>
    %76 = arith.cmpi slt, %15, %75 : vector<1x512xi32>
    %c1_i32_27 = arith.constant 1 : i32
    %77 = vector.broadcast %c1_i32_27 : i32 to vector<1x512xi32>
    %78 = arith.cmpi sge, %17, %77 : vector<1x512xi32>
    %79 = arith.andi %76, %78 : vector<1x512xi1>
    %80 = arith.extui %79 : vector<1x512xi1> to vector<1x512xi32>
    %81 = arith.sitofp %80 : vector<1x512xi32> to vector<1x512xf32>
    %c2_i32_28 = arith.constant 2 : i32
    %82 = vector.broadcast %c2_i32_28 : i32 to vector<1x512xi32>
    %83 = arith.cmpi sge, %15, %82 : vector<1x512xi32>
    %84 = arith.extui %83 : vector<1x512xi1> to vector<1x512xi32>
    %85 = arith.sitofp %84 : vector<1x512xi32> to vector<1x512xf32>
    %c1_i32_29 = arith.constant 1 : i32
    %86 = vector.broadcast %c1_i32_29 : i32 to vector<1x512xi32>
    %87 = arith.cmpi sge, %15, %86 : vector<1x512xi32>
    %88 = arith.extui %87 : vector<1x512xi1> to vector<1x512xi32>
    %89 = arith.sitofp %88 : vector<1x512xi32> to vector<1x512xf32>
    %c15_i32_30 = arith.constant 15 : i32
    %90 = vector.broadcast %c15_i32_30 : i32 to vector<1x512xi32>
    %91 = arith.cmpi slt, %15, %90 : vector<1x512xi32>
    %92 = arith.extui %91 : vector<1x512xi1> to vector<1x512xi32>
    %93 = arith.sitofp %92 : vector<1x512xi32> to vector<1x512xf32>
    %c14_i32_31 = arith.constant 14 : i32
    %94 = vector.broadcast %c14_i32_31 : i32 to vector<1x512xi32>
    %95 = arith.cmpi slt, %15, %94 : vector<1x512xi32>
    %96 = arith.extui %95 : vector<1x512xi1> to vector<1x512xi32>
    %97 = arith.sitofp %96 : vector<1x512xi32> to vector<1x512xf32>
    %c2_i32_32 = arith.constant 2 : i32
    %98 = vector.broadcast %c2_i32_32 : i32 to vector<1x512xi32>
    %99 = arith.cmpi sge, %15, %98 : vector<1x512xi32>
    %c15_i32_33 = arith.constant 15 : i32
    %100 = vector.broadcast %c15_i32_33 : i32 to vector<1x512xi32>
    %101 = arith.cmpi slt, %17, %100 : vector<1x512xi32>
    %102 = arith.andi %99, %101 : vector<1x512xi1>
    %103 = arith.extui %102 : vector<1x512xi1> to vector<1x512xi32>
    %104 = arith.sitofp %103 : vector<1x512xi32> to vector<1x512xf32>
    %c1_i32_34 = arith.constant 1 : i32
    %105 = vector.broadcast %c1_i32_34 : i32 to vector<1x512xi32>
    %106 = arith.cmpi sge, %15, %105 : vector<1x512xi32>
    %c15_i32_35 = arith.constant 15 : i32
    %107 = vector.broadcast %c15_i32_35 : i32 to vector<1x512xi32>
    %108 = arith.cmpi slt, %17, %107 : vector<1x512xi32>
    %109 = arith.andi %106, %108 : vector<1x512xi1>
    %110 = arith.extui %109 : vector<1x512xi1> to vector<1x512xi32>
    %111 = arith.sitofp %110 : vector<1x512xi32> to vector<1x512xf32>
    %c15_i32_36 = arith.constant 15 : i32
    %112 = vector.broadcast %c15_i32_36 : i32 to vector<1x512xi32>
    %113 = arith.cmpi slt, %17, %112 : vector<1x512xi32>
    %114 = arith.extui %113 : vector<1x512xi1> to vector<1x512xi32>
    %115 = arith.sitofp %114 : vector<1x512xi32> to vector<1x512xf32>
    %c15_i32_37 = arith.constant 15 : i32
    %116 = vector.broadcast %c15_i32_37 : i32 to vector<1x512xi32>
    %117 = arith.cmpi slt, %15, %116 : vector<1x512xi32>
    %c15_i32_38 = arith.constant 15 : i32
    %118 = vector.broadcast %c15_i32_38 : i32 to vector<1x512xi32>
    %119 = arith.cmpi slt, %17, %118 : vector<1x512xi32>
    %120 = arith.andi %117, %119 : vector<1x512xi1>
    %121 = arith.extui %120 : vector<1x512xi1> to vector<1x512xi32>
    %122 = arith.sitofp %121 : vector<1x512xi32> to vector<1x512xf32>
    %c14_i32_39 = arith.constant 14 : i32
    %123 = vector.broadcast %c14_i32_39 : i32 to vector<1x512xi32>
    %124 = arith.cmpi slt, %15, %123 : vector<1x512xi32>
    %c15_i32_40 = arith.constant 15 : i32
    %125 = vector.broadcast %c15_i32_40 : i32 to vector<1x512xi32>
    %126 = arith.cmpi slt, %17, %125 : vector<1x512xi32>
    %127 = arith.andi %124, %126 : vector<1x512xi1>
    %128 = arith.extui %127 : vector<1x512xi1> to vector<1x512xi32>
    %129 = arith.sitofp %128 : vector<1x512xi32> to vector<1x512xf32>
    %c2_i32_41 = arith.constant 2 : i32
    %130 = vector.broadcast %c2_i32_41 : i32 to vector<1x512xi32>
    %131 = arith.cmpi sge, %15, %130 : vector<1x512xi32>
    %c14_i32_42 = arith.constant 14 : i32
    %132 = vector.broadcast %c14_i32_42 : i32 to vector<1x512xi32>
    %133 = arith.cmpi slt, %17, %132 : vector<1x512xi32>
    %134 = arith.andi %131, %133 : vector<1x512xi1>
    %135 = arith.extui %134 : vector<1x512xi1> to vector<1x512xi32>
    %136 = arith.sitofp %135 : vector<1x512xi32> to vector<1x512xf32>
    %c1_i32_43 = arith.constant 1 : i32
    %137 = vector.broadcast %c1_i32_43 : i32 to vector<1x512xi32>
    %138 = arith.cmpi sge, %15, %137 : vector<1x512xi32>
    %c14_i32_44 = arith.constant 14 : i32
    %139 = vector.broadcast %c14_i32_44 : i32 to vector<1x512xi32>
    %140 = arith.cmpi slt, %17, %139 : vector<1x512xi32>
    %141 = arith.andi %138, %140 : vector<1x512xi1>
    %142 = arith.extui %141 : vector<1x512xi1> to vector<1x512xi32>
    %143 = arith.sitofp %142 : vector<1x512xi32> to vector<1x512xf32>
    %c14_i32_45 = arith.constant 14 : i32
    %144 = vector.broadcast %c14_i32_45 : i32 to vector<1x512xi32>
    %145 = arith.cmpi slt, %17, %144 : vector<1x512xi32>
    %146 = arith.extui %145 : vector<1x512xi1> to vector<1x512xi32>
    %147 = arith.sitofp %146 : vector<1x512xi32> to vector<1x512xf32>
    %c15_i32_46 = arith.constant 15 : i32
    %148 = vector.broadcast %c15_i32_46 : i32 to vector<1x512xi32>
    %149 = arith.cmpi slt, %15, %148 : vector<1x512xi32>
    %c14_i32_47 = arith.constant 14 : i32
    %150 = vector.broadcast %c14_i32_47 : i32 to vector<1x512xi32>
    %151 = arith.cmpi slt, %17, %150 : vector<1x512xi32>
    %152 = arith.andi %149, %151 : vector<1x512xi1>
    %153 = arith.extui %152 : vector<1x512xi1> to vector<1x512xi32>
    %154 = arith.sitofp %153 : vector<1x512xi32> to vector<1x512xf32>
    %c14_i32_48 = arith.constant 14 : i32
    %155 = vector.broadcast %c14_i32_48 : i32 to vector<1x512xi32>
    %156 = arith.cmpi slt, %15, %155 : vector<1x512xi32>
    %c14_i32_49 = arith.constant 14 : i32
    %157 = vector.broadcast %c14_i32_49 : i32 to vector<1x512xi32>
    %158 = arith.cmpi slt, %17, %157 : vector<1x512xi32>
    %159 = arith.andi %156, %158 : vector<1x512xi1>
    %160 = arith.extui %159 : vector<1x512xi1> to vector<1x512xi32>
    %161 = arith.sitofp %160 : vector<1x512xi32> to vector<1x512xf32>
    %c0_50 = arith.constant 0 : index
    %c0_51 = arith.constant 0 : index
    %162 = vector.load %arg0[%c0_50, %c0_51] : memref<8x512xf32, #tpu.memory_space<vmem>>, vector<8x512xf32>
    %cst = arith.constant dense<0.000000e+00> : vector<16x512xf32>
    %163 = tpu.matmul %0, %162, %cst {dimension_numbers = #tpu.dot_dimension_numbers<[1], [0], [0], [1], [0, 0, 1, 1], [], []>} : vector<16x8xf32>, vector<8x512xf32>, vector<16x512xf32> -> vector<16x512xf32>
    %cst_52 = arith.constant dense<0.000000e+00> : vector<16xf32>
    %164 = vector.multi_reduction <add>, %163, %cst_52 [1] : vector<16x512xf32> to vector<16xf32>
    %165 = vector.shape_cast %164 : vector<16xf32> to vector<16x1xf32>
    %166 = arith.mulf %163, %163 : vector<16x512xf32>
    %cst_53 = arith.constant dense<0.000000e+00> : vector<16xf32>
    %167 = vector.multi_reduction <add>, %166, %cst_53 [1] : vector<16x512xf32> to vector<16xf32>
    %168 = vector.shape_cast %167 : vector<16xf32> to vector<16x1xf32>
    %cst_54 = arith.constant 0.001953125 : f32
    %169 = vector.broadcast %cst_54 : f32 to vector<16x1xf32>
    %170 = arith.mulf %165, %169 : vector<16x1xf32>
    %cst_55 = arith.constant 0.001953125 : f32
    %171 = vector.broadcast %cst_55 : f32 to vector<16x1xf32>
    %172 = arith.mulf %168, %171 : vector<16x1xf32>
    %173 = arith.mulf %170, %170 : vector<16x1xf32>
    %174 = arith.subf %172, %173 : vector<16x1xf32>
    %cst_56 = arith.constant 0.000000e+00 : f32
    %175 = vector.broadcast %cst_56 : f32 to vector<16x1xf32>
    %176 = arith.maximumf %174, %175 : vector<16x1xf32>
    %cst_57 = arith.constant 1.000000e-03 : f32
    %177 = vector.broadcast %cst_57 : f32 to vector<16x1xf32>
    %178 = arith.addf %176, %177 : vector<16x1xf32>
    %179 = math.rsqrt %178 : vector<16x1xf32>
    %180 = arith.mulf %5, %179 : vector<16x1xf32>
    %181 = arith.mulf %170, %180 : vector<16x1xf32>
    %182 = arith.subf %6, %181 : vector<16x1xf32>
    %183 = vector.broadcast %180 : vector<16x1xf32> to vector<16x512xf32>
    %184 = arith.mulf %163, %183 : vector<16x512xf32>
    %185 = vector.broadcast %182 : vector<16x1xf32> to vector<16x512xf32>
    %186 = arith.addf %184, %185 : vector<16x512xf32>
    %cst_58 = arith.constant 0.000000e+00 : f32
    %187 = vector.broadcast %cst_58 : f32 to vector<16x512xf32>
    %188 = arith.subf %187, %186 : vector<16x512xf32>
    %189 = math.exp %188 : vector<16x512xf32>
    %cst_59 = arith.constant 1.000000e+00 : f32
    %190 = vector.broadcast %cst_59 : f32 to vector<16x512xf32>
    %191 = arith.addf %190, %189 : vector<16x512xf32>
    %192 = tpu.reciprocal %191 {approx = true} : vector<16x512xf32> -> vector<16x512xf32>
    %193 = arith.mulf %186, %192 : vector<16x512xf32>
    %194 = vector.extract_strided_slice %193 {offsets = [0, 0], sizes = [8, 512], strides = [1, 1]} : vector<16x512xf32> to vector<8x512xf32>
    %195 = vector.extract_strided_slice %4 {offsets = [0, 0], sizes = [8, 25], strides = [1, 1]} : vector<16x25xf32> to vector<8x25xf32>
    %196 = vector.extract_strided_slice %195 {offsets = [0, 4], sizes = [8, 1], strides = [1, 1]} : vector<8x25xf32> to vector<8x1xf32>
    %197 = vector.broadcast %196 : vector<8x1xf32> to vector<8x512xf32>
    %198 = arith.mulf %194, %197 : vector<8x512xf32>
    %199 = vector.extract_strided_slice %195 {offsets = [0, 0], sizes = [8, 1], strides = [1, 1]} : vector<8x25xf32> to vector<8x1xf32>
    %c17_i32 = arith.constant 17 : i32
    %200 = tpu.dynamic_rotate %194 by %c17_i32 dim 1 : vector<8x512xf32>, i32 -> vector<8x512xf32>
    %201 = vector.broadcast %63 : vector<1x512xf32> to vector<8x512xf32>
    %202 = arith.mulf %200, %201 : vector<8x512xf32>
    %203 = vector.broadcast %199 : vector<8x1xf32> to vector<8x512xf32>
    %204 = arith.mulf %202, %203 : vector<8x512xf32>
    %205 = arith.addf %198, %204 : vector<8x512xf32>
    %206 = vector.extract_strided_slice %195 {offsets = [0, 1], sizes = [8, 1], strides = [1, 1]} : vector<8x25xf32> to vector<8x1xf32>
    %c16_i32 = arith.constant 16 : i32
    %207 = tpu.dynamic_rotate %194 by %c16_i32 dim 1 : vector<8x512xf32>, i32 -> vector<8x512xf32>
    %208 = vector.broadcast %67 : vector<1x512xf32> to vector<8x512xf32>
    %209 = arith.mulf %207, %208 : vector<8x512xf32>
    %210 = vector.broadcast %206 : vector<8x1xf32> to vector<8x512xf32>
    %211 = arith.mulf %209, %210 : vector<8x512xf32>
    %212 = arith.addf %205, %211 : vector<8x512xf32>
    %213 = vector.extract_strided_slice %195 {offsets = [0, 2], sizes = [8, 1], strides = [1, 1]} : vector<8x25xf32> to vector<8x1xf32>
    %c15_i32_60 = arith.constant 15 : i32
    %214 = tpu.dynamic_rotate %194 by %c15_i32_60 dim 1 : vector<8x512xf32>, i32 -> vector<8x512xf32>
    %215 = vector.broadcast %74 : vector<1x512xf32> to vector<8x512xf32>
    %216 = arith.mulf %214, %215 : vector<8x512xf32>
    %217 = vector.broadcast %213 : vector<8x1xf32> to vector<8x512xf32>
    %218 = arith.mulf %216, %217 : vector<8x512xf32>
    %219 = arith.addf %212, %218 : vector<8x512xf32>
    %220 = vector.extract_strided_slice %195 {offsets = [0, 3], sizes = [8, 1], strides = [1, 1]} : vector<8x25xf32> to vector<8x1xf32>
    %c1_i32_61 = arith.constant 1 : i32
    %221 = tpu.dynamic_rotate %194 by %c1_i32_61 dim 1 : vector<8x512xf32>, i32 -> vector<8x512xf32>
    %222 = vector.broadcast %89 : vector<1x512xf32> to vector<8x512xf32>
    %223 = arith.mulf %221, %222 : vector<8x512xf32>
    %224 = vector.broadcast %220 : vector<8x1xf32> to vector<8x512xf32>
    %225 = arith.mulf %223, %224 : vector<8x512xf32>
    %226 = arith.addf %219, %225 : vector<8x512xf32>
    %227 = vector.extract_strided_slice %195 {offsets = [0, 5], sizes = [8, 1], strides = [1, 1]} : vector<8x25xf32> to vector<8x1xf32>
    %c511_i32 = arith.constant 511 : i32
    %228 = tpu.dynamic_rotate %194 by %c511_i32 dim 1 : vector<8x512xf32>, i32 -> vector<8x512xf32>
    %229 = vector.broadcast %93 : vector<1x512xf32> to vector<8x512xf32>
    %230 = arith.mulf %228, %229 : vector<8x512xf32>
    %231 = vector.broadcast %227 : vector<8x1xf32> to vector<8x512xf32>
    %232 = arith.mulf %230, %231 : vector<8x512xf32>
    %233 = arith.addf %226, %232 : vector<8x512xf32>
    %234 = vector.extract_strided_slice %195 {offsets = [0, 6], sizes = [8, 1], strides = [1, 1]} : vector<8x25xf32> to vector<8x1xf32>
    %c497_i32 = arith.constant 497 : i32
    %235 = tpu.dynamic_rotate %194 by %c497_i32 dim 1 : vector<8x512xf32>, i32 -> vector<8x512xf32>
    %236 = vector.broadcast %111 : vector<1x512xf32> to vector<8x512xf32>
    %237 = arith.mulf %235, %236 : vector<8x512xf32>
    %238 = vector.broadcast %234 : vector<8x1xf32> to vector<8x512xf32>
    %239 = arith.mulf %237, %238 : vector<8x512xf32>
    %240 = arith.addf %233, %239 : vector<8x512xf32>
    %241 = vector.extract_strided_slice %195 {offsets = [0, 7], sizes = [8, 1], strides = [1, 1]} : vector<8x25xf32> to vector<8x1xf32>
    %c496_i32 = arith.constant 496 : i32
    %242 = tpu.dynamic_rotate %194 by %c496_i32 dim 1 : vector<8x512xf32>, i32 -> vector<8x512xf32>
    %243 = vector.broadcast %115 : vector<1x512xf32> to vector<8x512xf32>
    %244 = arith.mulf %242, %243 : vector<8x512xf32>
    %245 = vector.broadcast %241 : vector<8x1xf32> to vector<8x512xf32>
    %246 = arith.mulf %244, %245 : vector<8x512xf32>
    %247 = arith.addf %240, %246 : vector<8x512xf32>
    %248 = vector.extract_strided_slice %195 {offsets = [0, 8], sizes = [8, 1], strides = [1, 1]} : vector<8x25xf32> to vector<8x1xf32>
    %c495_i32 = arith.constant 495 : i32
    %249 = tpu.dynamic_rotate %194 by %c495_i32 dim 1 : vector<8x512xf32>, i32 -> vector<8x512xf32>
    %250 = vector.broadcast %122 : vector<1x512xf32> to vector<8x512xf32>
    %251 = arith.mulf %249, %250 : vector<8x512xf32>
    %252 = vector.broadcast %248 : vector<8x1xf32> to vector<8x512xf32>
    %253 = arith.mulf %251, %252 : vector<8x512xf32>
    %254 = arith.addf %247, %253 : vector<8x512xf32>
    %255 = vector.extract_strided_slice %193 {offsets = [8, 0], sizes = [8, 512], strides = [1, 1]} : vector<16x512xf32> to vector<8x512xf32>
    %256 = vector.extract_strided_slice %4 {offsets = [8, 0], sizes = [8, 25], strides = [1, 1]} : vector<16x25xf32> to vector<8x25xf32>
    %257 = vector.extract_strided_slice %256 {offsets = [0, 12], sizes = [8, 1], strides = [1, 1]} : vector<8x25xf32> to vector<8x1xf32>
    %258 = vector.broadcast %257 : vector<8x1xf32> to vector<8x512xf32>
    %259 = arith.mulf %255, %258 : vector<8x512xf32>
    %260 = vector.extract_strided_slice %256 {offsets = [0, 0], sizes = [8, 1], strides = [1, 1]} : vector<8x25xf32> to vector<8x1xf32>
    %c34_i32 = arith.constant 34 : i32
    %261 = tpu.dynamic_rotate %255 by %c34_i32 dim 1 : vector<8x512xf32>, i32 -> vector<8x512xf32>
    %262 = vector.broadcast %24 : vector<1x512xf32> to vector<8x512xf32>
    %263 = arith.mulf %261, %262 : vector<8x512xf32>
    %264 = vector.broadcast %260 : vector<8x1xf32> to vector<8x512xf32>
    %265 = arith.mulf %263, %264 : vector<8x512xf32>
    %266 = arith.addf %259, %265 : vector<8x512xf32>
    %267 = vector.extract_strided_slice %256 {offsets = [0, 1], sizes = [8, 1], strides = [1, 1]} : vector<8x25xf32> to vector<8x1xf32>
    %c33_i32 = arith.constant 33 : i32
    %268 = tpu.dynamic_rotate %255 by %c33_i32 dim 1 : vector<8x512xf32>, i32 -> vector<8x512xf32>
    %269 = vector.broadcast %31 : vector<1x512xf32> to vector<8x512xf32>
    %270 = arith.mulf %268, %269 : vector<8x512xf32>
    %271 = vector.broadcast %267 : vector<8x1xf32> to vector<8x512xf32>
    %272 = arith.mulf %270, %271 : vector<8x512xf32>
    %273 = arith.addf %266, %272 : vector<8x512xf32>
    %274 = vector.extract_strided_slice %256 {offsets = [0, 2], sizes = [8, 1], strides = [1, 1]} : vector<8x25xf32> to vector<8x1xf32>
    %c32_i32 = arith.constant 32 : i32
    %275 = tpu.dynamic_rotate %255 by %c32_i32 dim 1 : vector<8x512xf32>, i32 -> vector<8x512xf32>
    %276 = vector.broadcast %35 : vector<1x512xf32> to vector<8x512xf32>
    %277 = arith.mulf %275, %276 : vector<8x512xf32>
    %278 = vector.broadcast %274 : vector<8x1xf32> to vector<8x512xf32>
    %279 = arith.mulf %277, %278 : vector<8x512xf32>
    %280 = arith.addf %273, %279 : vector<8x512xf32>
    %281 = vector.extract_strided_slice %256 {offsets = [0, 3], sizes = [8, 1], strides = [1, 1]} : vector<8x25xf32> to vector<8x1xf32>
    %c31_i32 = arith.constant 31 : i32
    %282 = tpu.dynamic_rotate %255 by %c31_i32 dim 1 : vector<8x512xf32>, i32 -> vector<8x512xf32>
    %283 = vector.broadcast %42 : vector<1x512xf32> to vector<8x512xf32>
    %284 = arith.mulf %282, %283 : vector<8x512xf32>
    %285 = vector.broadcast %281 : vector<8x1xf32> to vector<8x512xf32>
    %286 = arith.mulf %284, %285 : vector<8x512xf32>
    %287 = arith.addf %280, %286 : vector<8x512xf32>
    %288 = vector.extract_strided_slice %256 {offsets = [0, 4], sizes = [8, 1], strides = [1, 1]} : vector<8x25xf32> to vector<8x1xf32>
    %c30_i32 = arith.constant 30 : i32
    %289 = tpu.dynamic_rotate %255 by %c30_i32 dim 1 : vector<8x512xf32>, i32 -> vector<8x512xf32>
    %290 = vector.broadcast %49 : vector<1x512xf32> to vector<8x512xf32>
    %291 = arith.mulf %289, %290 : vector<8x512xf32>
    %292 = vector.broadcast %288 : vector<8x1xf32> to vector<8x512xf32>
    %293 = arith.mulf %291, %292 : vector<8x512xf32>
    %294 = arith.addf %287, %293 : vector<8x512xf32>
    %295 = vector.extract_strided_slice %256 {offsets = [0, 5], sizes = [8, 1], strides = [1, 1]} : vector<8x25xf32> to vector<8x1xf32>
    %c18_i32 = arith.constant 18 : i32
    %296 = tpu.dynamic_rotate %255 by %c18_i32 dim 1 : vector<8x512xf32>, i32 -> vector<8x512xf32>
    %297 = vector.broadcast %56 : vector<1x512xf32> to vector<8x512xf32>
    %298 = arith.mulf %296, %297 : vector<8x512xf32>
    %299 = vector.broadcast %295 : vector<8x1xf32> to vector<8x512xf32>
    %300 = arith.mulf %298, %299 : vector<8x512xf32>
    %301 = arith.addf %294, %300 : vector<8x512xf32>
    %302 = vector.extract_strided_slice %256 {offsets = [0, 6], sizes = [8, 1], strides = [1, 1]} : vector<8x25xf32> to vector<8x1xf32>
    %c17_i32_62 = arith.constant 17 : i32
    %303 = tpu.dynamic_rotate %255 by %c17_i32_62 dim 1 : vector<8x512xf32>, i32 -> vector<8x512xf32>
    %304 = vector.broadcast %63 : vector<1x512xf32> to vector<8x512xf32>
    %305 = arith.mulf %303, %304 : vector<8x512xf32>
    %306 = vector.broadcast %302 : vector<8x1xf32> to vector<8x512xf32>
    %307 = arith.mulf %305, %306 : vector<8x512xf32>
    %308 = arith.addf %301, %307 : vector<8x512xf32>
    %309 = vector.extract_strided_slice %256 {offsets = [0, 7], sizes = [8, 1], strides = [1, 1]} : vector<8x25xf32> to vector<8x1xf32>
    %c16_i32_63 = arith.constant 16 : i32
    %310 = tpu.dynamic_rotate %255 by %c16_i32_63 dim 1 : vector<8x512xf32>, i32 -> vector<8x512xf32>
    %311 = vector.broadcast %67 : vector<1x512xf32> to vector<8x512xf32>
    %312 = arith.mulf %310, %311 : vector<8x512xf32>
    %313 = vector.broadcast %309 : vector<8x1xf32> to vector<8x512xf32>
    %314 = arith.mulf %312, %313 : vector<8x512xf32>
    %315 = arith.addf %308, %314 : vector<8x512xf32>
    %316 = vector.extract_strided_slice %256 {offsets = [0, 8], sizes = [8, 1], strides = [1, 1]} : vector<8x25xf32> to vector<8x1xf32>
    %c15_i32_64 = arith.constant 15 : i32
    %317 = tpu.dynamic_rotate %255 by %c15_i32_64 dim 1 : vector<8x512xf32>, i32 -> vector<8x512xf32>
    %318 = vector.broadcast %74 : vector<1x512xf32> to vector<8x512xf32>
    %319 = arith.mulf %317, %318 : vector<8x512xf32>
    %320 = vector.broadcast %316 : vector<8x1xf32> to vector<8x512xf32>
    %321 = arith.mulf %319, %320 : vector<8x512xf32>
    %322 = arith.addf %315, %321 : vector<8x512xf32>
    %323 = vector.extract_strided_slice %256 {offsets = [0, 9], sizes = [8, 1], strides = [1, 1]} : vector<8x25xf32> to vector<8x1xf32>
    %c14_i32_65 = arith.constant 14 : i32
    %324 = tpu.dynamic_rotate %255 by %c14_i32_65 dim 1 : vector<8x512xf32>, i32 -> vector<8x512xf32>
    %325 = vector.broadcast %81 : vector<1x512xf32> to vector<8x512xf32>
    %326 = arith.mulf %324, %325 : vector<8x512xf32>
    %327 = vector.broadcast %323 : vector<8x1xf32> to vector<8x512xf32>
    %328 = arith.mulf %326, %327 : vector<8x512xf32>
    %329 = arith.addf %322, %328 : vector<8x512xf32>
    %330 = vector.extract_strided_slice %256 {offsets = [0, 10], sizes = [8, 1], strides = [1, 1]} : vector<8x25xf32> to vector<8x1xf32>
    %c2_i32_66 = arith.constant 2 : i32
    %331 = tpu.dynamic_rotate %255 by %c2_i32_66 dim 1 : vector<8x512xf32>, i32 -> vector<8x512xf32>
    %332 = vector.broadcast %85 : vector<1x512xf32> to vector<8x512xf32>
    %333 = arith.mulf %331, %332 : vector<8x512xf32>
    %334 = vector.broadcast %330 : vector<8x1xf32> to vector<8x512xf32>
    %335 = arith.mulf %333, %334 : vector<8x512xf32>
    %336 = arith.addf %329, %335 : vector<8x512xf32>
    %337 = vector.extract_strided_slice %256 {offsets = [0, 11], sizes = [8, 1], strides = [1, 1]} : vector<8x25xf32> to vector<8x1xf32>
    %c1_i32_67 = arith.constant 1 : i32
    %338 = tpu.dynamic_rotate %255 by %c1_i32_67 dim 1 : vector<8x512xf32>, i32 -> vector<8x512xf32>
    %339 = vector.broadcast %89 : vector<1x512xf32> to vector<8x512xf32>
    %340 = arith.mulf %338, %339 : vector<8x512xf32>
    %341 = vector.broadcast %337 : vector<8x1xf32> to vector<8x512xf32>
    %342 = arith.mulf %340, %341 : vector<8x512xf32>
    %343 = arith.addf %336, %342 : vector<8x512xf32>
    %344 = vector.extract_strided_slice %256 {offsets = [0, 13], sizes = [8, 1], strides = [1, 1]} : vector<8x25xf32> to vector<8x1xf32>
    %c511_i32_68 = arith.constant 511 : i32
    %345 = tpu.dynamic_rotate %255 by %c511_i32_68 dim 1 : vector<8x512xf32>, i32 -> vector<8x512xf32>
    %346 = vector.broadcast %93 : vector<1x512xf32> to vector<8x512xf32>
    %347 = arith.mulf %345, %346 : vector<8x512xf32>
    %348 = vector.broadcast %344 : vector<8x1xf32> to vector<8x512xf32>
    %349 = arith.mulf %347, %348 : vector<8x512xf32>
    %350 = arith.addf %343, %349 : vector<8x512xf32>
    %351 = vector.extract_strided_slice %256 {offsets = [0, 14], sizes = [8, 1], strides = [1, 1]} : vector<8x25xf32> to vector<8x1xf32>
    %c510_i32 = arith.constant 510 : i32
    %352 = tpu.dynamic_rotate %255 by %c510_i32 dim 1 : vector<8x512xf32>, i32 -> vector<8x512xf32>
    %353 = vector.broadcast %97 : vector<1x512xf32> to vector<8x512xf32>
    %354 = arith.mulf %352, %353 : vector<8x512xf32>
    %355 = vector.broadcast %351 : vector<8x1xf32> to vector<8x512xf32>
    %356 = arith.mulf %354, %355 : vector<8x512xf32>
    %357 = arith.addf %350, %356 : vector<8x512xf32>
    %358 = vector.extract_strided_slice %256 {offsets = [0, 15], sizes = [8, 1], strides = [1, 1]} : vector<8x25xf32> to vector<8x1xf32>
    %c498_i32 = arith.constant 498 : i32
    %359 = tpu.dynamic_rotate %255 by %c498_i32 dim 1 : vector<8x512xf32>, i32 -> vector<8x512xf32>
    %360 = vector.broadcast %104 : vector<1x512xf32> to vector<8x512xf32>
    %361 = arith.mulf %359, %360 : vector<8x512xf32>
    %362 = vector.broadcast %358 : vector<8x1xf32> to vector<8x512xf32>
    %363 = arith.mulf %361, %362 : vector<8x512xf32>
    %364 = arith.addf %357, %363 : vector<8x512xf32>
    %365 = vector.extract_strided_slice %256 {offsets = [0, 16], sizes = [8, 1], strides = [1, 1]} : vector<8x25xf32> to vector<8x1xf32>
    %c497_i32_69 = arith.constant 497 : i32
    %366 = tpu.dynamic_rotate %255 by %c497_i32_69 dim 1 : vector<8x512xf32>, i32 -> vector<8x512xf32>
    %367 = vector.broadcast %111 : vector<1x512xf32> to vector<8x512xf32>
    %368 = arith.mulf %366, %367 : vector<8x512xf32>
    %369 = vector.broadcast %365 : vector<8x1xf32> to vector<8x512xf32>
    %370 = arith.mulf %368, %369 : vector<8x512xf32>
    %371 = arith.addf %364, %370 : vector<8x512xf32>
    %372 = vector.extract_strided_slice %256 {offsets = [0, 17], sizes = [8, 1], strides = [1, 1]} : vector<8x25xf32> to vector<8x1xf32>
    %c496_i32_70 = arith.constant 496 : i32
    %373 = tpu.dynamic_rotate %255 by %c496_i32_70 dim 1 : vector<8x512xf32>, i32 -> vector<8x512xf32>
    %374 = vector.broadcast %115 : vector<1x512xf32> to vector<8x512xf32>
    %375 = arith.mulf %373, %374 : vector<8x512xf32>
    %376 = vector.broadcast %372 : vector<8x1xf32> to vector<8x512xf32>
    %377 = arith.mulf %375, %376 : vector<8x512xf32>
    %378 = arith.addf %371, %377 : vector<8x512xf32>
    %379 = vector.extract_strided_slice %256 {offsets = [0, 18], sizes = [8, 1], strides = [1, 1]} : vector<8x25xf32> to vector<8x1xf32>
    %c495_i32_71 = arith.constant 495 : i32
    %380 = tpu.dynamic_rotate %255 by %c495_i32_71 dim 1 : vector<8x512xf32>, i32 -> vector<8x512xf32>
    %381 = vector.broadcast %122 : vector<1x512xf32> to vector<8x512xf32>
    %382 = arith.mulf %380, %381 : vector<8x512xf32>
    %383 = vector.broadcast %379 : vector<8x1xf32> to vector<8x512xf32>
    %384 = arith.mulf %382, %383 : vector<8x512xf32>
    %385 = arith.addf %378, %384 : vector<8x512xf32>
    %386 = vector.extract_strided_slice %256 {offsets = [0, 19], sizes = [8, 1], strides = [1, 1]} : vector<8x25xf32> to vector<8x1xf32>
    %c494_i32 = arith.constant 494 : i32
    %387 = tpu.dynamic_rotate %255 by %c494_i32 dim 1 : vector<8x512xf32>, i32 -> vector<8x512xf32>
    %388 = vector.broadcast %129 : vector<1x512xf32> to vector<8x512xf32>
    %389 = arith.mulf %387, %388 : vector<8x512xf32>
    %390 = vector.broadcast %386 : vector<8x1xf32> to vector<8x512xf32>
    %391 = arith.mulf %389, %390 : vector<8x512xf32>
    %392 = arith.addf %385, %391 : vector<8x512xf32>
    %393 = vector.extract_strided_slice %256 {offsets = [0, 20], sizes = [8, 1], strides = [1, 1]} : vector<8x25xf32> to vector<8x1xf32>
    %c482_i32 = arith.constant 482 : i32
    %394 = tpu.dynamic_rotate %255 by %c482_i32 dim 1 : vector<8x512xf32>, i32 -> vector<8x512xf32>
    %395 = vector.broadcast %136 : vector<1x512xf32> to vector<8x512xf32>
    %396 = arith.mulf %394, %395 : vector<8x512xf32>
    %397 = vector.broadcast %393 : vector<8x1xf32> to vector<8x512xf32>
    %398 = arith.mulf %396, %397 : vector<8x512xf32>
    %399 = arith.addf %392, %398 : vector<8x512xf32>
    %400 = vector.extract_strided_slice %256 {offsets = [0, 21], sizes = [8, 1], strides = [1, 1]} : vector<8x25xf32> to vector<8x1xf32>
    %c481_i32 = arith.constant 481 : i32
    %401 = tpu.dynamic_rotate %255 by %c481_i32 dim 1 : vector<8x512xf32>, i32 -> vector<8x512xf32>
    %402 = vector.broadcast %143 : vector<1x512xf32> to vector<8x512xf32>
    %403 = arith.mulf %401, %402 : vector<8x512xf32>
    %404 = vector.broadcast %400 : vector<8x1xf32> to vector<8x512xf32>
    %405 = arith.mulf %403, %404 : vector<8x512xf32>
    %406 = arith.addf %399, %405 : vector<8x512xf32>
    %407 = vector.extract_strided_slice %256 {offsets = [0, 22], sizes = [8, 1], strides = [1, 1]} : vector<8x25xf32> to vector<8x1xf32>
    %c480_i32 = arith.constant 480 : i32
    %408 = tpu.dynamic_rotate %255 by %c480_i32 dim 1 : vector<8x512xf32>, i32 -> vector<8x512xf32>
    %409 = vector.broadcast %147 : vector<1x512xf32> to vector<8x512xf32>
    %410 = arith.mulf %408, %409 : vector<8x512xf32>
    %411 = vector.broadcast %407 : vector<8x1xf32> to vector<8x512xf32>
    %412 = arith.mulf %410, %411 : vector<8x512xf32>
    %413 = arith.addf %406, %412 : vector<8x512xf32>
    %414 = vector.extract_strided_slice %256 {offsets = [0, 23], sizes = [8, 1], strides = [1, 1]} : vector<8x25xf32> to vector<8x1xf32>
    %c479_i32 = arith.constant 479 : i32
    %415 = tpu.dynamic_rotate %255 by %c479_i32 dim 1 : vector<8x512xf32>, i32 -> vector<8x512xf32>
    %416 = vector.broadcast %154 : vector<1x512xf32> to vector<8x512xf32>
    %417 = arith.mulf %415, %416 : vector<8x512xf32>
    %418 = vector.broadcast %414 : vector<8x1xf32> to vector<8x512xf32>
    %419 = arith.mulf %417, %418 : vector<8x512xf32>
    %420 = arith.addf %413, %419 : vector<8x512xf32>
    %421 = vector.extract_strided_slice %256 {offsets = [0, 24], sizes = [8, 1], strides = [1, 1]} : vector<8x25xf32> to vector<8x1xf32>
    %c478_i32 = arith.constant 478 : i32
    %422 = tpu.dynamic_rotate %255 by %c478_i32 dim 1 : vector<8x512xf32>, i32 -> vector<8x512xf32>
    %423 = vector.broadcast %161 : vector<1x512xf32> to vector<8x512xf32>
    %424 = arith.mulf %422, %423 : vector<8x512xf32>
    %425 = vector.broadcast %421 : vector<8x1xf32> to vector<8x512xf32>
    %426 = arith.mulf %424, %425 : vector<8x512xf32>
    %427 = arith.addf %420, %426 : vector<8x512xf32>
    %428 = tpu.concatenate %254, %427 in 0 : vector<8x512xf32>, vector<8x512xf32> -> vector<16x512xf32>
    %cst_72 = arith.constant dense<0.000000e+00> : vector<16xf32>
    %429 = vector.multi_reduction <add>, %428, %cst_72 [1] : vector<16x512xf32> to vector<16xf32>
    %430 = vector.shape_cast %429 : vector<16xf32> to vector<16x1xf32>
    %431 = arith.mulf %428, %428 : vector<16x512xf32>
    %cst_73 = arith.constant dense<0.000000e+00> : vector<16xf32>
    %432 = vector.multi_reduction <add>, %431, %cst_73 [1] : vector<16x512xf32> to vector<16xf32>
    %433 = vector.shape_cast %432 : vector<16xf32> to vector<16x1xf32>
    %cst_74 = arith.constant 0.001953125 : f32
    %434 = vector.broadcast %cst_74 : f32 to vector<16x1xf32>
    %435 = arith.mulf %430, %434 : vector<16x1xf32>
    %cst_75 = arith.constant 0.001953125 : f32
    %436 = vector.broadcast %cst_75 : f32 to vector<16x1xf32>
    %437 = arith.mulf %433, %436 : vector<16x1xf32>
    %438 = arith.mulf %435, %435 : vector<16x1xf32>
    %439 = arith.subf %437, %438 : vector<16x1xf32>
    %cst_76 = arith.constant 0.000000e+00 : f32
    %440 = vector.broadcast %cst_76 : f32 to vector<16x1xf32>
    %441 = arith.maximumf %439, %440 : vector<16x1xf32>
    %cst_77 = arith.constant 1.000000e-03 : f32
    %442 = vector.broadcast %cst_77 : f32 to vector<16x1xf32>
    %443 = arith.addf %441, %442 : vector<16x1xf32>
    %444 = math.rsqrt %443 : vector<16x1xf32>
    %445 = arith.mulf %7, %444 : vector<16x1xf32>
    %446 = arith.mulf %435, %445 : vector<16x1xf32>
    %447 = arith.subf %8, %446 : vector<16x1xf32>
    %448 = vector.broadcast %445 : vector<16x1xf32> to vector<16x512xf32>
    %449 = arith.mulf %428, %448 : vector<16x512xf32>
    %450 = vector.broadcast %447 : vector<16x1xf32> to vector<16x512xf32>
    %451 = arith.addf %449, %450 : vector<16x512xf32>
    %cst_78 = arith.constant 0.000000e+00 : f32
    %452 = vector.broadcast %cst_78 : f32 to vector<16x512xf32>
    %453 = arith.subf %452, %451 : vector<16x512xf32>
    %454 = math.exp %453 : vector<16x512xf32>
    %cst_79 = arith.constant 1.000000e+00 : f32
    %455 = vector.broadcast %cst_79 : f32 to vector<16x512xf32>
    %456 = arith.addf %455, %454 : vector<16x512xf32>
    %457 = tpu.reciprocal %456 {approx = true} : vector<16x512xf32> -> vector<16x512xf32>
    %458 = arith.mulf %451, %457 : vector<16x512xf32>
    %459 = vector.extract_strided_slice %458 {offsets = [0, 0], sizes = [16, 256], strides = [1, 1]} : vector<16x512xf32> to vector<16x256xf32>
    %cst_80 = arith.constant dense<0.000000e+00> : vector<16xf32>
    %460 = vector.multi_reduction <add>, %459, %cst_80 [1] : vector<16x256xf32> to vector<16xf32>
    %461 = vector.shape_cast %460 : vector<16xf32> to vector<16x1xf32>
    %462 = vector.extract_strided_slice %458 {offsets = [0, 256], sizes = [16, 256], strides = [1, 1]} : vector<16x512xf32> to vector<16x256xf32>
    %cst_81 = arith.constant dense<0.000000e+00> : vector<16xf32>
    %463 = vector.multi_reduction <add>, %462, %cst_81 [1] : vector<16x256xf32> to vector<16xf32>
    %464 = vector.shape_cast %463 : vector<16xf32> to vector<16x1xf32>
    %465 = tpu.concatenate %461, %464 in 1 : vector<16x1xf32>, vector<16x1xf32> -> vector<16x2xf32>
    %cst_82 = arith.constant 3.906250e-03 : f32
    %466 = vector.broadcast %cst_82 : f32 to vector<16x2xf32>
    %467 = arith.mulf %465, %466 : vector<16x2xf32>
    %cst_83 = arith.constant dense<0.000000e+00> : vector<8x2xf32>
    %468 = tpu.matmul %1, %467, %cst_83 {dimension_numbers = #tpu.dot_dimension_numbers<[1], [0], [0], [1], [0, 0, 1, 1], [], []>} : vector<8x16xf32>, vector<16x2xf32>, vector<8x2xf32> -> vector<8x2xf32>
    %cst_84 = arith.constant 0.000000e+00 : f32
    %469 = vector.broadcast %cst_84 : f32 to vector<8x2xf32>
    %470 = arith.subf %469, %468 : vector<8x2xf32>
    %471 = math.exp %470 : vector<8x2xf32>
    %cst_85 = arith.constant 1.000000e+00 : f32
    %472 = vector.broadcast %cst_85 : f32 to vector<8x2xf32>
    %473 = arith.addf %472, %471 : vector<8x2xf32>
    %cst_86 = arith.constant 1.000000e+00 : f32
    %474 = vector.broadcast %cst_86 : f32 to vector<8x2xf32>
    %475 = arith.divf %474, %473 : vector<8x2xf32>
    %476 = arith.mulf %468, %475 : vector<8x2xf32>
    %cst_87 = arith.constant dense<0.000000e+00> : vector<16x2xf32>
    %477 = tpu.matmul %2, %476, %cst_87 {dimension_numbers = #tpu.dot_dimension_numbers<[1], [0], [0], [1], [0, 0, 1, 1], [], []>} : vector<16x8xf32>, vector<8x2xf32>, vector<16x2xf32> -> vector<16x2xf32>
    %cst_88 = arith.constant 0.000000e+00 : f32
    %478 = vector.broadcast %cst_88 : f32 to vector<16x2xf32>
    %479 = arith.subf %478, %477 : vector<16x2xf32>
    %480 = math.exp %479 : vector<16x2xf32>
    %cst_89 = arith.constant 1.000000e+00 : f32
    %481 = vector.broadcast %cst_89 : f32 to vector<16x2xf32>
    %482 = arith.addf %481, %480 : vector<16x2xf32>
    %cst_90 = arith.constant 1.000000e+00 : f32
    %483 = vector.broadcast %cst_90 : f32 to vector<16x2xf32>
    %484 = arith.divf %483, %482 : vector<16x2xf32>
    %485 = vector.extract_strided_slice %458 {offsets = [0, 0], sizes = [16, 256], strides = [1, 1]} : vector<16x512xf32> to vector<16x256xf32>
    %486 = vector.extract_strided_slice %484 {offsets = [0, 0], sizes = [16, 1], strides = [1, 1]} : vector<16x2xf32> to vector<16x1xf32>
    %487 = vector.broadcast %486 : vector<16x1xf32> to vector<16x256xf32>
    %488 = arith.mulf %485, %487 : vector<16x256xf32>
    %489 = vector.extract_strided_slice %458 {offsets = [0, 256], sizes = [16, 256], strides = [1, 1]} : vector<16x512xf32> to vector<16x256xf32>
    %490 = vector.extract_strided_slice %484 {offsets = [0, 1], sizes = [16, 1], strides = [1, 1]} : vector<16x2xf32> to vector<16x1xf32>
    %491 = vector.broadcast %490 : vector<16x1xf32> to vector<16x256xf32>
    %492 = arith.mulf %489, %491 : vector<16x256xf32>
    %493 = tpu.concatenate %488, %492 in 1 : vector<16x256xf32>, vector<16x256xf32> -> vector<16x512xf32>
    %cst_91 = arith.constant dense<0.000000e+00> : vector<8x512xf32>
    %494 = tpu.matmul %3, %493, %cst_91 {dimension_numbers = #tpu.dot_dimension_numbers<[1], [0], [0], [1], [0, 0, 1, 1], [], []>} : vector<8x16xf32>, vector<16x512xf32>, vector<8x512xf32> -> vector<8x512xf32>
    %cst_92 = arith.constant dense<0.000000e+00> : vector<8xf32>
    %495 = vector.multi_reduction <add>, %494, %cst_92 [1] : vector<8x512xf32> to vector<8xf32>
    %496 = vector.shape_cast %495 : vector<8xf32> to vector<8x1xf32>
    %497 = arith.mulf %494, %494 : vector<8x512xf32>
    %cst_93 = arith.constant dense<0.000000e+00> : vector<8xf32>
    %498 = vector.multi_reduction <add>, %497, %cst_93 [1] : vector<8x512xf32> to vector<8xf32>
    %499 = vector.shape_cast %498 : vector<8xf32> to vector<8x1xf32>
    %cst_94 = arith.constant 0.001953125 : f32
    %500 = vector.broadcast %cst_94 : f32 to vector<8x1xf32>
    %501 = arith.mulf %496, %500 : vector<8x1xf32>
    %cst_95 = arith.constant 0.001953125 : f32
    %502 = vector.broadcast %cst_95 : f32 to vector<8x1xf32>
    %503 = arith.mulf %499, %502 : vector<8x1xf32>
    %504 = arith.mulf %501, %501 : vector<8x1xf32>
    %505 = arith.subf %503, %504 : vector<8x1xf32>
    %cst_96 = arith.constant 0.000000e+00 : f32
    %506 = vector.broadcast %cst_96 : f32 to vector<8x1xf32>
    %507 = arith.maximumf %505, %506 : vector<8x1xf32>
    %cst_97 = arith.constant 1.000000e-03 : f32
    %508 = vector.broadcast %cst_97 : f32 to vector<8x1xf32>
    %509 = arith.addf %507, %508 : vector<8x1xf32>
    %510 = math.rsqrt %509 : vector<8x1xf32>
    %511 = arith.mulf %9, %510 : vector<8x1xf32>
    %512 = arith.mulf %501, %511 : vector<8x1xf32>
    %513 = arith.subf %10, %512 : vector<8x1xf32>
    %514 = vector.broadcast %511 : vector<8x1xf32> to vector<8x512xf32>
    %515 = arith.mulf %494, %514 : vector<8x512xf32>
    %516 = vector.broadcast %513 : vector<8x1xf32> to vector<8x512xf32>
    %517 = arith.addf %515, %516 : vector<8x512xf32>
    %c0_98 = arith.constant 0 : index
    %c0_99 = arith.constant 0 : index
    %518 = vector.load %arg0[%c0_98, %c0_99] : memref<8x512xf32, #tpu.memory_space<vmem>>, vector<8x512xf32>
    %519 = arith.addf %517, %518 : vector<8x512xf32>
    %c0_100 = arith.constant 0 : index
    %c0_101 = arith.constant 0 : index
    %520 = vector.load %arg4[%c0_100, %c0_101] : memref<8x512xf32, #tpu.memory_space<vmem>>, vector<8x512xf32>
    tpu.vector_store %arg4[%c0_100, %c0_101], %519 {strides = array<i32>} : memref<8x512xf32, #tpu.memory_space<vmem>>, vector<8x512xf32>,
    return
  }
}

</mosaic_0001>

<bundles_post_ra>
// kernel: mixnet_block.1
= control target key start
LH: loop header
LB: loop body
LE: loop exit
PB: predicated region body
PF: predicated region fallthrough
CT: control target
= control target key end

     0   :  { %v4865_v2 = vmov 0.0   ;;  %vm4889_vm0 = vcmask 64512   ;;  %v4854_v6 = vmov 4   ;;  %v2454_v9 = vmov 12   ;;  %s2474_s8 = smov 1   ;;  %s2479_s9 = smov 17   ;;  %s4849_s0 = inlined_call_operand.vmem [shape: f32[8,512], index: 0, kind: input, shape index: {}]   ;;  %s4850_s1 = inlined_call_operand.vmem [shape: f32[48,16], index: 1, kind: input, shape index: {}]   ;;  %s4851_s2 = inlined_call_operand.vmem [shape: f32[16,25], index: 2, kind: input, shape index: {}]   ;;  %s4852_s3 = inlined_call_operand.vmem [shape: f32[16,6], index: 3, kind: input, shape index: {}]   ;;  %s4853_s4 = inlined_call_operand.vmem [shape: f32[8,512], index: 4, kind: output, shape index: {}]  }
   0x1   :  { %v333_v0 = vld [vmem:[%s4849_s0 + $0x8] sm:$0xff]  ;;  %v332_v1 = vld [vmem:[%s4849_s0] sm:$0xff]  ;;  %407 = vmatprep.mubr.f32.mxu0 %v4865_v2  ;;  %484 = vmatprep.mubr.f32.mxu1 %v4865_v2  ;;  %v335_v4 = vld [vmem:[%s4849_s0 + $0x18] sm:$0xff]  ;;  %v2455_v10 = vmov 7   ;;  %v4855_v11 = vmov 1   ;;  %v2457_v12 = vmov 9  }
   0x2   :  { %v17_v3 = vld [vmem:[%s4850_s1] sm:$0xff]  ;;  %343 = vmatprep.subr.mxu0 %v333_v0  ;;  %v334_v5 = vld [vmem:[%s4849_s0 + $0x10] sm:$0xff]  ;;  %2324 = vset.pattern.permute.xlu0 %v4854_v6  ;;  %v2550_v7 = vld [vmem:[%s4851_s2 + $0x8] sm:$0xff]  ;;  %v2458_v13 = vmov 2   ;;  %v2459_v14 = vmov 10   ;;  %v2460_v16 = vmov 11  }
   0x3   :  { %344 = vmatpush1.msra.mxu0 %v332_v1  ;;  %420 = vmatprep.subr.mxu1 %v335_v4  ;;  %v18_v8 = vld [vmem:[%s4850_s1 + $0x8] sm:$0xff]  ;;  %v2573_v15 = vld [vmem:[%s4851_s2] sm:$0xff]  ;;  %v4858_v17 = vmov 0   ;;  %v2462_v18 = vmov 13   ;;  %v2463_v19 = vmov 14   ;;  %v2464_v20 = vmov 18  }
   0x4   :  { %2231 = vmatmul.mubr.msk.f32.vlgmr.msra.gmra.mrb[0].mxu0 %vm4889_vm0, %v17_v3  ;;  %421 = vmatpush1.msra.mxu1 %v334_v5  ;;  %v2465_v21 = vmov 15   ;;  %v2466_v22 = vmov 16   ;;  %v2467_v23 = vmov 17   ;;  %v2468_v24 = vmov 19   ;;  %s2480_s10 = smov 16   ;;  %s2481_s11 = smov 15  }
   0x5   :  { %2233 = vmatmul.mubr.msk.f32.vlgmr.msra.gmra.mrb[0].mxu1 %vm4889_vm0, %v17_v3  ;;  %413 = vmatprep.mubr.f32.mxu0 %v4865_v2  ;;  %v2469_v25 = vmov 20   ;;  %v4856_v54 = vmov 5   ;;  %v2471_v55 = vmov 21   ;;  %v2472_v56 = vmov 6   ;;  %s2482_s12 = smov 127   ;;  %s2483_s13 = smov 113  }
   0x6   :  { %490 = vmatprep.mubr.f32.mxu1 %v4865_v2  ;;  %1021 = vperm.xlu0 %2324, %v2550_v7   ;;  %v2473_v57 = vmov 22   ;;  %s2484_s14 = smov 112   ;;  %s2485_s15 = smov 111  }
   0x7   :  { %2321 = vset.pattern.permute.xlu1 %v2454_v9  ;;  %s2486_s16 = smov 34   ;;  %s2487_s17 = smov 33  }
   0x8   :  { %2232 = vmatmul.mubr.msk.f32.gmra.mrb[2].mxu0 %vm4889_vm0, %v18_v8  ;;  %880 = vperm.xlu1 %2321, %v2550_v7   ;;  %s2488_s18 = smov 32   ;;  %s2489_s19 = smov 31  }
   0x9   :  { %2234 = vmatmul.mubr.msk.f32.gmra.mrb[2].mxu1 %vm4889_vm0, %v18_v8  ;;  %s2490_s20 = smov 30   ;;  %s2491_s21 = smov 18  }
   0xa   :  { %2325 = vset.pattern.permute.xlu0 %v2455_v10  ;;  %s2492_s22 = smov 14   ;;  %s2493_s23 = smov 2  }
   0xb   :  { %1106 = vperm.xlu0 %2325, %v2550_v7   ;;  %s2494_s24 = smov 126   ;;  %s2495_s25 = smov 114  }
   0xc   :  { %2322 = vset.pattern.permute.xlu1 %v4855_v11  ;;  %s2496_s26 = smov 110   ;;  %s2497_s27 = smov 98  }
   0xd   :  { %934 = vperm.xlu1 %2322, %v2550_v7   ;;  %s2498_s28 = smov 97   ;;  %s2499_s29 = smov 96  }
   0xe   :  { %s2500_s30 = smov 95   ;;  %s2501_s2 = smov 94  }
   0xf   :  { %2326 = vset.pattern.permute.xlu0 %v2457_v12 }
  0x10   :  { %1163 = vperm.xlu0 %2326, %v2550_v7  }
  0x11   :  { %2323 = vset.pattern.permute.xlu1 %v2458_v13 }
  0x12   :  { %963 = vperm.xlu1 %2323, %v2550_v7  }
  0x14   :  { %2327 = vset.pattern.permute.xlu0 %v2459_v14 }
  0x15   :  { %1192 = vperm.xlu0 %2327, %v2550_v7  }
  0x16   :  { %2333 = vset.pattern.permute.xlu1 %v4854_v6 }
  0x17   :  { %639 = vperm.xlu1 %2333, %v2573_v15  }
  0x19   :  { %2328 = vset.pattern.permute.xlu0 %v2460_v16 }
  0x1a   :  { %1220 = vperm.xlu0 %2328, %v2550_v7  }
  0x1b   :  { %2334 = vset.pattern.permute.xlu1 %v4858_v17 }
  0x1c   :  { %664 = vperm.xlu1 %2334, %v2573_v15  }
  0x1e   :  { %2329 = vset.pattern.permute.xlu0 %v2462_v18 }
  0x1f   :  { %1248 = vperm.xlu0 %2329, %v2550_v7  }
  0x20   :  { %2336 = vset.pattern.permute.xlu1 %v4855_v11 }
  0x21   :  { %693 = vperm.xlu1 %2336, %v2573_v15  }
  0x23   :  { %2330 = vset.pattern.permute.xlu0 %v2463_v19 }
  0x24   :  { %1277 = vperm.xlu0 %2330, %v2550_v7  }
  0x25   :  { %2337 = vset.pattern.permute.xlu1 %v2464_v20 }
  0x26   :  { %1390 = vperm.xlu1 %2337, %v2550_v7  }
  0x28   :  { %2331 = vset.pattern.permute.xlu0 %v2465_v21 }
  0x29   :  { %1306 = vperm.xlu0 %2331, %v2550_v7  }
  0x2a   :  { %2338 = vset.pattern.permute.xlu1 %v2458_v13 }
  0x2b   :  { %722 = vperm.xlu1 %2338, %v2573_v15  }
  0x2d   :  { %2332 = vset.pattern.permute.xlu0 %v2466_v22 }
  0x2e   :  { %1334 = vperm.xlu0 %2332, %v2550_v7  }
  0x2f   :  { %2346 = vset.pattern.permute.xlu1 %v4858_v17 }
  0x32   :  { %2335 = vset.pattern.permute.xlu0 %v2467_v23 }
  0x33   :  { %1362 = vperm.xlu0 %2335, %v2550_v7  }
  0x37   :  { %2339 = vset.pattern.permute.xlu0 %v2468_v24 }
  0x38   :  { %1419 = vperm.xlu0 %2339, %v2550_v7  }
  0x3c   :  { %2340 = vset.pattern.permute.xlu0 %v2469_v25 }
  0x85   :  { %v2643_v58 = vpop.permute.xlu0 %1021 }
  0x86   :  { %4993 = vst [vmem:[#allocation2_spill] sm:$0xff] %v2643_v58 }
  0x87   :  { %v2649_v61 = vpop.permute.xlu1 %880 }
  0x8a   :  { %v2645_v59 = vpop.permute.xlu0 %1106 }
  0x8b   :  { %4994 = vst [vmem:[#allocation3_spill] sm:$0xff] %v2645_v59 }
  0x8c   :  { %v2653_v63 = vpop.permute.xlu1 %934 }
  0x8d   :  { %4997 = vst [vmem:[#allocation6_spill] sm:$0xff] %v2653_v63 }
  0x8f   :  { %v2647_v60 = vpop.permute.xlu0 %1163 }
  0x90   :  { %4995 = vst [vmem:[#allocation4_spill] sm:$0xff] %v2647_v60 }
  0x91   :  { %v2657_v1 = vpop.permute.xlu1 %963 }
  0x92   :  { %4999 = vst [vmem:[#allocation8_spill] sm:$0xff] %v2657_v1 }
  0x94   :  { %v2651_v62 = vpop.permute.xlu0 %1192 }
  0x95   :  { %4996 = vst [vmem:[#allocation5_spill] sm:$0xff] %v2651_v62 }
  0x96   :  { %v2661_v4 = vpop.permute.xlu1 %639 }
  0x99   :  { %v2655_v0 = vpop.permute.xlu0 %1220 }
  0x9a   :  { %4998 = vst [vmem:[#allocation7_spill] sm:$0xff] %v2655_v0 }
  0x9b   :  { %v2665_v8 = vpop.permute.xlu1 %664 }
  0x9e   :  { %v2659_v3 = vpop.permute.xlu0 %1248 }
  0x9f   :  { %5000 = vst [vmem:[#allocation9_spill] sm:$0xff] %v2659_v3 }
  0xa0   :  { %v2669_v12 = vpop.permute.xlu1 %693 }
  0xa3   :  { %v2663_v5 = vpop.permute.xlu0 %1277 }
  0xa4   :  { %5001 = vst [vmem:[#allocation10_spill] sm:$0xff] %v2663_v5 }
  0xa5   :  { %v2673_v16 = vpop.permute.xlu1 %1390 }
  0xa6   :  { %5004 = vst [vmem:[#allocation13_spill] sm:$0xff] %v2673_v16 }
  0xa8   :  { %v2667_v9 = vpop.permute.xlu0 %1306 }
  0xa9   :  { %5002 = vst [vmem:[#allocation11_spill] sm:$0xff] %v2667_v9 }
  0xaa   :  { %v2677_v19 = vpop.permute.xlu1 %722 }
  0xad   :  { %v2671_v14 = vpop.permute.xlu0 %1334 }
  0xae   :  { %5003 = vst [vmem:[#allocation12_spill] sm:$0xff] %v2671_v14 }
  0xb2   :  { %v2675_v18 = vpop.permute.xlu0 %1362 }
  0xb3   :  { %5005 = vst [vmem:[#allocation14_spill] sm:$0xff] %v2675_v18 }
  0xb7   :  { %v2679_v20 = vpop.permute.xlu0 %1419 }
  0xb8   :  { %5006 = vst [vmem:[#allocation15_spill] sm:$0xff] %v2679_v20 }
  0xd7   :  { %v2593_v26 = vpop.f32.mrb[0].mxu0 }
  0xd8   :  { %v507_v27 = vmul.f32 %v2593_v26, %v2593_v26  ;;  %v2597_v28 = vpop.f32.mrb[1].mxu0  ;;  %v2599_v29 = vpop.f32.mrb[0].mxu1 }
  0xd9   :  { %v497_v30 = vadd.f32 %v2597_v28, %v2593_v26  ;;  %v508_v31 = vmul.f32 %v2597_v28, %v2597_v28  ;;  %v2605_v32 = vpop.f32.mrb[1].mxu1  ;;  %v509_v33 = vmul.f32 %v2599_v29, %v2599_v29 }
  0xda   :  { %v510_v45 = vmul.f32 %v2605_v32, %v2605_v32 }
  0xdb   :  { %v2609_v34 = vpop.f32.mrb[2].mxu0  ;;  %v498_v35 = vadd.f32 %v497_v30, %v2599_v29  ;;  %v515_v36 = vadd.f32 %v508_v31, %v507_v27 }
  0xdc   :  { %v511_v37 = vmul.f32 %v2609_v34, %v2609_v34  ;;  %v2614_v38 = vpop.f32.mrb[3].mxu0  ;;  %v2616_v39 = vpop.f32.mrb[2].mxu1 }
  0xdd   :  { %v502_v40 = vadd.f32 %v2614_v38, %v2609_v34  ;;  %v512_v41 = vmul.f32 %v2614_v38, %v2614_v38  ;;  %v499_v42 = vadd.f32 %v498_v35, %v2605_v32  ;;  %v513_v43 = vmul.f32 %v2616_v39, %v2616_v39  ;;  %v2625_v44 = vpop.f32.mrb[3].mxu1 }
  0xde   :  { %v516_v46 = vadd.f32 %v515_v36, %v509_v33  ;;  %v514_v48 = vmul.f32 %v2625_v44, %v2625_v44 }
  0xdf   :  { %500 = vadd.xlane.f32.xlu1 %v499_v42  ;;  %v503_v47 = vadd.f32 %v502_v40, %v2616_v39  ;;  %v520_v49 = vadd.f32 %v512_v41, %v511_v37 }
  0xe0   :  { %v517_v50 = vadd.f32 %v516_v46, %v510_v45  ;;  %v25_v45 = vld [vmem:[%s4852_s3] sm:$0xff] }
  0xe1   :  { %v504_v51 = vadd.f32 %v503_v47, %v2625_v44  ;;  %v521_v52 = vadd.f32 %v520_v49, %v513_v43 }
  0xe3   :  { %518 = vadd.xlane.f32.xlu1 %v517_v50  ;;  %505 = vadd.xlane.f32.xlu0 %v504_v51  ;;  %v522_v53 = vadd.f32 %v521_v52, %v514_v48  ;;  %v26_v48 = vld [vmem:[%s4852_s3 + $0x8] sm:$0xff] }
  0xe7   :  { %523 = vadd.xlane.f32.xlu0 %v522_v53  ;;  %v2475_v53 = vmov 23  }
  0xfd   :  { %1448 = vperm.xlu0 %2340, %v2550_v7  }
 0x101   :  { %2341 = vset.pattern.permute.xlu0 %v4856_v54 }
 0x102   :  { %1050 = vperm.xlu0 %2341, %v2550_v7  }
 0x106   :  { %780 = vperm.xlu0 %2341, %v2573_v15  }
 0x10a   :  { %2342 = vset.pattern.permute.xlu0 %v2471_v55  ;;  %v2476_v55 = vmov 8  }
 0x10b   :  { %1477 = vperm.xlu0 %2342, %v2550_v7  }
 0x10f   :  { %2343 = vset.pattern.permute.xlu0 %v2472_v56 }
 0x110   :  { %1078 = vperm.xlu0 %2343, %v2550_v7  }
 0x114   :  { %809 = vperm.xlu0 %2343, %v2573_v15  }
 0x118   :  { %2344 = vset.pattern.permute.xlu0 %v2473_v57 }
 0x119   :  { %1506 = vperm.xlu0 %2344, %v2550_v7  }
 0x11d   :  { %2345 = vset.pattern.permute.xlu0 %v4858_v17 }
 0x11e   :  { %905 = vperm.xlu0 %2345, %v2550_v7  }
 0x16c   :  { %v501_v21 = vpop.xlane.xlu1 %500 }
 0x16d   :  { %v525_v22 = vmul.f32 0.001953125, %v501_v21 }
 0x16f   :  { %v529_v25 = vmul.f32 %v525_v22, %v525_v22 }
 0x170   :  { %v519_v23 = vpop.xlane.xlu1 %518  ;;  %v506_v24 = vpop.xlane.xlu0 %505 }
 0x171   :  { %v527_v27 = vmul.f32 0.001953125, %v519_v23  ;;  %v526_v30 = vmul.f32 0.001953125, %v506_v24 }
 0x173   :  { %v531_v31 = vsub.f32 %v527_v27, %v529_v25  ;;  %v530_v33 = vmul.f32 %v526_v30, %v526_v30 }
 0x174   :  { %v524_v35 = vpop.xlane.xlu0 %523 }
 0x175   :  { %v533_v36 = vmax.f32 %v531_v31, 0.0  ;;  %v528_v37 = vmul.f32 0.001953125, %v524_v35 }
 0x177   :  { %v535_v40 = vadd.f32 0.001, %v533_v36  ;;  %v532_v41 = vsub.f32 %v528_v37, %v530_v33  ;;  %v2477_v33 = vmov 24   ;;  %v4857_v37 = vmov 3  }
 0x179   :  { %2360 = vrsqrt.f32 %v535_v40  ;;  %v534_v42 = vmax.f32 %v532_v41, 0.0 }
 0x17b   :  { %v536_v43 = vadd.f32 0.001, %v534_v42 }
 0x17c   :  { %v2695_v56 = vpop.permute.xlu0 %1448 }
 0x17d   :  { %2362 = vrsqrt.f32 %v536_v43  ;;  %5007 = vst [vmem:[#allocation16_spill] sm:$0xff] %v2695_v56 }
 0x183   :  { %v2361_v46 = vpop.eup %2360 }
 0x184   :  { %v539_v47 = vmul.f32 %v2361_v46, %v25_v45 }
 0x186   :  { %555 = vperm.xlu0 %2345, %v539_v47   ;;  %v541_v49 = vmul.f32 %v539_v47, %v525_v22 }
 0x187   :  { %v2363_v50 = vpop.eup %2362 }
 0x188   :  { %545 = vrot.lane.b32.xlu1 %v541_v49, %s2474_s8  ;;  %v540_v51 = vmul.f32 %v2363_v50, %v26_v48 }
 0x18a   :  { %v542_v52 = vmul.f32 %v540_v51, %v526_v30  ;;  %2347 = vset.pattern.permute.xlu0 %v2455_v10  ;;  %v2697_v10 = vpop.permute.xlu0 %1050 }
 0x18b   :  { %5008 = vst [vmem:[#allocation17_spill] sm:$0xff] %v2697_v10 }
 0x18c   :  { %560 = vperm.xlu1 %2346, %v540_v51   ;;  %547 = vrot.lane.b32.xlu0 %v542_v52, %s2474_s8 }
 0x18e   :  { %v2699_v57 = vpop.permute.xlu0 %780 }
 0x190   :  { %2352 = vset.pattern.permute.xlu1 %v4855_v11  ;;  %838 = vperm.xlu0 %2347, %v2573_v15  }
 0x192   :  { %v2701_v21 = vpop.permute.xlu0 %1477 }
 0x193   :  { %5009 = vst [vmem:[#allocation18_spill] sm:$0xff] %v2701_v21 }
 0x194   :  { %2348 = vset.pattern.permute.xlu0 %v2475_v53 }
 0x195   :  { %1535 = vperm.xlu0 %2348, %v2550_v7  }
 0x196   :  { %v2703_v22 = vpop.permute.xlu0 %1078 }
 0x197   :  { %5010 = vst [vmem:[#allocation19_spill] sm:$0xff] %v2703_v22 }
 0x199   :  { %2349 = vset.pattern.permute.xlu0 %v2476_v55 }
 0x19a   :  { %1134 = vperm.xlu0 %2349, %v2550_v7   ;;  %v2705_v23 = vpop.permute.xlu0 %809 }
 0x19e   :  { %867 = vperm.xlu0 %2349, %v2573_v15   ;;  %v2707_v24 = vpop.permute.xlu0 %1506 }
 0x19f   :  { %5011 = vst [vmem:[#allocation20_spill] sm:$0xff] %v2707_v24 }
 0x1a2   :  { %v2709_v30 = vpop.permute.xlu0 %905  ;;  %2350 = vset.pattern.permute.xlu0 %v2477_v33 }
 0x1a3   :  { %1564 = vperm.xlu0 %2350, %v2550_v7  }
 0x1a7   :  { %2351 = vset.pattern.permute.xlu0 %v4857_v37 }
 0x1a8   :  { %992 = vperm.xlu0 %2351, %v2550_v7  }
 0x1ac   :  { %751 = vperm.xlu0 %2351, %v2573_v15  }
 0x1fa   :  { %v546_v25 = vpop.permute.xlu1 %545 }
 0x1fb   :  { %v551_v27 = vsub.f32 %v25_v45, %v546_v25 }
 0x1fd   :  { %573 = vperm.xlu1 %2352, %v551_v27  }
 0x205   :  { %v556_v31 = vpop.permute.xlu0 %555 }
 0x206   :  { %v563_v41 = vmul.f32 %v556_v31, %v2593_v26  ;;  %v564_v42 = vmul.f32 %v556_v31, %v2597_v28  ;;  %v565_v43 = vmul.f32 %v556_v31, %v2599_v29  ;;  %v566_v45 = vmul.f32 %v556_v31, %v2605_v32 }
 0x209   :  { %v548_v35 = vpop.permute.xlu0 %547 }
 0x20a   :  { %v552_v36 = vsub.f32 %v26_v48, %v548_v35 }
 0x20b   :  { %v561_v40 = vpop.permute.xlu1 %560 }
 0x20c   :  { %578 = vperm.xlu1 %2352, %v552_v36  }
 0x210   :  { %2353 = vset.pattern.permute.xlu1 %v2458_v13 }
 0x27c   :  { %v574_v46 = vpop.permute.xlu1 %573 }
 0x27d   :  { %v581_v47 = vadd.f32 %v574_v46, %v563_v41  ;;  %v582_v48 = vadd.f32 %v574_v46, %v564_v42  ;;  %v583_v49 = vadd.f32 %v574_v46, %v565_v43  ;;  %v584_v50 = vadd.f32 %v574_v46, %v566_v45 }
 0x27e   :  { %v567_v41 = vmul.f32 %v561_v40, %v2609_v34  ;;  %v570_v46 = vmul.f32 %v561_v40, %v2625_v44  ;;  %v569_v34 = vmul.f32 %v561_v40, %v2616_v39 }
 0x27f   :  { %v589_v7 = vsub.f32 0.0, %v581_v47  ;;  %v590_v51 = vsub.f32 0.0, %v582_v48  ;;  %v591_v52 = vsub.f32 0.0, %v583_v49  ;;  %v592_v15 = vsub.f32 0.0, %v584_v50 }
 0x281   :  { %v597_v53 = vmul.f32 1.442695, %v589_v7  ;;  %v599_v13 = vmul.f32 1.442695, %v590_v51  ;;  %v601_v55 = vmul.f32 1.442695, %v591_v52 }
 0x282   :  { %v603_v25 = vmul.f32 1.442695, %v592_v15 }
 0x283   :  { %2364 = vpow2.f32 %v597_v53 }
 0x284   :  { %2366 = vpow2.f32 %v599_v13 }
 0x285   :  { %2368 = vpow2.f32 %v601_v55 }
 0x286   :  { %2370 = vpow2.f32 %v603_v25 }
 0x28b   :  { %v579_v36 = vpop.permute.xlu1 %578 }
 0x28c   :  { %v2721_v42 = vadd.f32 %v579_v36, %v567_v41  ;;  %v2728_v53 = vadd.f32 %v579_v36, %v570_v46 }
 0x28d   :  { %v2365_v26 = vpop.eup %2364 }
 0x28e   :  { %v2367_v28 = vpop.eup %2366  ;;  %v613_v29 = vadd.f32 1.0, %v2365_v26  ;;  %v593_v13 = vsub.f32 0.0, %v2721_v42  ;;  %v596_v55 = vsub.f32 0.0, %v2728_v53  ;;  %v568_v26 = vmul.f32 %v561_v40, %v2614_v38 }
 0x28f   :  { %v2369_v32 = vpop.eup %2368  ;;  %v614_v27 = vadd.f32 1.0, %v2367_v28 }
 0x290   :  { %v2371_v31 = vpop.eup %2370  ;;  %v615_v33 = vadd.f32 1.0, %v2369_v32  ;;  %2372 = vrcp.f32 %v613_v29  ;;  %v605_v25 = vmul.f32 1.442695, %v593_v13  ;;  %v586_v28 = vadd.f32 %v579_v36, %v568_v26 }
 0x291   :  { %v616_v35 = vadd.f32 1.0, %v2371_v31  ;;  %2374 = vrcp.f32 %v614_v27  ;;  %v611_v39 = vmul.f32 1.442695, %v596_v55 }
 0x292   :  { %2376 = vrcp.f32 %v615_v33 }
 0x293   :  { %2378 = vrcp.f32 %v616_v35 }
 0x294   :  { %2380 = vpow2.f32 %v605_v25 }
 0x295   :  { %2382 = vpow2.f32 %v611_v39  ;;  %v27_v39 = vlaneseq }
 0x29a   :  { %v2373_v43 = vpop.eup %2372 }
 0x29b   :  { %v2375_v45 = vpop.eup %2374  ;;  %v2724_v7 = vmul.f32 %v2373_v43, %v581_v47 }
 0x29c   :  { %v2377_v51 = vpop.eup %2376  ;;  %v2726_v52 = vmul.f32 %v2375_v45, %v582_v48  ;;  %v587_v48 = vadd.f32 %v579_v36, %v569_v34 }
 0x29d   :  { %v2379_v15 = vpop.eup %2378  ;;  %646 = vrot.lane.b32.xlu0 %v2724_v7, %s2479_s9  ;;  %v2738_v47 = vmul.f32 %v2377_v51, %v583_v49  ;;  %v594_v49 = vsub.f32 0.0, %v586_v28 }
 0x29e   :  { %648 = vrot.lane.b32.xlu1 %v2726_v52, %s2479_s9  ;;  %v2736_v44 = vmul.f32 %v2379_v15, %v584_v50  ;;  %v595_v29 = vsub.f32 0.0, %v587_v48  ;;  %v2381_v40 = vpop.eup %2380 }
 0x29f   :  { %v607_v38 = vmul.f32 1.442695, %v594_v49  ;;  %v617_v32 = vadd.f32 1.0, %v2381_v40  ;;  %v2383_v27 = vpop.eup %2382  ;;  %v2878_v49 = vand.u32 127, %v27_v39 }
 0x2a0   :  { %5012 = vst [vmem:[#allocation21_spill] sm:$0xff] %v2736_v44  ;;  %v609_v50 = vmul.f32 1.442695, %v595_v29  ;;  %v620_v31 = vadd.f32 1.0, %v2383_v27 }
 0x2a1   :  { %652 = vrot.lane.b32.xlu0 %v2736_v44, %s2479_s9  ;;  %v29_v40 = vadd.s32 128, %v2878_v49  ;;  %vm4951_vm4 = vcmp.lt.s32.totalorder %v2878_v49, 17  ;;  %vm4956_vm6 = vcmp.lt.s32.totalorder %v2878_v49, 16  ;;  %vm4958_vm8 = vcmp.lt.s32.totalorder %v2878_v49, 15 }
 0x2a2   :  { %650 = vrot.lane.b32.xlu1 %v2738_v47, %s2479_s9  ;;  %2384 = vpow2.f32 %v609_v50  ;;  %vm4962_vm9 = vcmp.lt.s32.totalorder %v2878_v49, 1  ;;  %v30_v60 = vadd.s32 256, %v2878_v49  ;;  %vm4893_vm14 = vcmp.lt.s32.totalorder %v2878_v49, 34 }
 0x2a3   :  { %2386 = vpow2.f32 %v607_v38 }
 0x2a4   :  { %2388 = vrcp.f32 %v617_v32 }
 0x2a5   :  { %677 = vrot.lane.b32.xlu0 %v2726_v52, %s2480_s10  ;;  %2390 = vrcp.f32 %v620_v31  ;;  %v33_v31 = vand.u32 255, %v29_v40 }
 0x2a6   :  { %675 = vrot.lane.b32.xlu1 %v2724_v7, %s2480_s10 }
 0x2a9   :  { %706 = vrot.lane.b32.xlu0 %v2726_v52, %s2481_s11 }
 0x2aa   :  { %681 = vrot.lane.b32.xlu1 %v2736_v44, %s2480_s10 }
 0x2ac   :  { %v2385_v33 = vpop.eup %2384 }
 0x2ad   :  { %735 = vrot.lane.b32.xlu0 %v2726_v52, %s2474_s8  ;;  %v619_v35 = vadd.f32 1.0, %v2385_v33  ;;  %v2387_v36 = vpop.eup %2386 }
 0x2ae   :  { %679 = vrot.lane.b32.xlu1 %v2738_v47, %s2480_s10  ;;  %v618_v41 = vadd.f32 1.0, %v2387_v36  ;;  %v2389_v43 = vpop.eup %2388  ;;  %v2905_v36 = vand.u32 15, %v33_v31 }
 0x2af   :  { %2392 = vrcp.f32 %v619_v35  ;;  %v2779_v45 = vmul.f32 %v2389_v43, %v2721_v42  ;;  %v2391_v46 = vpop.eup %2390 }
 0x2b0   :  { %2394 = vrcp.f32 %v618_v41  ;;  %v2786_v51 = vmul.f32 %v2391_v46, %v2728_v53  ;;  %v2822_v53 = vpop.permute.xlu0 %838  ;;  %v2907_v41 = vshra.s32 %v33_v31, 4  ;;  %vm4935_vm1 = vcmp.ge.s32.totalorder %v2905_v36, 1 }
 0x2b1   :  { %764 = vrot.lane.b32.xlu0 %v2726_v52, %s2482_s12  ;;  %vm4897_vm5 = vcmp.lt.s32.totalorder %v2905_v36, 15 }
 0x2b2   :  { %704 = vrot.lane.b32.xlu1 %v2724_v7, %s2481_s11  ;;  %vm4892_vm2 = vcmp.ge.s32.totalorder %v2907_v41, 1 }
 0x2b3   :  { %vm137_vm3 = vmand %vm4935_vm1, %vm4892_vm2  ;;  %v2957_v11 = vsel %vm4892_vm2, 1.0, %v4865_v2 }
 0x2b4   :  { %v2939_v31 = vsel %vm137_vm3, 1.0, %v4865_v2  ;;  %vm157_vm7 = vmand %vm4897_vm5, %vm4892_vm2  ;;  %5017 = vst [vmem:[#allocation26_spill] sm:$0xff] %v2957_v11  ;;  %vm4965_vm3 = vcmp.lt.s32.totalorder %v2878_v49, 127 }
 0x2b5   :  { %793 = vrot.lane.b32.xlu0 %v2726_v52, %s2483_s13  ;;  %5016 = vst [vmem:[#allocation25_spill] sm:$0xff] %v2939_v31 }
 0x2b6   :  { %710 = vrot.lane.b32.xlu1 %v2736_v44, %s2481_s11 }
 0x2b9   :  { %822 = vrot.lane.b32.xlu0 %v2726_v52, %s2484_s14  ;;  %v2393_v15 = vpop.eup %2392 }
 0x2ba   :  { %708 = vrot.lane.b32.xlu1 %v2738_v47, %s2481_s11  ;;  %v2792_v42 = vmul.f32 %v2393_v15, %v587_v48  ;;  %v2395_v13 = vpop.eup %2394  ;;  %v2830_v48 = vpop.permute.xlu0 %1535 }
 0x2bb   :  { %v2798_v34 = vmul.f32 %v2395_v13, %v586_v28  ;;  %5013 = vst [vmem:[#allocation22_spill] sm:$0xff] %v2830_v48  ;;  %v2969_v48 = vsel %vm157_vm7, 1.0, %v4865_v2 }
 0x2bc   :  { %5018 = vst [vmem:[#allocation27_spill] sm:$0xff] %v2969_v48 }
 0x2bd   :  { %826 = vrot.lane.b32.xlu0 %v2736_v44, %s2484_s14 }
 0x2be   :  { %733 = vrot.lane.b32.xlu1 %v2724_v7, %s2474_s8  ;;  %v2838_v55 = vpop.permute.xlu0 %1134 }
 0x2bf   :  { %5014 = vst [vmem:[#allocation23_spill] sm:$0xff] %v2838_v55 }
 0x2c1   :  { %851 = vrot.lane.b32.xlu0 %v2726_v52, %s2485_s15 }
 0x2c2   :  { %739 = vrot.lane.b32.xlu1 %v2736_v44, %s2474_s8  ;;  %v2846_v25 = vpop.permute.xlu0 %867 }
 0x2c5   :  { %887 = vrot.lane.b32.xlu0 %v2779_v45, %s2486_s16 }
 0x2c6   :  { %737 = vrot.lane.b32.xlu1 %v2738_v47, %s2474_s8  ;;  %v2854_v26 = vpop.permute.xlu0 %1564 }
 0x2c7   :  { %5015 = vst [vmem:[#allocation24_spill] sm:$0xff] %v2854_v26 }
 0x2c9   :  { %893 = vrot.lane.b32.xlu0 %v2786_v51, %s2486_s16 }
 0x2ca   :  { %762 = vrot.lane.b32.xlu1 %v2724_v7, %s2482_s12  ;;  %v2862_v28 = vpop.permute.xlu0 %992 }
 0x2cd   :  { %891 = vrot.lane.b32.xlu0 %v2792_v42, %s2486_s16 }
 0x2ce   :  { %766 = vrot.lane.b32.xlu1 %v2738_v47, %s2482_s12  ;;  %v2870_v29 = vpop.permute.xlu0 %751 }
 0x2d1   :  { %918 = vrot.lane.b32.xlu0 %v2798_v34, %s2487_s17 }
 0x2d2   :  { %768 = vrot.lane.b32.xlu1 %v2736_v44, %s2482_s12 }
 0x2d5   :  { %947 = vrot.lane.b32.xlu0 %v2798_v34, %s2488_s18 }
 0x2d6   :  { %791 = vrot.lane.b32.xlu1 %v2724_v7, %s2483_s13 }
 0x2d9   :  { %976 = vrot.lane.b32.xlu0 %v2798_v34, %s2489_s19 }
 0x2da   :  { %795 = vrot.lane.b32.xlu1 %v2738_v47, %s2483_s13 }
 0x2dd   :  { %1005 = vrot.lane.b32.xlu0 %v2798_v34, %s2490_s20 }
 0x2de   :  { %797 = vrot.lane.b32.xlu1 %v2736_v44, %s2483_s13 }
 0x2e1   :  { %1034 = vrot.lane.b32.xlu0 %v2798_v34, %s2491_s21 }
 0x2e2   :  { %820 = vrot.lane.b32.xlu1 %v2724_v7, %s2484_s14 }
 0x2e5   :  { %1063 = vrot.lane.b32.xlu0 %v2798_v34, %s2479_s9 }
 0x2e6   :  { %824 = vrot.lane.b32.xlu1 %v2738_v47, %s2484_s14 }
 0x2e9   :  { %1091 = vrot.lane.b32.xlu0 %v2798_v34, %s2480_s10 }
 0x2ea   :  { %849 = vrot.lane.b32.xlu1 %v2724_v7, %s2485_s15 }
 0x2ed   :  { %1119 = vrot.lane.b32.xlu0 %v2798_v34, %s2481_s11 }
 0x2ee   :  { %853 = vrot.lane.b32.xlu1 %v2738_v47, %s2485_s15 }
 0x2f1   :  { %1147 = vrot.lane.b32.xlu0 %v2798_v34, %s2492_s22 }
 0x2f2   :  { %889 = vrot.lane.b32.xlu1 %v2798_v34, %s2486_s16 }
 0x2f5   :  { %1176 = vrot.lane.b32.xlu0 %v2798_v34, %s2493_s23 }
 0x2f6   :  { %916 = vrot.lane.b32.xlu1 %v2779_v45, %s2487_s17 }
 0x2f9   :  { %1205 = vrot.lane.b32.xlu0 %v2798_v34, %s2474_s8 }
 0x2fa   :  { %922 = vrot.lane.b32.xlu1 %v2786_v51, %s2487_s17 }
 0x2fd   :  { %1233 = vrot.lane.b32.xlu0 %v2798_v34, %s2482_s12 }
 0x2fe   :  { %920 = vrot.lane.b32.xlu1 %v2792_v42, %s2487_s17 }
 0x301   :  { %1261 = vrot.lane.b32.xlu0 %v2798_v34, %s2494_s24 }
 0x302   :  { %945 = vrot.lane.b32.xlu1 %v2779_v45, %s2488_s18 }
 0x305   :  { %1265 = vrot.lane.b32.xlu0 %v2786_v51, %s2494_s24 }
 0x306   :  { %951 = vrot.lane.b32.xlu1 %v2786_v51, %s2488_s18 }
 0x309   :  { %1290 = vrot.lane.b32.xlu0 %v2798_v34, %s2495_s25 }
 0x30a   :  { %949 = vrot.lane.b32.xlu1 %v2792_v42, %s2488_s18 }
 0x30d   :  { %1317 = vrot.lane.b32.xlu0 %v2779_v45, %s2483_s13 }
 0x30e   :  { %974 = vrot.lane.b32.xlu1 %v2779_v45, %s2489_s19 }
 0x30f   :  { %v2880_v50 = vpop.permute.xlu0 %646 }
 0x310   :  { %v2882_v38 = vpop.permute.xlu1 %648 }
 0x311   :  { %1321 = vrot.lane.b32.xlu0 %v2792_v42, %s2483_s13  ;;  %v657_v6 = vsel %vm4951_vm4, %v2880_v50, %v2882_v38 }
 0x312   :  { %980 = vrot.lane.b32.xlu1 %v2786_v51, %s2489_s19  ;;  %v660_v17 = vmul.f32 %v2939_v31, %v657_v6  ;;  %v32_v6 = vand.u32 255, %v2878_v49 }
 0x313   :  { %v2889_v32 = vpop.permute.xlu0 %652 }
 0x314   :  { %v2891_v27 = vpop.permute.xlu1 %650  ;;  %v668_v2 = vmul.f32 %v2665_v8, %v660_v17  ;;  %v2995_v14 = vand.u32 15, %v32_v6  ;;  %v2997_v17 = vshra.s32 %v32_v6, 4 }
 0x315   :  { %1323 = vrot.lane.b32.xlu0 %v2786_v51, %s2483_s13 }
 0x316   :  { %978 = vrot.lane.b32.xlu1 %v2792_v42, %s2489_s19  ;;  %vm4898_vm10 = vcmp.ge.s32.totalorder %v2995_v14, 1  ;;  %vm4890_vm11 = vcmp.ge.s32.totalorder %v2997_v17, 1  ;;  %vm4919_vm13 = vcmp.lt.s32.totalorder %v2995_v14, 15 }
 0x317   :  { %v2897_v33 = vpop.permute.xlu0 %677  ;;  %vm136_vm12 = vmand %vm4898_vm10, %vm4890_vm11 }
 0x318   :  { %v2899_v35 = vpop.permute.xlu1 %675  ;;  %vm156_vm15 = vmand %vm4919_vm13, %vm4890_vm11 }
 0x319   :  { %1347 = vrot.lane.b32.xlu0 %v2798_v34, %s2484_s14  ;;  %v686_v54 = vsel %vm4956_vm6, %v2899_v35, %v2897_v33 }
 0x31a   :  { %1003 = vrot.lane.b32.xlu1 %v2779_v45, %s2490_s20  ;;  %v689_v21 = vmul.f32 %v2957_v11, %v686_v54  ;;  %v643_v54 = vmul.f32 %v2661_v4, %v2726_v52 }
 0x31b   :  { %v2909_v43 = vpop.permute.xlu0 %706 }
 0x31c   :  { %v2911_v46 = vpop.permute.xlu1 %681  ;;  %v697_v18 = vmul.f32 %v2669_v12, %v689_v21  ;;  %v672_v3 = vadd.f32 %v668_v2, %v643_v54 }
 0x31d   :  { %1375 = vrot.lane.b32.xlu0 %v2798_v34, %s2485_s15 }
 0x31e   :  { %1009 = vrot.lane.b32.xlu1 %v2786_v51, %s2490_s20  ;;  %v701_v6 = vadd.f32 %v697_v18, %v672_v3  ;;  %v34_v3 = vand.u32 255, %v30_v60 }
 0x31f   :  { %v2919_v15 = vpop.permute.xlu0 %735 }
 0x320   :  { %v2921_v13 = vpop.permute.xlu1 %679  ;;  %v3052_v60 = vand.u32 15, %v34_v3 }
 0x321   :  { %1403 = vrot.lane.b32.xlu0 %v2798_v34, %s2496_s26 }
 0x322   :  { %1007 = vrot.lane.b32.xlu1 %v2792_v42, %s2490_s20  ;;  %vm4929_vm7 = vcmp.ge.s32.totalorder %v3052_v60, 1 }
 0x323   :  { %v2933_v39 = vpop.permute.xlu0 %764 }
 0x324   :  { %v2936_v40 = vpop.permute.xlu1 %704 }
 0x325   :  { %1432 = vrot.lane.b32.xlu0 %v2798_v34, %s2497_s27  ;;  %v715_v24 = vsel %vm4958_vm8, %v2936_v40, %v2909_v43 }
 0x326   :  { %1032 = vrot.lane.b32.xlu1 %v2779_v45, %s2491_s21  ;;  %v718_v20 = vmul.f32 %v2969_v48, %v715_v24  ;;  %v5019_v24 = vmov 0.0  }
 0x327   :  { %v2963_v37 = vpop.permute.xlu0 %793  ;;  %v3002_v9 = vsel %vm4935_vm1, 1.0, %v5019_v24  ;;  %v3074_v11 = vsel %vm156_vm15, 1.0, %v5019_v24  ;;  %vm4913_vm15 = vcmp.lt.s32.totalorder %v2997_v17, 15 }
 0x328   :  { %v2966_v26 = vpop.permute.xlu1 %710  ;;  %5020 = vst [vmem:[#allocation28_spill] sm:$0xff] %v3002_v9  ;;  %v726_v52 = vmul.f32 %v2677_v19, %v718_v20  ;;  %5025 = vst [vmem:[#allocation33_spill] sm:$0xff] %v3074_v11 }
 0x329   :  { %1461 = vrot.lane.b32.xlu0 %v2798_v34, %s2498_s28  ;;  %vm228_vm2 = vmand %vm4898_vm10, %vm4913_vm15 }
 0x32a   :  { %1038 = vrot.lane.b32.xlu1 %v2786_v51, %s2491_s21  ;;  %v730_v20 = vadd.f32 %v726_v52, %v701_v6  ;;  %v3037_v52 = vsel %vm136_vm12, 1.0, %v5019_v24  ;;  %v658_v6 = vsel %vm4951_vm4, %v2889_v32, %v2880_v50  ;;  %v687_v50 = vsel %vm4956_vm6, %v2911_v46, %v2899_v35 }
 0x32b   :  { %v2981_v56 = vpop.permute.xlu0 %822  ;;  %5021 = vst [vmem:[#allocation29_spill] sm:$0xff] %v3037_v52  ;;  %v659_v59 = vmul.f32 %v3037_v52, %v658_v6  ;;  %v716_v35 = vsel %vm4958_vm8, %v2966_v26, %v2936_v40  ;;  %v3090_v6 = vsel %vm4898_vm10, 1.0, %v5019_v24 }
 0x32c   :  { %v2985_v16 = vpop.permute.xlu1 %708  ;;  %5026 = vst [vmem:[#allocation34_spill] sm:$0xff] %v3090_v6  ;;  %v717_v10 = vmul.f32 %v3074_v11, %v716_v35 }
 0x32d   :  { %1490 = vrot.lane.b32.xlu0 %v2798_v34, %s2499_s29  ;;  %v667_v52 = vmul.f32 %v2665_v8, %v659_v59 }
 0x32e   :  { %1036 = vrot.lane.b32.xlu1 %v2792_v42, %s2491_s21 }
 0x32f   :  { %v3004_v5 = vpop.permute.xlu0 %826 }
 0x330   :  { %v734_v21 = vpop.permute.xlu1 %733 }
 0x331   :  { %v744_v0 = vsel %vm4962_vm9, %v734_v21, %v2919_v15  ;;  %1494 = vrot.lane.b32.xlu0 %v2786_v51, %s2499_s29 }
 0x332   :  { %v747_v62 = vmul.f32 %v3002_v9, %v744_v0  ;;  %1061 = vrot.lane.b32.xlu1 %v2779_v45, %s2479_s9  ;;  %v3063_v9 = vshra.s32 %v34_v3, 4 }
 0x333   :  { %v3018_v2 = vpop.permute.xlu0 %851 }
 0x334   :  { %v755_v54 = vmul.f32 %v2870_v29, %v747_v62  ;;  %v3021_v55 = vpop.permute.xlu1 %739  ;;  %vm4909_vm12 = vcmp.ge.s32.totalorder %v3063_v9, 1 }
 0x335   :  { %1519 = vrot.lane.b32.xlu0 %v2798_v34, %s2500_s30  ;;  %v745_v40 = vsel %vm4962_vm9, %v3021_v55, %v734_v21  ;;  %v3115_v21 = vsel %vm4919_vm13, 1.0, %v5019_v24  ;;  %vm138_vm0 = vmand %vm4929_vm7, %vm4909_vm12 }
 0x336   :  { %v759_v0 = vadd.f32 %v755_v54, %v730_v20  ;;  %1067 = vrot.lane.b32.xlu1 %v2786_v51, %s2479_s9  ;;  %v3057_v20 = vsel %vm4890_vm11, 1.0, %v5019_v24  ;;  %5029 = vst [vmem:[#allocation37_spill] sm:$0xff] %v3115_v21  ;;  %v746_v11 = vmul.f32 %v3090_v6, %v745_v40  ;;  %vm4987_vm11 = vcmp.lt.s32.totalorder %v3052_v60, 15 }
 0x337   :  { %v3032_v18 = vpop.permute.xlu0 %887  ;;  %5022 = vst [vmem:[#allocation30_spill] sm:$0xff] %v3057_v20  ;;  %v688_v3 = vmul.f32 %v3057_v20, %v687_v50  ;;  %v3098_v50 = vsel %vm4897_vm5, 1.0, %v5019_v24  ;;  %vm4972_vm5 = vcmp.lt.s32.totalorder %v2878_v49, 113  ;;  %vm158_vm10 = vmand %vm4987_vm11, %vm4909_vm12 }
 0x338   :  { %v3034_v62 = vpop.permute.xlu1 %737  ;;  %5027 = vst [vmem:[#allocation35_spill] sm:$0xff] %v3098_v50  ;;  %v754_v6 = vmul.f32 %v2870_v29, %v746_v11  ;;  %v3168_v11 = vsel %vm228_vm2, 1.0, %v5019_v24  ;;  %vm4914_vm2 = vcmp.lt.s32.totalorder %v3063_v9, 15 }
 0x339   :  { %1523 = vrot.lane.b32.xlu0 %v2786_v51, %s2500_s30  ;;  %v696_v35 = vmul.f32 %v2669_v12, %v688_v3  ;;  %5031 = vst [vmem:[#allocation39_spill] sm:$0xff] %v3168_v11 }
 0x33a   :  { %1065 = vrot.lane.b32.xlu1 %v2792_v42, %s2479_s9 }
 0x33b   :  { %v894_v54 = vpop.permute.xlu0 %893 }
 0x33c   :  { %v3066_v48 = vpop.permute.xlu1 %762  ;;  %v3071_v22 = vsel %vm4893_vm14, %v894_v54, %v3032_v18 }
 0x33d   :  { %5023 = vst [vmem:[#allocation31_spill] sm:$0xff] %v3066_v48  ;;  %5024 = vst [vmem:[#allocation32_spill] sm:$0xff] %v3071_v22  ;;  %1548 = vrot.lane.b32.xlu0 %v2798_v34, %s2501_s2  ;;  %v773_v22 = vsel %vm4965_vm3, %v3066_v48, %v2933_v39 }
 0x33e   :  { %1089 = vrot.lane.b32.xlu1 %v2779_v45, %s2480_s10  ;;  %v775_v3 = vmul.f32 %v3115_v21, %v773_v22 }
 0x33f   :  { %v3100_v20 = vpop.permute.xlu0 %891 }
 0x340   :  { %v3105_v31 = vpop.permute.xlu1 %766  ;;  %v3110_v58 = vsel %vm4893_vm14, %v3100_v20, %v894_v54  ;;  %v642_v54 = vmul.f32 %v2661_v4, %v2724_v7  ;;  %v725_v7 = vmul.f32 %v2677_v19, %v717_v10  ;;  %vm4916_vm14 = vcmp.lt.s32.totalorder %v2907_v41, 15 }
 0x341   :  { %5028 = vst [vmem:[#allocation36_spill] sm:$0xff] %v3110_v58  ;;  %v772_v59 = vsel %vm4965_vm3, %v2933_v39, %v3105_v31  ;;  %855 = vrot.lane.b32.xlu0 %v2736_v44, %s2485_s15  ;;  %v656_v10 = vsel %vm4951_vm4, %v2882_v38, %v2891_v27  ;;  %v3182_v38 = vsel %vm4909_vm12, 1.0, %v5019_v24  ;;  %vm4917_vm12 = vcmp.lt.s32.totalorder %v2878_v49, 111 }
 0x342   :  { %v776_v58 = vmul.f32 %v3098_v50, %v772_v59  ;;  %1095 = vrot.lane.b32.xlu1 %v2786_v51, %s2480_s10  ;;  %v671_v44 = vadd.f32 %v667_v52, %v642_v54  ;;  %5033 = vst [vmem:[#allocation41_spill] sm:$0xff] %v3182_v38  ;;  %v685_v54 = vsel %vm4956_vm6, %v2897_v33, %v2921_v13 }
 0x343   :  { %v3140_v39 = vpop.permute.xlu0 %918  ;;  %v714_v33 = vsel %vm4958_vm8, %v2909_v43, %v2985_v16  ;;  %v743_v43 = vsel %vm4962_vm9, %v2919_v15, %v3034_v62  ;;  %v3235_v15 = vsel %vm4987_vm11, 1.0, %v5019_v24 }
 0x344   :  { %v784_v40 = vmul.f32 %v2699_v57, %v776_v58  ;;  %v3145_v59 = vpop.permute.xlu1 %768  ;;  %v700_v50 = vadd.f32 %v696_v35, %v671_v44  ;;  %v3157_v58 = vsel %vm138_vm0, 1.0, %v5019_v24  ;;  %vm229_vm0 = vmand %vm4935_vm1, %vm4916_vm14  ;;  %5037 = vst [vmem:[#allocation45_spill] sm:$0xff] %v3235_v15 }
 0x345   :  { %5030 = vst [vmem:[#allocation38_spill] sm:$0xff] %v3157_v58  ;;  %v661_v35 = vmul.f32 %v3157_v58, %v656_v10  ;;  %v3204_v21 = vsel %vm229_vm0, 1.0, %v5019_v24  ;;  %vm4915_vm0 = vcmp.lt.s32.totalorder %v2878_v49, 112 }
 0x346   :  { %v788_v48 = vadd.f32 %v784_v40, %v759_v0  ;;  %1093 = vrot.lane.b32.xlu1 %v2792_v42, %s2480_s10  ;;  %v729_v44 = vadd.f32 %v725_v7, %v700_v50  ;;  %v783_v0 = vmul.f32 %v2699_v57, %v775_v3  ;;  %v3197_v40 = vsel %vm158_vm10, 1.0, %v5019_v24  ;;  %5035 = vst [vmem:[#allocation43_spill] sm:$0xff] %v3204_v21  ;;  %vm230_vm10 = vmand %vm4929_vm7, %vm4914_vm2 }
 0x347   :  { %v3170_v22 = vpop.permute.xlu0 %947  ;;  %5034 = vst [vmem:[#allocation42_spill] sm:$0xff] %v3197_v40 }
 0x348   :  { %v3173_v52 = vpop.permute.xlu1 %791  ;;  %v758_v7 = vadd.f32 %v754_v6, %v729_v44  ;;  %v690_v6 = vmul.f32 %v3182_v38, %v685_v54  ;;  %v669_v54 = vmul.f32 %v2665_v8, %v661_v35 }
 0x349   :  { %5032 = vst [vmem:[#allocation40_spill] sm:$0xff] %v3173_v52  ;;  %v802_v50 = vsel %vm4972_vm5, %v3173_v52, %v2963_v37 }
 0x34a   :  { %v804_v3 = vmul.f32 %v3168_v11, %v802_v50  ;;  %1117 = vrot.lane.b32.xlu1 %v2779_v45, %s2481_s11  ;;  %v787_v10 = vadd.f32 %v783_v0, %v758_v7  ;;  %v3214_v11 = vsel %vm4929_vm7, 1.0, %v5019_v24  ;;  %v719_v0 = vmul.f32 %v3197_v40, %v714_v33 }
 0x34b   :  { %v3206_v52 = vpop.permute.xlu0 %976  ;;  %5036 = vst [vmem:[#allocation44_spill] sm:$0xff] %v3214_v11  ;;  %v698_v33 = vmul.f32 %v2669_v12, %v690_v6 }
 0x34c   :  { %v812_v44 = vmul.f32 %v2705_v23, %v804_v3  ;;  %v796_v50 = vpop.permute.xlu1 %795 }
 0x34d   :  { %v801_v58 = vsel %vm4972_vm5, %v2963_v37, %v796_v50  ;;  %v771_v37 = vsel %vm4965_vm3, %v3105_v31, %v3145_v59  ;;  %v3255_v31 = vsel %vm230_vm10, 1.0, %v5019_v24  ;;  %vm248_vm10 = vmand %vm4919_vm13, %vm4913_vm15  ;;  %vm4952_vm13 = vcmp.lt.s32.totalorder %v2878_v49, 33 }
 0x34e   :  { %v816_v7 = vadd.f32 %v812_v44, %v787_v10  ;;  %v805_v3 = vmul.f32 %v3204_v21, %v801_v58  ;;  %1123 = vrot.lane.b32.xlu1 %v2786_v51, %s2481_s11  ;;  %v644_v58 = vmul.f32 %v2661_v4, %v2738_v47  ;;  %v748_v10 = vmul.f32 %v3214_v11, %v743_v43 }
 0x34f   :  { %v3241_v35 = vpop.permute.xlu0 %1005  ;;  %v727_v47 = vmul.f32 %v2677_v19, %v719_v0  ;;  %v777_v6 = vmul.f32 %v3235_v15, %v771_v37  ;;  %v3264_v43 = vsel %vm4913_vm15, 1.0, %v5019_v24  ;;  %vm5047_vm15 = vcmp.lt.s32.totalorder %v2905_v36, 15 }
 0x350   :  { %5038 = vst [vmem:[#allocation46_spill] sm:$0xff] %v3241_v35  ;;  %v813_v44 = vmul.f32 %v2705_v23, %v805_v3  ;;  %v3248_v21 = vpop.permute.xlu1 %797  ;;  %v673_v38 = vadd.f32 %v669_v54, %v644_v58  ;;  %5040 = vst [vmem:[#allocation48_spill] sm:$0xff] %v3264_v43  ;;  %v756_v11 = vmul.f32 %v2870_v29, %v748_v10 }
 0x351   :  { %5039 = vst [vmem:[#allocation47_spill] sm:$0xff] %v3248_v21  ;;  %v800_v40 = vsel %vm4972_vm5, %v796_v50, %v3248_v21  ;;  %v785_v37 = vmul.f32 %v2699_v57, %v777_v6 }
 0x352   :  { %v817_v35 = vadd.f32 %v813_v44, %v788_v48  ;;  %1121 = vrot.lane.b32.xlu1 %v2792_v42, %s2481_s11  ;;  %v702_v3 = vadd.f32 %v698_v33, %v673_v38  ;;  %v806_v54 = vmul.f32 %v3255_v31, %v800_v40  ;;  %v3283_v38 = vsel %vm4916_vm14, 1.0, %v5019_v24 }
 0x353   :  { %v3266_v50 = vpop.permute.xlu0 %1034  ;;  %5042 = vst [vmem:[#allocation50_spill] sm:$0xff] %v3283_v38  ;;  %v3288_v40 = vsel %vm4914_vm2, 1.0, %v5019_v24  ;;  %vm249_vm2 = vmand %vm5047_vm15, %vm4916_vm14  ;;  %vm4953_vm14 = vcmp.ge.s32.totalorder %v3063_v9, 2 }
 0x354   :  { %5041 = vst [vmem:[#allocation49_spill] sm:$0xff] %v3266_v50  ;;  %v3269_v21 = vpop.permute.xlu1 %820  ;;  %v731_v0 = vadd.f32 %v727_v47, %v702_v3  ;;  %5043 = vst [vmem:[#allocation51_spill] sm:$0xff] %v3288_v40  ;;  %v814_v6 = vmul.f32 %v2705_v23, %v806_v54  ;;  %v3310_v54 = vsel %vm248_vm10, 1.0, %v5019_v24  ;;  %vm4918_vm10 = vcmp.ge.s32.totalorder %v2905_v36, 2 }
 0x355   :  { %v831_v48 = vsel %vm4915_vm0, %v3269_v21, %v2981_v56  ;;  %5045 = vst [vmem:[#allocation53_spill] sm:$0xff] %v3310_v54 }
 0x356   :  { %v833_v58 = vmul.f32 %v3264_v43, %v831_v48  ;;  %1145 = vrot.lane.b32.xlu1 %v2779_v45, %s2492_s22  ;;  %v760_v10 = vadd.f32 %v756_v11, %v731_v0 }
 0x357   :  { %v3290_v33 = vpop.permute.xlu0 %1063 }
 0x358   :  { %5044 = vst [vmem:[#allocation52_spill] sm:$0xff] %v3290_v33  ;;  %v841_v44 = vmul.f32 %v2822_v53, %v833_v58  ;;  %v825_v47 = vpop.permute.xlu1 %824  ;;  %v789_v11 = vadd.f32 %v785_v37, %v760_v10 }
 0x359   :  { %v829_v3 = vsel %vm4915_vm0, %v825_v47, %v3004_v5  ;;  %v830_v48 = vsel %vm4915_vm0, %v2981_v56, %v825_v47  ;;  %vm49_vm0 = vcmp.ge.s32.totalorder %v2907_v41, 2 }
 0x35a   :  { %v845_v0 = vadd.f32 %v841_v44, %v816_v7  ;;  %v834_v58 = vmul.f32 %v3283_v38, %v830_v48  ;;  %v835_v43 = vmul.f32 %v3288_v40, %v829_v3  ;;  %1151 = vrot.lane.b32.xlu1 %v2786_v51, %s2492_s22  ;;  %v818_v7 = vadd.f32 %v814_v6, %v789_v11  ;;  %vm53_vm15 = vmand %vm4918_vm10, %vm49_vm0 }
 0x35b   :  { %v3312_v15 = vpop.permute.xlu0 %1091  ;;  %v3334_v3 = vsel %vm249_vm2, 1.0, %v5019_v24  ;;  %vm4936_vm2 = vcmp.ge.s32.totalorder %v3052_v60, 2  ;;  %vm5051_vm10 = vcmp.lt.s32.totalorder %v2878_v49, 34 }
 0x35c   :  { %5046 = vst [vmem:[#allocation54_spill] sm:$0xff] %v3312_v15  ;;  %v842_v33 = vmul.f32 %v2822_v53, %v834_v58  ;;  %v843_v56 = vmul.f32 %v2822_v53, %v835_v43  ;;  %v3316_v47 = vpop.permute.xlu1 %849  ;;  %5048 = vst [vmem:[#allocation55_spill] sm:$0xff] %v3334_v3 }
 0x35d   :  { %v860_v37 = vsel %vm4917_vm12, %v3316_v47, %v3018_v2 }
 0x35e   :  { %v846_v10 = vadd.f32 %v842_v33, %v817_v35  ;;  %v862_v43 = vmul.f32 %v3310_v54, %v860_v37  ;;  %1149 = vrot.lane.b32.xlu1 %v2792_v42, %s2492_s22  ;;  %v3331_v44 = vadd.f32 %v843_v56, %v818_v7  ;;  %v2136_v56 = vsel %vm53_vm15, 1.0, %v5019_v24  ;;  %vm54_vm15 = vmand %vm4936_vm2, %vm4953_vm14 }
 0x35f   :  { %v3336_v6 = vpop.permute.xlu0 %1119 }
 0x360   :  { %5049 = vst [vmem:[#allocation56_spill] sm:$0xff] %v3336_v6  ;;  %v870_v48 = vmul.f32 %v2846_v25, %v862_v43  ;;  %v3339_v11 = vpop.permute.xlu1 %853  ;;  %v31_v6 = vadd.s32 384, %v2878_v49 }
 0x361   :  { %v859_v35 = vsel %vm4917_vm12, %v3018_v2, %v3339_v11  ;;  %vm69_vm12 = vmand %vm4935_vm1, %vm49_vm0 }
 0x362   :  { %v3349_v33 = vadd.f32 %v870_v48, %v845_v0  ;;  %v863_v58 = vmul.f32 %v3334_v3, %v859_v35  ;;  %1174 = vrot.lane.b32.xlu1 %v2779_v45, %s2493_s23  ;;  %v2140_v35 = vsel %vm69_vm12, 1.0, %v5019_v24  ;;  %vm70_vm12 = vmand %vm4929_vm7, %vm4953_vm14  ;;  %vm4945_vm7 = vcmp.lt.s32.totalorder %v2878_v49, 31 }
 0x363   :  { %v3357_v7 = vpop.permute.xlu0 %1147  ;;  %vm94_vm1 = vmand %vm4987_vm11, %vm4953_vm14 }
 0x364   :  { %5050 = vst [vmem:[#allocation57_spill] sm:$0xff] %v3357_v7  ;;  %v871_v37 = vmul.f32 %v2846_v25, %v863_v58  ;;  %v890_v43 = vpop.permute.xlu1 %889 }
 0x365   :  { %v898_v2 = vsel %vm5051_vm10, %v3032_v18, %v890_v43 }
 0x366   :  { %v3367_v0 = vadd.f32 %v871_v37, %v846_v10  ;;  %v901_v48 = vmul.f32 %v2136_v56, %v898_v2  ;;  %1180 = vrot.lane.b32.xlu1 %v2786_v51, %s2493_s23  ;;  %v2137_v10 = vsel %vm54_vm15, 1.0, %v5019_v24  ;;  %v897_v37 = vsel %vm5051_vm10, %v890_v43, %v3100_v20 }
 0x367   :  { %v3377_v58 = vpop.permute.xlu0 %1176  ;;  %v884_v2 = vmul.f32 %v2649_v61, %v2798_v34  ;;  %v902_v40 = vmul.f32 %v2137_v10, %v897_v37  ;;  %v2141_v43 = vsel %vm70_vm12, 1.0, %v5019_v24  ;;  %v885_v37 = vmul.f32 %v2649_v61, %v2792_v42 }
 0x368   :  { %5052 = vst [vmem:[#allocation58_spill] sm:$0xff] %v3377_v58  ;;  %v909_v3 = vmul.f32 %v2709_v30, %v901_v48  ;;  %v3380_v18 = vpop.permute.xlu1 %916  ;;  %vm4948_vm15 = vcmp.lt.s32.totalorder %v2878_v49, 32  ;;  %vm5058_vm10 = vcmp.lt.s32.totalorder %v2905_v36, 15 }
 0x369   :  { %v927_v56 = vsel %vm4952_vm13, %v3380_v18, %v3140_v39  ;;  %v910_v10 = vmul.f32 %v2709_v30, %v902_v40  ;;  %v2144_v40 = vsel %vm49_vm0, 1.0, %v5019_v24  ;;  %vm93_vm12 = vmand %vm5058_vm10, %vm49_vm0 }
 0x36a   :  { %v930_v54 = vmul.f32 %v2140_v35, %v927_v56  ;;  %1178 = vrot.lane.b32.xlu1 %v2792_v42, %s2493_s23  ;;  %v913_v38 = vadd.f32 %v909_v3, %v884_v2 }
 0x36b   :  { %v3394_v48 = vpop.permute.xlu0 %1205  ;;  %v914_v56 = vadd.f32 %v910_v10, %v885_v37 }
 0x36c   :  { %5053 = vst [vmem:[#allocation59_spill] sm:$0xff] %v3394_v48  ;;  %v938_v58 = vmul.f32 %v2653_v63, %v930_v54  ;;  %v3397_v7 = vpop.permute.xlu1 %922 }
 0x36e   :  { %v942_v20 = vadd.f32 %v938_v58, %v913_v38  ;;  %1203 = vrot.lane.b32.xlu1 %v2779_v45, %s2474_s8 }
 0x36f   :  { %v3406_v35 = vpop.permute.xlu0 %1233 }
 0x370   :  { %5054 = vst [vmem:[#allocation60_spill] sm:$0xff] %v3406_v35  ;;  %v3409_v3 = vpop.permute.xlu1 %920 }
 0x371   :  { %v926_v54 = vsel %vm4952_vm13, %v3140_v39, %v3409_v3 }
 0x372   :  { %v931_v38 = vmul.f32 %v2141_v43, %v926_v54  ;;  %1209 = vrot.lane.b32.xlu1 %v2786_v51, %s2474_s8 }
 0x373   :  { %v3423_v58 = vpop.permute.xlu0 %1261 }
 0x374   :  { %5055 = vst [vmem:[#allocation61_spill] sm:$0xff] %v3423_v58  ;;  %v939_v2 = vmul.f32 %v2653_v63, %v931_v38  ;;  %v3426_v35 = vpop.permute.xlu1 %945 }
 0x375   :  { %v956_v39 = vsel %vm4948_vm15, %v3426_v35, %v3170_v22 }
 0x376   :  { %v943_v43 = vadd.f32 %v939_v2, %v914_v56  ;;  %v959_v54 = vmul.f32 %v2144_v40, %v956_v39  ;;  %1207 = vrot.lane.b32.xlu1 %v2792_v42, %s2474_s8  ;;  %v2145_v56 = vsel %vm4953_vm14, 1.0, %v5019_v24  ;;  %v35_v2 = vand.u32 255, %v31_v6 }
 0x377   :  { %v3434_v48 = vpop.permute.xlu0 %1265  ;;  %v2148_v6 = vsel %vm93_vm12, 1.0, %v5019_v24 }
 0x378   :  { %5056 = vst [vmem:[#allocation62_spill] sm:$0xff] %v3434_v48  ;;  %v967_v10 = vmul.f32 %v2657_v1, %v959_v54  ;;  %v3438_v37 = vpop.permute.xlu1 %951  ;;  %v3465_v48 = vshra.s32 %v35_v2, 4 }
 0x37a   :  { %v971_v38 = vadd.f32 %v967_v10, %v942_v20  ;;  %1231 = vrot.lane.b32.xlu1 %v2779_v45, %s2482_s12  ;;  %vm215_vm10 = vcmp.lt.s32.totalorder %v3465_v48, 15  ;;  %vm4976_vm14 = vcmp.ge.s32.totalorder %v3465_v48, 2 }
 0x37b   :  { %v3445_v40 = vpop.permute.xlu0 %1290 }
 0x37c   :  { %5057 = vst [vmem:[#allocation63_spill] sm:$0xff] %v3445_v40  ;;  %v3447_v39 = vpop.permute.xlu1 %949  ;;  %v3463_v40 = vand.u32 15, %v35_v2 }
 0x37d   :  { %v955_v20 = vsel %vm4948_vm15, %v3170_v22, %v3447_v39 }
 0x37e   :  { %v960_v54 = vmul.f32 %v2145_v56, %v955_v20  ;;  %1235 = vrot.lane.b32.xlu1 %v2792_v42, %s2482_s12  ;;  %vm4967_vm12 = vcmp.ge.s32.totalorder %v3463_v40, 1  ;;  %vm4966_vm13 = vcmp.ge.s32.totalorder %v3463_v40, 2 }
 0x37f   :  { %v3461_v10 = vpop.permute.xlu0 %1317  ;;  %vm231_vm2 = vmand %vm4967_vm12, %vm215_vm10 }
 0x380   :  { %5059 = vst [vmem:[#allocation64_spill] sm:$0xff] %v3461_v10  ;;  %v968_v58 = vmul.f32 %v2657_v1, %v960_v54  ;;  %v3468_v15 = vpop.permute.xlu1 %974 }
 0x381   :  { %5060 = vst [vmem:[#allocation65_spill] sm:$0xff] %v3468_v15  ;;  %v985_v22 = vsel %vm4945_vm7, %v3468_v15, %v3206_v52 }
 0x382   :  { %v972_v56 = vadd.f32 %v968_v58, %v943_v43  ;;  %v988_v20 = vmul.f32 %v2148_v6, %v985_v22  ;;  %1237 = vrot.lane.b32.xlu1 %v2786_v51, %s2482_s12  ;;  %v2149_v43 = vsel %vm94_vm1, 1.0, %v5019_v24  ;;  %vm4959_vm1 = vcmp.ge.s32.totalorder %v3465_v48, 1 }
 0x383   :  { %v3477_v50 = vpop.permute.xlu0 %1321 }
 0x384   :  { %5061 = vst [vmem:[#allocation66_spill] sm:$0xff] %v3477_v50  ;;  %v996_v2 = vmul.f32 %v2862_v28, %v988_v20  ;;  %v3481_v54 = vpop.permute.xlu1 %980  ;;  %v3499_v20 = vsel %vm231_vm2, 1.0, %v5019_v24  ;;  %vm139_vm2 = vmand %vm4967_vm12, %vm4959_vm1 }
 0x385   :  { %5062 = vst [vmem:[#allocation67_spill] sm:$0xff] %v3481_v54 }
 0x386   :  { %v3491_v58 = vadd.f32 %v996_v2, %v971_v38  ;;  %1259 = vrot.lane.b32.xlu1 %v2779_v45, %s2494_s24 }
 0x387   :  { %v1324_v6 = vpop.permute.xlu0 %1323 }
 0x388   :  { %5063 = vst [vmem:[#allocation68_spill] sm:$0xff] %v3491_v58  ;;  %v3496_v22 = vpop.permute.xlu1 %978  ;;  %v1325_v1 = vsel %vm4972_vm5, %v3477_v50, %v1324_v6  ;;  %v1328_v38 = vsel %vm4972_vm5, %v1324_v6, %v3461_v10 }
 0x389   :  { %v984_v2 = vsel %vm4945_vm7, %v3206_v52, %v3496_v22  ;;  %v3512_v58 = vmul.f32 %v3255_v31, %v1325_v1  ;;  %v3515_v63 = vmul.f32 %v3499_v20, %v1328_v38  ;;  %vm4988_vm7 = vcmp.lt.s32.totalorder %v3463_v40, 15 }
 0x38a   :  { %v989_v54 = vmul.f32 %v2149_v43, %v984_v2  ;;  %1263 = vrot.lane.b32.xlu1 %v2792_v42, %s2494_s24  ;;  %vm159_vm15 = vmand %vm4988_vm7, %vm4959_vm1 }
 0x38b   :  { %5064 = vst [vmem:[#allocation69_spill] sm:$0xff] %v3512_v58  ;;  %5065 = vst [vmem:[#allocation70_spill] sm:$0xff] %v3515_v63  ;;  %v3519_v50 = vpop.permute.xlu0 %1347 }
 0x38c   :  { %5066 = vst [vmem:[#allocation71_spill] sm:$0xff] %v3519_v50  ;;  %v997_v15 = vmul.f32 %v2862_v28, %v989_v54  ;;  %v3522_v6 = vpop.permute.xlu1 %1003  ;;  %v3594_v50 = vsel %vm159_vm15, 1.0, %v5019_v24  ;;  %vm3624_vm15 = vmand %vm4966_vm13, %vm4976_vm14 }
 0x38d   :  { %5077 = vst [vmem:[#allocation82_spill] sm:$0xff] %v3594_v50 }
 0x38e   :  { %v3524_v10 = vadd.f32 %v997_v15, %v972_v56  ;;  %1288 = vrot.lane.b32.xlu1 %v2779_v45, %s2495_s25 }
 0x38f   :  { %v3528_v1 = vpop.permute.xlu0 %1375 }
 0x390   :  { %5067 = vst [vmem:[#allocation72_spill] sm:$0xff] %v3524_v10  ;;  %5068 = vst [vmem:[#allocation73_spill] sm:$0xff] %v3528_v1  ;;  %v3530_v52 = vpop.permute.xlu1 %1009 }
 0x392   :  { %1292 = vrot.lane.b32.xlu1 %v2792_v42, %s2495_s25 }
 0x393   :  { %v3534_v31 = vpop.permute.xlu0 %1403 }
 0x394   :  { %5069 = vst [vmem:[#allocation74_spill] sm:$0xff] %v3534_v31  ;;  %v3536_v43 = vpop.permute.xlu1 %1007  ;;  %v684_v31 = vsel %vm4956_vm6, %v2921_v13, %v2911_v46  ;;  %v713_v46 = vsel %vm4958_vm8, %v2985_v16, %v2966_v26  ;;  %v742_v16 = vsel %vm4962_vm9, %v3034_v62, %v3021_v55  ;;  %vm5084_vm8 = vcmp.ge.s32.totalorder %v2995_v14, 1 }
 0x395   :  { %v720_v58 = vmul.f32 %v3594_v50, %v713_v46  ;;  %vm4973_vm9 = vcmp.lt.s32.totalorder %v2905_v36, 14  ;;  %v5092_v46 = vld [vmem:[#allocation21_spill] sm:$0xff] }
 0x396   :  { %1294 = vrot.lane.b32.xlu1 %v2786_v51, %s2495_s25  ;;  %v645_v50 = vmul.f32 %v2661_v4, %v5092_v46 }
 0x397   :  { %v3540_v54 = vpop.permute.xlu0 %1432  ;;  %v728_v46 = vmul.f32 %v2677_v19, %v720_v58  ;;  %v3712_v19 = vsel %vm215_vm10, 1.0, %v5019_v24 }
 0x398   :  { %5070 = vst [vmem:[#allocation75_spill] sm:$0xff] %v3540_v54  ;;  %v3542_v15 = vpop.permute.xlu1 %1032 }
 0x39a   :  { %1319 = vrot.lane.b32.xlu1 %v2798_v34, %s2483_s13  ;;  %v3563_v34 = vsel %vm139_vm2, 1.0, %v5019_v24  ;;  %vm4969_vm2 = vcmp.ge.s32.totalorder %v2995_v14, 2 }
 0x39b   :  { %v3547_v56 = vpop.permute.xlu0 %1461  ;;  %5074 = vst [vmem:[#allocation79_spill] sm:$0xff] %v3563_v34 }
 0x39c   :  { %5071 = vst [vmem:[#allocation76_spill] sm:$0xff] %v3547_v56  ;;  %v3549_v38 = vpop.permute.xlu1 %1038  ;;  %v655_v56 = vsel %vm4951_vm4, %v2891_v27, %v2889_v32  ;;  %vm48_vm4 = vcmp.ge.s32.totalorder %v2997_v17, 2 }
 0x39d   :  { %v662_v27 = vmul.f32 %v3563_v34, %v655_v56  ;;  %vm3605_vm6 = vmand %vm4969_vm2, %vm48_vm4  ;;  %v2143_v55 = vsel %vm48_vm4, 1.0, %v5019_v24 }
 0x39e   :  { %1345 = vrot.lane.b32.xlu1 %v2779_v45, %s2484_s14  ;;  %vm3683_vm2 = vmand %vm4988_vm7, %vm4976_vm14 }
 0x39f   :  { %v3558_v2 = vpop.permute.xlu0 %1490  ;;  %v670_v63 = vmul.f32 %v2665_v8, %v662_v27  ;;  %v3784_v27 = vsel %vm3683_vm2, 1.0, %v5019_v24  ;;  %vm5123_vm2 = vcmp.ge.s32.totalorder %v2905_v36, 2 }
 0x3a0   :  { %5072 = vst [vmem:[#allocation77_spill] sm:$0xff] %v3558_v2  ;;  %v3560_v54 = vpop.permute.xlu1 %1036  ;;  %v3578_v2 = vsel %vm4959_vm1, 1.0, %v5019_v24  ;;  %vm3636_vm1 = vmand %vm5084_vm8, %vm48_vm4 }
 0x3a1   :  { %5073 = vst [vmem:[#allocation78_spill] sm:$0xff] %v3560_v54  ;;  %5075 = vst [vmem:[#allocation80_spill] sm:$0xff] %v3578_v2  ;;  %v691_v13 = vmul.f32 %v3578_v2, %v684_v31  ;;  %v3645_v2 = vsel %vm4988_vm7, 1.0, %v5019_v24  ;;  %v3703_v54 = vmul.f32 %v2649_v61, %v2779_v45 }
 0x3a2   :  { %1349 = vrot.lane.b32.xlu1 %v2792_v42, %s2484_s14  ;;  %5088 = vst [vmem:[#allocation86_spill] sm:$0xff] %v3645_v2  ;;  %vm3655_vm8 = vmand %vm4967_vm12, %vm4976_vm14 }
 0x3a3   :  { %v3586_v32 = vpop.permute.xlu0 %1494  ;;  %v699_v34 = vmul.f32 %v2669_v12, %v691_v13  ;;  %v2142_v26 = vsel %vm3655_vm8, 1.0, %v5019_v24 }
 0x3a4   :  { %5076 = vst [vmem:[#allocation81_spill] sm:$0xff] %v3586_v32  ;;  %v3591_v1 = vpop.permute.xlu1 %1061  ;;  %v3614_v32 = vsel %vm4967_vm12, 1.0, %v5019_v24  ;;  %vm4975_vm12 = vcmp.lt.s32.totalorder %v2995_v14, 14 }
 0x3a5   :  { %5080 = vst [vmem:[#allocation83_spill] sm:$0xff] %v3614_v32  ;;  %v749_v10 = vmul.f32 %v3614_v32, %v742_v16  ;;  %v674_v16 = vadd.f32 %v670_v63, %v645_v50  ;;  %v3707_v63 = vmul.f32 %v2649_v61, %v2786_v51 }
 0x3a6   :  { %1351 = vrot.lane.b32.xlu1 %v2786_v51, %s2484_s14 }
 0x3a7   :  { %v3628_v31 = vpop.permute.xlu0 %1519  ;;  %v703_v58 = vadd.f32 %v699_v34, %v674_v16 }
 0x3a8   :  { %5083 = vst [vmem:[#allocation84_spill] sm:$0xff] %v3628_v31  ;;  %v3640_v62 = vpop.permute.xlu1 %1067  ;;  %v5089_v31 = vld [vmem:[#allocation31_spill] sm:$0xff] }
 0x3a9   :  { %5087 = vst [vmem:[#allocation85_spill] sm:$0xff] %v3640_v62  ;;  %v774_v8 = vsel %vm4965_vm3, %v3145_v59, %v5089_v31  ;;  %vm5093_vm3 = vcmp.lt.s32.totalorder %v2995_v14, 15  ;;  %v5096_v31 = vld [vmem:[#allocation40_spill] sm:$0xff]  ;;  %v5097_v62 = vld [vmem:[#allocation47_spill] sm:$0xff]  ;;  %v732_v34 = vadd.f32 %v728_v46, %v703_v58 }
 0x3aa   :  { %vm3668_vm13 = vmand %vm5093_vm3, %vm48_vm4  ;;  %1373 = vrot.lane.b32.xlu1 %v2779_v45, %s2485_s15  ;;  %v803_v4 = vsel %vm4972_vm5, %v5097_v62, %v5096_v31  ;;  %v778_v32 = vmul.f32 %v3645_v2, %v774_v8  ;;  %5104 = vst [vmem:[#allocation40_spill] sm:$0xff] %v3712_v19  ;;  %vm4986_vm5 = vcmp.lt.s32.totalorder %v3052_v60, 14  ;;  %v757_v8 = vmul.f32 %v2870_v29, %v749_v10 }
 0x3ab   :  { %v3687_v13 = vpop.permute.xlu0 %1523  ;;  %vm3695_vm3 = vmand %vm4973_vm9, %vm49_vm0  ;;  %vm5107_vm9 = vcmp.lt.s32.totalorder %v2878_v49, 112  ;;  %v2135_v29 = vsel %vm3605_vm6, 1.0, %v5019_v24  ;;  %vm5114_vm6 = vcmp.ge.s32.totalorder %v3063_v9, 2 }
 0x3ac   :  { %5100 = vst [vmem:[#allocation31_spill] sm:$0xff] %v3687_v13  ;;  %v3699_v31 = vpop.permute.xlu1 %1065  ;;  %vm3718_vm0 = vmand %vm4975_vm12, %vm48_vm4  ;;  %v832_v61 = vsel %vm5107_vm9, %v3004_v5, %v3269_v21  ;;  %v807_v13 = vmul.f32 %v3499_v20, %v803_v4  ;;  %vm5108_vm12 = vcmp.lt.s32.totalorder %v3063_v9, 15  ;;  %v2138_v5 = vsel %vm3624_vm15, 1.0, %v5019_v24  ;;  %v5124_v20 = vld [vmem:[#allocation32_spill] sm:$0xff] }
 0x3ad   :  { %5103 = vst [vmem:[#allocation21_spill] sm:$0xff] %v3699_v31  ;;  %vm3735_vm14 = vmand %vm4987_vm11, %vm5108_vm12  ;;  %v2139_v21 = vsel %vm3636_vm1, 1.0, %v5019_v24  ;;  %vm4985_vm9 = vcmp.lt.s32.totalorder %v3463_v40, 14  ;;  %v786_v56 = vmul.f32 %v2699_v57, %v778_v32  ;;  %v836_v16 = vmul.f32 %v3712_v19, %v832_v61 }
 0x3ae   :  { %1377 = vrot.lane.b32.xlu1 %v2792_v42, %s2485_s15  ;;  %vm3755_vm12 = vmand %vm4988_vm7, %vm215_vm10  ;;  %vm5116_vm15 = vcmp.ge.s32.totalorder %v3465_v48, 2  ;;  %v3779_v32 = vsel %vm3668_vm13, 1.0, %v5019_v24  ;;  %v761_v46 = vadd.f32 %v757_v8, %v732_v34  ;;  %v815_v58 = vmul.f32 %v2705_v23, %v807_v13 }
 0x3af   :  { %v3749_v10 = vpop.permute.xlu0 %1548  ;;  %vm110_vm1 = vmand %vm4986_vm5, %vm5114_vm6  ;;  %v2146_v57 = vsel %vm5116_vm15, 1.0, %v5019_v24  ;;  %v3800_v59 = vsel %vm3735_vm14, 1.0, %v5019_v24  ;;  %v3805_v23 = vsel %vm3755_vm12, 1.0, %v5019_v24  ;;  %v3810_v12 = vsel %vm3695_vm3, 1.0, %v5019_v24 }
 0x3b0   :  { %5111 = vst [vmem:[#allocation47_spill] sm:$0xff] %v3749_v10  ;;  %v3770_v4 = vpop.permute.xlu1 %1089  ;;  %vm5117_vm4 = vmmov %vm5116_vm15  ;;  %vm1011_vm13 = vcmp.lt.s32.totalorder %v2878_v49, 30  ;;  %v3816_v13 = vsel %vm3718_vm0, 1.0, %v5019_v24  ;;  %v3819_v2 = vsel %vm110_vm1, 1.0, %v5019_v24  ;;  %vm5122_vm14 = vcmp.ge.s32.totalorder %v2907_v41, 1 }
 0x3b1   :  { %5115 = vst [vmem:[#allocation87_spill] sm:$0xff] %v3770_v4  ;;  %vm3791_vm8 = vmand %vm4985_vm9, %vm5117_vm4  ;;  %v900_v62 = vmul.f32 %v2135_v29, %v5124_v20  ;;  %v790_v34 = vadd.f32 %v786_v56, %v761_v46  ;;  %vm5125_vm3 = vcmp.lt.s32.totalorder %v2878_v49, 111  ;;  %v844_v31 = vmul.f32 %v2822_v53, %v836_v16  ;;  %v5129_v56 = vld [vmem:[#allocation36_spill] sm:$0xff] }
 0x3b2   :  { %1379 = vrot.lane.b32.xlu1 %v2786_v51, %s2485_s15  ;;  %5120 = vst [vmem:[#allocation88_spill] sm:$0xff] %v3800_v59  ;;  %5121 = vst [vmem:[#allocation89_spill] sm:$0xff] %v3805_v23  ;;  %v3838_v4 = vsel %vm3791_vm8, 1.0, %v5019_v24  ;;  %vm5127_vm6 = vcmp.ge.s32.totalorder %v2997_v17, 1  ;;  %vm5128_vm1 = vcmp.ge.s32.totalorder %v2995_v14, 2  ;;  %v903_v46 = vmul.f32 %v2138_v5, %v5129_v56 }
 0x3b3   :  { %vm125_vm12 = vmand %vm5123_vm2, %vm5122_vm14  ;;  %v856_v8 = vpop.permute.xlu0 %855  ;;  %v819_v20 = vadd.f32 %v815_v58, %v790_v34  ;;  %vm1040_vm4 = vcmp.lt.s32.totalorder %v2878_v49, 18  ;;  %v1586_v53 = vmul.f32 %v3367_v0, %v3367_v0  ;;  %vm5130_vm8 = vcmp.lt.s32.totalorder %v2878_v49, 33 }
 0x3b4   :  { %v3826_v10 = vpop.permute.xlu1 %1095  ;;  %v858_v50 = vsel %vm5125_vm3, %v3339_v11, %v856_v8  ;;  %vm5126_vm0 = vmmov %vm5125_vm3  ;;  %v928_v16 = vsel %vm5130_vm8, %v3397_v7, %v3380_v18  ;;  %v908_v61 = vmul.f32 %v2709_v30, %v900_v62  ;;  %vm5132_vm2 = vcmp.lt.s32.totalorder %v2878_v49, 32 }
 0x3b5   :  { %v861_v19 = vsel %vm5126_vm0, %v856_v8, %v3316_v47  ;;  %vm124_vm15 = vmand %vm5128_vm1, %vm5127_vm6  ;;  %v864_v29 = vmul.f32 %v3800_v59, %v858_v50  ;;  %v3848_v47 = vsel %vm125_vm12, 1.0, %v5019_v24  ;;  %v957_v8 = vsel %vm5132_vm2, %v3438_v37, %v3426_v35 }
 0x3b6   :  { %v865_v11 = vmul.f32 %v3805_v23, %v861_v19  ;;  %1401 = vrot.lane.b32.xlu1 %v2779_v45, %s2496_s26  ;;  %vm5131_vm14 = vmmov %vm5130_vm8  ;;  %v3871_v34 = vsel %vm124_vm15, 1.0, %v5019_v24  ;;  %vm5133_vm12 = vcmp.ge.s32.totalorder %v3063_v9, 1  ;;  %vm5134_vm3 = vcmp.ge.s32.totalorder %v3052_v60, 2 }
 0x3b7   :  { %v925_v19 = vsel %vm5131_vm14, %v3409_v3, %v3397_v7  ;;  %v872_v5 = vmul.f32 %v2846_v25, %v864_v29  ;;  %vm3877_vm0 = vmand %vm5134_vm3, %vm5133_vm12  ;;  %vm5139_vm1 = vcmp.ge.s32.totalorder %v3465_v48, 1  ;;  %vm5140_vm15 = vcmp.ge.s32.totalorder %v3463_v40, 2  ;;  %v5154_v7 = vld [vmem:[#allocation46_spill] sm:$0xff] }
 0x3b8   :  { %v873_v58 = vmul.f32 %v2846_v25, %v865_v11  ;;  %v3881_v18 = vpop.permute.xlu1 %1093  ;;  %v1585_v25 = vmul.f32 %v3349_v33, %v3349_v33  ;;  %vm5138_vm6 = vmmov %vm5132_vm2  ;;  %v848_v62 = vadd.f32 %v844_v31, %v819_v20  ;;  %v1575_v29 = vadd.f32 %v3367_v0, %v3349_v33  ;;  %v5149_v20 = vld [vmem:[#allocation65_spill] sm:$0xff] }
 0x3b9   :  { %5137 = vst [vmem:[#allocation32_spill] sm:$0xff] %v3881_v18  ;;  %v954_v35 = vsel %vm5138_vm6, %v3447_v39, %v3438_v37  ;;  %vm3893_vm8 = vmand %vm5140_vm15, %vm5139_vm1  ;;  %v3898_v50 = vadd.f32 %v872_v5, %v3331_v44  ;;  %v911_v11 = vmul.f32 %v2709_v30, %v903_v46  ;;  %v929_v56 = vmul.f32 %v2139_v21, %v928_v16  ;;  %v5160_v30 = vld [vmem:[#allocation49_spill] sm:$0xff] }
 0x3ba   :  { %v932_v23 = vmul.f32 %v2142_v26, %v925_v19  ;;  %1405 = vrot.lane.b32.xlu1 %v2792_v42, %s2496_s26  ;;  %v1593_v37 = vadd.f32 %v1586_v53, %v1585_v25  ;;  %v958_v39 = vmul.f32 %v2143_v55, %v957_v8  ;;  %v3905_v59 = vadd.f32 %v873_v58, %v848_v62  ;;  %v5153_v58 = vld [vmem:[#allocation6_spill] sm:$0xff] }
 0x3bb   :  { %v1576_v18 = vadd.f32 %v1575_v29, %v3898_v50  ;;  %v1587_v44 = vmul.f32 %v3898_v50, %v3898_v50  ;;  %vm5143_vm14 = vcmp.ge.s32.totalorder %v2907_v41, 1  ;;  %vm5144_vm2 = vcmp.lt.s32.totalorder %v2905_v36, 14 }
 0x3bc   :  { %vm3914_vm12 = vmand %vm5144_vm2, %vm5143_vm14  ;;  %v912_v31 = vadd.f32 %v908_v61, %v3703_v54  ;;  %v961_v21 = vmul.f32 %v2146_v57, %v954_v35  ;;  %v3922_v26 = vsel %vm3877_vm0, 1.0, %v5019_v24  ;;  %v3927_v55 = vsel %vm3893_vm8, 1.0, %v5019_v24  ;;  %v3929_v46 = vpop.permute.xlu1 %1117  ;;  %v5150_v54 = vld [vmem:[#allocation67_spill] sm:$0xff] }
 0x3bd   :  { %vm5147_vm3 = vcmp.ge.s32.totalorder %v2997_v17, 1  ;;  %vm5148_vm6 = vcmp.lt.s32.totalorder %v2995_v14, 14  ;;  %vm5151_vm15 = vcmp.lt.s32.totalorder %v2878_v49, 31  ;;  %v1577_v16 = vadd.f32 %v1576_v18, %v3905_v59 }
 0x3be   :  { %vm168_vm1 = vmand %vm5148_vm6, %vm5147_vm3  ;;  %v986_v57 = vsel %vm5151_vm15, %v5150_v54, %v5149_v20  ;;  %v1594_v19 = vadd.f32 %v1593_v37, %v1587_v44  ;;  %v915_v5 = vadd.f32 %v911_v11, %v3707_v63  ;;  %v937_v61 = vmul.f32 %v5153_v58, %v929_v56  ;;  %1407 = vrot.lane.b32.xlu1 %v2786_v51, %s2496_s26  ;;  %v5158_v63 = vld [vmem:[#allocation8_spill] sm:$0xff] }
 0x3bf   :  { %vm5152_vm0 = vmmov %vm5151_vm15  ;;  %v940_v8 = vmul.f32 %v5153_v58, %v932_v23  ;;  %v1014_v25 = vsel %vm1011_vm13, %v3522_v6, %v5154_v7  ;;  %vm5155_vm8 = vcmp.ge.s32.totalorder %v3063_v9, 1  ;;  %v966_v18 = vmul.f32 %v5158_v63, %v958_v39  ;;  %1578 = vadd.xlane.f32.xlu0 %v1577_v16 }
 0x3c0   :  { %v983_v53 = vsel %vm5152_vm0, %v3496_v22, %v5150_v54  ;;  %vm3957_vm14 = vmand %vm4986_vm5, %vm5155_vm8  ;;  %v1588_v23 = vmul.f32 %v3905_v59, %v3905_v59  ;;  %v3967_v35 = vsel %vm3914_vm12, 1.0, %v5019_v24  ;;  %v3970_v3 = vsel %vm168_vm1, 1.0, %v5019_v24  ;;  %v3986_v37 = vpop.permute.xlu1 %1123  ;;  %v5166_v22 = vld [vmem:[#allocation85_spill] sm:$0xff] }
 0x3c1   :  { %vm5159_vm2 = vcmp.ge.s32.totalorder %v3465_v48, 1  ;;  %v987_v62 = vmul.f32 %v3779_v32, %v986_v57  ;;  %v990_v29 = vmul.f32 %v3784_v27, %v983_v53  ;;  %v1015_v11 = vsel %vm1011_vm13, %v3530_v52, %v3522_v6 }
 0x3c2   :  { %vm171_vm3 = vmand %vm4985_vm9, %vm5159_vm2  ;;  %v1013_v56 = vsel %vm1011_vm13, %v5154_v7, %v3536_v43  ;;  %v969_v39 = vmul.f32 %v5158_v63, %v961_v21  ;;  %v1017_v44 = vmul.f32 %v3810_v12, %v1014_v25  ;;  %v1043_v32 = vsel %vm1040_vm4, %v3542_v15, %v5160_v30  ;;  %1430 = vrot.lane.b32.xlu1 %v2779_v45, %s2497_s27  ;;  %v5165_v7 = vld [vmem:[#allocation78_spill] sm:$0xff] }
 0x3c3   :  { %v1595_v27 = vadd.f32 %v1594_v19, %v1588_v23  ;;  %vm1153_vm12 = vcmp.lt.s32.totalorder %v2878_v49, 14  ;;  %v941_v6 = vadd.f32 %v937_v61, %v912_v31  ;;  %v944_v20 = vadd.f32 %v940_v8, %v915_v5  ;;  %v5163_v61 = vld [vmem:[#allocation2_spill] sm:$0xff] }
 0x3c4   :  { %v4000_v54 = vsel %vm3957_vm14, 1.0, %v5019_v24  ;;  %v4003_v12 = vsel %vm171_vm3, 1.0, %v5019_v24  ;;  %v1016_v21 = vmul.f32 %v3816_v13, %v1015_v11  ;;  %v1012_v57 = vsel %vm1011_vm13, %v3536_v43, %v3530_v52  ;;  %v5161_v13 = vld [vmem:[#allocation52_spill] sm:$0xff]  ;;  %v4022_v52 = vpop.permute.xlu1 %1121 }
 0x3c5   :  { %v1018_v31 = vmul.f32 %v3819_v2, %v1013_v56  ;;  %v1044_v53 = vsel %vm1040_vm4, %v3549_v38, %v3542_v15  ;;  %1596 = vadd.xlane.f32.xlu0 %v1595_v27  ;;  %v995_v16 = vmul.f32 %v2862_v28, %v987_v62  ;;  %v998_v19 = vmul.f32 %v2862_v28, %v990_v29  ;;  %v5170_v29 = vld [vmem:[#allocation87_spill] sm:$0xff]  ;;  %v5174_v27 = vld [vmem:[#allocation68_spill] sm:$0xff] }
 0x3c6   :  { %v1046_v5 = vmul.f32 %v3848_v47, %v1043_v32  ;;  %vm5162_vm6 = vcmp.lt.s32.totalorder %v2878_v49, 17  ;;  %v970_v43 = vadd.f32 %v966_v18, %v941_v6  ;;  %v973_v2 = vadd.f32 %v969_v39, %v944_v20  ;;  %1434 = vrot.lane.b32.xlu1 %v2792_v42, %s2497_s27 }
 0x3c7   :  { %v1071_v58 = vsel %vm5162_vm6, %v3591_v1, %v5161_v13  ;;  %v1025_v8 = vmul.f32 %v5163_v61, %v1017_v44  ;;  %vm5164_vm13 = vcmp.ge.s32.totalorder %v2905_v36, 2  ;;  %v1019_v28 = vmul.f32 %v3838_v4, %v1012_v57  ;;  %vm5167_vm1 = vmmov %vm5162_vm6  ;;  %v5168_v4 = vld [vmem:[#allocation25_spill] sm:$0xff] }
 0x3c8   :  { %v4028_v15 = vsel %vm5164_vm13, 1.0, %v5019_v24  ;;  %v1045_v47 = vmul.f32 %v3871_v34, %v1044_v53  ;;  %v1042_v25 = vsel %vm1040_vm4, %v5160_v30, %v5165_v7  ;;  %v1072_v63 = vsel %vm5167_vm1, %v5166_v22, %v3591_v1  ;;  %v5169_v34 = vld [vmem:[#allocation54_spill] sm:$0xff]  ;;  %v5172_v44 = vld [vmem:[#allocation17_spill] sm:$0xff]  ;;  %v1146_v32 = vpop.permute.xlu1 %1145  ;;  %vm5186_vm3 = vmmov %vm5167_vm1 }
 0x3c9   :  { %v1024_v18 = vmul.f32 %v5163_v61, %v1016_v21  ;;  %v1026_v23 = vmul.f32 %v5163_v61, %v1018_v31  ;;  %v1074_v62 = vmul.f32 %v5168_v4, %v1071_v58  ;;  %vm5171_vm15 = vcmp.lt.s32.totalorder %v2878_v49, 16  ;;  %v5175_v21 = vld [vmem:[#allocation29_spill] sm:$0xff]  ;;  %v5176_v31 = vld [vmem:[#allocation56_spill] sm:$0xff]  ;;  %v5178_v58 = vld [vmem:[#allocation26_spill] sm:$0xff] }
 0x3ca   :  { %v1099_v11 = vsel %vm5171_vm15, %v5170_v29, %v5169_v34  ;;  %v999_v56 = vadd.f32 %v995_v16, %v970_v43  ;;  %v1002_v39 = vadd.f32 %v998_v19, %v973_v2  ;;  %v1054_v30 = vmul.f32 %v5172_v44, %v1046_v5  ;;  %1436 = vrot.lane.b32.xlu1 %v2786_v51, %s2497_s27  ;;  %v5179_v2 = vld [vmem:[#allocation72_spill] sm:$0xff]  ;;  %vm5181_vm2 = vmmov %vm5171_vm15 }
 0x3cb   :  { %vm5173_vm0 = vcmp.ge.s32.totalorder %v2995_v14, 2  ;;  %v1029_v6 = vadd.f32 %v1025_v8, %v5174_v27  ;;  %v1047_v20 = vmul.f32 %v3922_v26, %v1042_v25  ;;  %v1073_v57 = vmul.f32 %v5175_v21, %v1072_v63  ;;  %v5180_v25 = vld [vmem:[#allocation19_spill] sm:$0xff]  ;;  %vm5193_vm13 = vmmov %vm5181_vm2 }
 0x3cc   :  { %v4053_v1 = vsel %vm5173_vm0, 1.0, %v5019_v24  ;;  %vm5177_vm8 = vcmp.lt.s32.totalorder %v2878_v49, 15  ;;  %v1027_v16 = vmul.f32 %v5163_v61, %v1019_v28  ;;  %v1053_v19 = vmul.f32 %v5172_v44, %v1045_v47  ;;  %v5182_v47 = vld [vmem:[#allocation21_spill] sm:$0xff] }
 0x3cd   :  { %v1127_v53 = vsel %vm5177_vm8, %v3929_v46, %v5176_v31  ;;  %v1041_v5 = vsel %vm1040_vm4, %v5165_v7, %v3549_v38  ;;  %v1102_v43 = vmul.f32 %v5178_v58, %v1099_v11  ;;  %vm1182_vm14 = vcmp.lt.s32.totalorder %v2878_v49, 2  ;;  %vm5183_vm4 = vmmov %vm5167_vm1  ;;  %v5184_v7 = vld [vmem:[#allocation27_spill] sm:$0xff]  ;;  %v5185_v11 = vld [vmem:[#allocation57_spill] sm:$0xff] }
 0x3ce   :  { %v1028_v26 = vadd.f32 %v1024_v18, %v999_v56  ;;  %v1030_v8 = vadd.f32 %v1026_v23, %v5179_v2  ;;  %v1082_v63 = vmul.f32 %v5180_v25, %v1074_v62  ;;  %v1100_v61 = vsel %vm5181_vm2, %v3826_v10, %v5170_v29  ;;  %v1152_v23 = vpop.permute.xlu1 %1151  ;;  %1459 = vrot.lane.b32.xlu1 %v2779_v45, %s2498_s28  ;;  %vm5190_vm6 = vmmov %vm5177_vm8 }
 0x3cf   :  { %v1058_v28 = vadd.f32 %v1054_v30, %v1029_v6  ;;  %v1070_v38 = vsel %vm5183_vm4, %v5161_v13, %v5182_v47  ;;  %v1130_v4 = vmul.f32 %v5184_v7, %v1127_v53  ;;  %v1156_v18 = vsel %vm1153_vm12, %v1146_v32, %v5185_v11  ;;  %v5187_v6 = vld [vmem:[#allocation3_spill] sm:$0xff]  ;;  %v5188_v53 = vld [vmem:[#allocation30_spill] sm:$0xff]  ;;  %vm5194_vm1 = vmmov %vm5181_vm2 }
 0x3d0   :  { %v1048_v62 = vmul.f32 %v3927_v55, %v1041_v5  ;;  %v1055_v56 = vmul.f32 %v5172_v44, %v1047_v20  ;;  %v1081_v27 = vmul.f32 %v5180_v25, %v1073_v57  ;;  %v1069_v29 = vsel %vm5186_vm3, %v5182_v47, %v5166_v22  ;;  %v5189_v55 = vld [vmem:[#allocation38_spill] sm:$0xff]  ;;  %v5191_v22 = vld [vmem:[#allocation79_spill] sm:$0xff]  ;;  %vm5197_vm15 = vmmov %vm5190_vm6 }
 0x3d1   :  { %v1031_v30 = vadd.f32 %v1027_v16, %v1002_v39  ;;  %v1057_v13 = vadd.f32 %v1053_v19, %v1028_v26  ;;  %v1110_v21 = vmul.f32 %v5187_v6, %v1102_v43  ;;  %v1101_v58 = vmul.f32 %v5188_v53, %v1100_v61  ;;  %v5192_v16 = vld [vmem:[#allocation32_spill] sm:$0xff]  ;;  %v5195_v26 = vld [vmem:[#allocation23_spill] sm:$0xff]  ;;  %vm5200_vm0 = vmmov %vm5190_vm6 }
 0x3d2   :  { %v1086_v2 = vadd.f32 %v1082_v63, %v1058_v28  ;;  %v1075_v5 = vmul.f32 %v5189_v55, %v1070_v38  ;;  %v1128_v20 = vsel %vm5190_vm6, %v3986_v37, %v3929_v46  ;;  %v1159_v57 = vmul.f32 %v3967_v35, %v1156_v18  ;;  %v1150_v61 = vpop.permute.xlu1 %1149  ;;  %v5196_v18 = vld [vmem:[#allocation33_spill] sm:$0xff]  ;;  %1463 = vrot.lane.b32.xlu1 %v2792_v42, %s2498_s28 }
 0x3d3   :  { %v1076_v39 = vmul.f32 %v5191_v22, %v1069_v29  ;;  %v1097_v19 = vsel %vm5193_vm13, %v5192_v16, %v3826_v10  ;;  %v1098_v43 = vsel %vm5194_vm1, %v5169_v34, %v5192_v16  ;;  %v1138_v63 = vmul.f32 %v5195_v26, %v1130_v4  ;;  %v5198_v4 = vld [vmem:[#allocation41_spill] sm:$0xff] }
 0x3d4   :  { %v1056_v28 = vmul.f32 %v5172_v44, %v1048_v62  ;;  %v1059_v46 = vadd.f32 %v1055_v56, %v1030_v8  ;;  %v1085_v47 = vadd.f32 %v1081_v27, %v1057_v13  ;;  %v1157_v35 = vsel %vm1153_vm12, %v1152_v23, %v1146_v32  ;;  %v5199_v8 = vld [vmem:[#allocation80_spill] sm:$0xff] }
 0x3d5   :  { %v1114_v38 = vadd.f32 %v1110_v21, %v1086_v2  ;;  %v1109_v7 = vmul.f32 %v5187_v6, %v1101_v58  ;;  %v1129_v10 = vmul.f32 %v5196_v18, %v1128_v20  ;;  %v1126_v34 = vsel %vm5197_vm15, %v5176_v31, %v4022_v52  ;;  %v5201_v56 = vld [vmem:[#allocation4_spill] sm:$0xff]  ;;  %v5202_v58 = vld [vmem:[#allocation42_spill] sm:$0xff] }
 0x3d6   :  { %v1103_v44 = vmul.f32 %v5198_v4, %v1098_v43  ;;  %v1104_v62 = vmul.f32 %v5199_v8, %v1097_v19  ;;  %v1125_v32 = vsel %vm5200_vm0, %v4022_v52, %v3986_v37  ;;  %v1167_v27 = vmul.f32 %v5201_v56, %v1159_v57  ;;  %v1175_v53 = vpop.permute.xlu1 %1174  ;;  %v5203_v37 = vld [vmem:[#allocation58_spill] sm:$0xff]  ;;  %1465 = vrot.lane.b32.xlu1 %v2786_v51, %s2498_s28 }
 0x3d7   :  { %v1083_v29 = vmul.f32 %v5180_v25, %v1075_v5  ;;  %v1084_v13 = vmul.f32 %v5180_v25, %v1076_v39  ;;  %v1142_v21 = vadd.f32 %v1138_v63, %v1114_v38  ;;  %v1158_v31 = vmul.f32 %v3970_v3, %v1157_v35  ;;  %v5204_v57 = vld [vmem:[#allocation82_spill] sm:$0xff]  ;;  %v5205_v63 = vld [vmem:[#allocation5_spill] sm:$0xff] }
 0x3d8   :  { %v1131_v2 = vmul.f32 %v5202_v58, %v1126_v34  ;;  %v1154_v55 = vsel %vm1153_vm12, %v1150_v61, %v1152_v23  ;;  %v1155_v20 = vsel %vm1153_vm12, %v5185_v11, %v1150_v61  ;;  %v1185_v52 = vsel %vm1182_vm14, %v1175_v53, %v5203_v37 }
 0x3d9   :  { %v1060_v5 = vadd.f32 %v1056_v28, %v1031_v30  ;;  %v1137_v25 = vmul.f32 %v5195_v26, %v1129_v10  ;;  %v1132_v22 = vmul.f32 %v5204_v57, %v1125_v32  ;;  %v1188_v3 = vmul.f32 %v4028_v15, %v1185_v52 }
 0x3da   :  { %v1113_v39 = vadd.f32 %v1109_v7, %v1085_v47  ;;  %v1111_v23 = vmul.f32 %v5187_v6, %v1103_v44  ;;  %v1112_v16 = vmul.f32 %v5187_v6, %v1104_v62  ;;  %v1171_v11 = vadd.f32 %v1167_v27, %v1142_v21  ;;  %v1181_v28 = vpop.permute.xlu1 %1180  ;;  %1488 = vrot.lane.b32.xlu1 %v2779_v45, %s2499_s29 }
 0x3db   :  { %v1166_v19 = vmul.f32 %v5201_v56, %v1158_v31  ;;  %v1160_v43 = vmul.f32 %v4000_v54, %v1155_v20  ;;  %v1161_v30 = vmul.f32 %v4003_v12, %v1154_v55  ;;  %v1196_v61 = vmul.f32 %v5205_v63, %v1188_v3  ;;  %v5208_v20 = vld [vmem:[#allocation59_spill] sm:$0xff] }
 0x3dc   :  { %v1087_v35 = vadd.f32 %v1083_v29, %v1059_v46  ;;  %v1088_v15 = vadd.f32 %v1084_v13, %v1060_v5  ;;  %v1139_v38 = vmul.f32 %v5195_v26, %v1131_v2  ;;  %v1186_v47 = vsel %vm1182_vm14, %v1181_v28, %v1175_v53 }
 0x3dd   :  { %v1141_v7 = vadd.f32 %v1137_v25, %v1113_v39  ;;  %v1140_v6 = vmul.f32 %v5195_v26, %v1132_v22  ;;  %v1200_v18 = vadd.f32 %v1196_v61, %v1171_v11  ;;  %v1187_v10 = vmul.f32 %v4053_v1, %v1186_v47  ;;  %v5210_v25 = vld [vmem:[#allocation28_spill] sm:$0xff]  ;;  %v5211_v22 = vld [vmem:[#allocation7_spill] sm:$0xff]  ;;  %v5213_v11 = vld [vmem:[#allocation34_spill] sm:$0xff] }
 0x3de   :  { %v1115_v54 = vadd.f32 %v1111_v23, %v1087_v35  ;;  %v1116_v12 = vadd.f32 %v1112_v16, %v1088_v15  ;;  %vm5206_vm12 = vcmp.ge.s32.totalorder %v3052_v60, 2  ;;  %vm5207_vm8 = vcmp.ge.s32.totalorder %v3463_v40, 2  ;;  %v1179_v8 = vpop.permute.xlu1 %1178  ;;  %1492 = vrot.lane.b32.xlu1 %v2792_v42, %s2499_s29  ;;  %v5216_v35 = vld [vmem:[#allocation44_spill] sm:$0xff] }
 0x3df   :  { %v2177_v46 = vsel %vm5206_vm12, 1.0, %v5019_v24  ;;  %v2178_v34 = vsel %vm5207_vm8, 1.0, %v5019_v24  ;;  %v1170_v4 = vadd.f32 %v1166_v19, %v1141_v7  ;;  %v1168_v44 = vmul.f32 %v5201_v56, %v1160_v43 }
 0x3e0   :  { %v1169_v26 = vmul.f32 %v5201_v56, %v1161_v30  ;;  %v1195_v1 = vmul.f32 %v5205_v63, %v1187_v10  ;;  %v1143_v62 = vadd.f32 %v1139_v38, %v1115_v54  ;;  %v1183_v32 = vsel %vm1182_vm14, %v1179_v8, %v1181_v28  ;;  %v5217_v38 = vld [vmem:[#allocation83_spill] sm:$0xff]  ;;  %v5218_v10 = vld [vmem:[#allocation60_spill] sm:$0xff] }
 0x3e1   :  { %v1184_v27 = vsel %vm1182_vm14, %v5203_v37, %v1179_v8  ;;  %v1144_v29 = vadd.f32 %v1140_v6, %v1116_v12  ;;  %v1190_v31 = vmul.f32 %v2178_v34, %v1183_v32  ;;  %vm5209_vm2 = vcmp.lt.s32.totalorder %v2878_v49, 1  ;;  %v5220_v34 = vld [vmem:[#allocation37_spill] sm:$0xff] }
 0x3e2   :  { %v1199_v13 = vadd.f32 %v1195_v1, %v1170_v4  ;;  %v1189_v21 = vmul.f32 %v2177_v46, %v1184_v27  ;;  %v1172_v53 = vadd.f32 %v1168_v44, %v1143_v62  ;;  %v1204_v55 = vpop.permute.xlu1 %1203  ;;  %1517 = vrot.lane.b32.xlu1 %v2779_v45, %s2500_s30  ;;  %vm5212_vm14 = vmmov %vm5209_vm2  ;;  %vm5219_vm6 = vcmp.lt.s32.totalorder %v2878_v49, 127  ;;  %v5221_v44 = vld [vmem:[#allocation9_spill] sm:$0xff]  ;;  %v5223_v62 = vld [vmem:[#allocation35_spill] sm:$0xff] }
 0x3e3   :  { %v1173_v56 = vadd.f32 %v1169_v26, %v1144_v29  ;;  %v1198_v2 = vmul.f32 %v5205_v63, %v1190_v31  ;;  %v1213_v52 = vsel %vm5209_vm2, %v1204_v55, %v5208_v20  ;;  %vm5214_vm4 = vmmov %vm5209_vm2  ;;  %v5226_v31 = vld [vmem:[#allocation45_spill] sm:$0xff]  ;;  %vm1267_vm0 = vcmp.lt.s32.totalorder %v2878_v49, 126 }
 0x3e4   :  { %v1197_v58 = vmul.f32 %v5205_v63, %v1189_v21  ;;  %v1216_v57 = vmul.f32 %v5210_v25, %v1213_v52  ;;  %vm5215_vm3 = vmmov %vm5209_vm2  ;;  %vm5228_vm12 = vcmp.lt.s32.totalorder %v2995_v14, 14  ;;  %v5230_v25 = vld [vmem:[#allocation62_spill] sm:$0xff]  ;;  %vm5231_vm8 = vcmp.lt.s32.totalorder %v2905_v36, 14 }
 0x3e5   :  { %v1202_v37 = vadd.f32 %v1198_v2, %v1173_v56  ;;  %vm5222_vm13 = vmmov %vm5219_vm6  ;;  %v5227_v56 = vld [vmem:[#allocation86_spill] sm:$0xff]  ;;  %v2190_v2 = vsel %vm4985_vm9, 1.0, %v5019_v24  ;;  %vm5233_vm2 = vcmp.lt.s32.totalorder %v2997_v17, 15 }
 0x3e6   :  { %v1201_v5 = vadd.f32 %v1197_v58, %v1172_v53  ;;  %v1224_v3 = vmul.f32 %v5211_v22, %v1216_v57  ;;  %v1210_v39 = vpop.permute.xlu1 %1209  ;;  %1521 = vrot.lane.b32.xlu1 %v2792_v42, %s2500_s30  ;;  %vm5224_vm1 = vmmov %vm5219_vm6 }
 0x3e7   :  { %v1214_v23 = vsel %vm5212_vm14, %v1210_v39, %v1204_v55  ;;  %vm5225_vm15 = vmmov %vm5224_vm1  ;;  %vm5234_vm14 = vcmp.ge.s32.totalorder %v2995_v14, 2 }
 0x3e8   :  { %v1228_v16 = vadd.f32 %v1224_v3, %v1200_v18  ;;  %v1215_v19 = vmul.f32 %v5213_v11, %v1214_v23  ;;  %v2189_v11 = vsel %vm4986_vm5, 1.0, %v5019_v24 }
 0x3ea   :  { %v1223_v43 = vmul.f32 %v5211_v22, %v1215_v19  ;;  %v1208_v30 = vpop.permute.xlu1 %1207  ;;  %1546 = vrot.lane.b32.xlu1 %v2779_v45, %s2501_s2  ;;  %v5232_v19 = vld [vmem:[#allocation10_spill] sm:$0xff] }
 0x3eb   :  { %v1211_v63 = vsel %vm5214_vm4, %v1208_v30, %v1210_v39  ;;  %v1212_v61 = vsel %vm5215_vm3, %v5208_v20, %v1208_v30  ;;  %vm216_vm4 = vmand %vm5234_vm14, %vm5233_vm2  ;;  %vm1296_vm3 = vcmp.lt.s32.totalorder %v2878_v49, 114  ;;  %vm5246_vm14 = vcmp.lt.s32.totalorder %v2878_v49, 113 }
 0x3ec   :  { %v1227_v28 = vadd.f32 %v1223_v43, %v1199_v13  ;;  %v1217_v15 = vmul.f32 %v5216_v35, %v1212_v61  ;;  %v1218_v47 = vmul.f32 %v5217_v38, %v1211_v63 }
 0x3ee   :  { %v1225_v7 = vmul.f32 %v5211_v22, %v1217_v15  ;;  %v1226_v6 = vmul.f32 %v5211_v22, %v1218_v47  ;;  %v1232_v18 = vpop.permute.xlu1 %1231  ;;  %1550 = vrot.lane.b32.xlu1 %v2792_v42, %s2501_s2 }
 0x3ef   :  { %v1241_v54 = vsel %vm5219_vm6, %v1232_v18, %v5218_v10  ;;  %vm5235_vm6 = vcmp.lt.s32.totalorder %v2907_v41, 15 }
 0x3f0   :  { %v1229_v12 = vadd.f32 %v1225_v7, %v1201_v5  ;;  %v1230_v46 = vadd.f32 %v1226_v6, %v1202_v37  ;;  %v1243_v4 = vmul.f32 %v5220_v34, %v1241_v54  ;;  %v5229_v5 = vld [vmem:[#allocation61_spill] sm:$0xff]  ;;  %v2191_v7 = vsel %vm216_vm4, 1.0, %v5019_v24  ;;  %v5237_v54 = vld [vmem:[#allocation63_spill] sm:$0xff]  ;;  %vm5248_vm4 = vmmov %vm5246_vm14 }
 0x3f2   :  { %v1251_v26 = vmul.f32 %v5221_v44, %v1243_v4  ;;  %v1236_v1 = vpop.permute.xlu1 %1235  ;;  %1552 = vrot.lane.b32.xlu1 %v2786_v51, %s2501_s2  ;;  %v2187_v51 = vsel %vm5228_vm12, 1.0, %v5019_v24 }
 0x3f3   :  { %v1240_v45 = vsel %vm5222_vm13, %v5218_v10, %v1236_v1  ;;  %vm5236_vm13 = vcmp.ge.s32.totalorder %v2905_v36, 2 }
 0x3f4   :  { %v1255_v8 = vadd.f32 %v1251_v26, %v1227_v28  ;;  %v1244_v32 = vmul.f32 %v5223_v62, %v1240_v45  ;;  %v5240_v26 = vld [vmem:[#allocation11_spill] sm:$0xff] }
 0x3f6   :  { %v1252_v27 = vmul.f32 %v5221_v44, %v1244_v32  ;;  %v1238_v29 = vpop.permute.xlu1 %1237 }
 0x3f7   :  { %v1239_v13 = vsel %vm5224_vm1, %v1236_v1, %v1238_v29  ;;  %v1242_v42 = vsel %vm5225_vm15, %v1238_v29, %v1232_v18  ;;  %vm217_vm1 = vmand %vm5236_vm13, %vm5235_vm6  ;;  %vm5238_vm15 = vcmp.lt.s32.totalorder %v3063_v9, 15 }
 0x3f8   :  { %v1256_v21 = vadd.f32 %v1252_v27, %v1228_v16  ;;  %v1245_v53 = vmul.f32 %v5226_v31, %v1239_v13  ;;  %v1246_v58 = vmul.f32 %v5227_v56, %v1242_v42  ;;  %v2188_v16 = vsel %vm5231_vm8, 1.0, %v5019_v24 }
 0x3f9   :  { %vm5241_vm8 = vcmp.ge.s32.totalorder %v3463_v40, 2 }
 0x3fa   :  { %v1253_v55 = vmul.f32 %v5221_v44, %v1245_v53  ;;  %v1254_v20 = vmul.f32 %v5221_v44, %v1246_v58  ;;  %v1260_v52 = vpop.permute.xlu1 %1259  ;;  %v2192_v44 = vsel %vm217_vm1, 1.0, %v5019_v24  ;;  %vm219_vm2 = vmand %vm5241_vm8, %vm215_vm10  ;;  %vm5265_vm8 = vcmp.lt.s32.totalorder %v2907_v41, 15 }
 0x3fb   :  { %v1270_v37 = vsel %vm1267_vm0, %v1260_v52, %v5229_v5  ;;  %v1271_v57 = vsel %vm1267_vm0, %v5230_v25, %v1260_v52  ;;  %v2194_v29 = vsel %vm219_vm2, 1.0, %v5019_v24  ;;  %v5243_v52 = vld [vmem:[#allocation12_spill] sm:$0xff]  ;;  %vm5266_vm2 = vcmp.lt.s32.totalorder %v2905_v36, 14 }
 0x3fc   :  { %v1257_v22 = vadd.f32 %v1253_v55, %v1229_v12  ;;  %v1258_v3 = vadd.f32 %v1254_v20, %v1230_v46  ;;  %v1272_v39 = vmul.f32 %v2187_v51, %v1270_v37  ;;  %v1275_v23 = vmul.f32 %v2190_v2, %v1271_v57  ;;  %v5242_v20 = vld [vmem:[#allocation69_spill] sm:$0xff]  ;;  %v5244_v37 = vld [vmem:[#allocation70_spill] sm:$0xff] }
 0x3fd   :  { %v5245_v57 = vld [vmem:[#allocation66_spill] sm:$0xff] }
 0x3fe   :  { %v1280_v43 = vmul.f32 %v5232_v19, %v1272_v39  ;;  %v1283_v30 = vmul.f32 %v5232_v19, %v1275_v23  ;;  %v1264_v63 = vpop.permute.xlu1 %1263 }
 0x3ff   :  { %v1268_v61 = vsel %vm1267_vm0, %v1264_v63, %v5230_v25  ;;  %v1269_v28 = vsel %vm1267_vm0, %v5229_v5, %v1264_v63  ;;  %vm5239_vm0 = vcmp.ge.s32.totalorder %v3052_v60, 2  ;;  %v1339_v5 = vmul.f32 %v5243_v52, %v5242_v20 }
 0x400   :  { %v1284_v35 = vadd.f32 %v1280_v43, %v1255_v8  ;;  %v1287_v15 = vadd.f32 %v1283_v30, %v1258_v3  ;;  %v1273_v38 = vmul.f32 %v2188_v16, %v1269_v28  ;;  %v1274_v47 = vmul.f32 %v2189_v11, %v1268_v61  ;;  %vm218_vm12 = vmand %vm5239_vm0, %vm5238_vm15  ;;  %v5247_v3 = vld [vmem:[#allocation64_spill] sm:$0xff]  ;;  %v5249_v11 = vld [vmem:[#allocation39_spill] sm:$0xff] }
 0x401   :  { %v2193_v27 = vsel %vm218_vm12, 1.0, %v5019_v24  ;;  %v1340_v25 = vmul.f32 %v5243_v52, %v5244_v37  ;;  %v5250_v43 = vld [vmem:[#allocation43_spill] sm:$0xff]  ;;  %vm5261_vm15 = vcmp.lt.s32.totalorder %v2997_v17, 15  ;;  %vm5262_vm0 = vcmp.lt.s32.totalorder %v2995_v14, 14 }
 0x402   :  { %v1281_v6 = vmul.f32 %v5232_v19, %v1273_v38  ;;  %v1282_v18 = vmul.f32 %v5232_v19, %v1274_v47  ;;  %v1289_v10 = vpop.permute.xlu1 %1288  ;;  %v5251_v47 = vld [vmem:[#allocation71_spill] sm:$0xff]  ;;  %vm4337_vm12 = vmand %vm5262_vm0, %vm5261_vm15  ;;  %vm4989_vm15 = vcmp.lt.s32.totalorder %v3063_v9, 14  ;;  %vm5274_vm0 = vcmp.ge.s32.totalorder %v2995_v14, 2 }
 0x403   :  { %v1299_v12 = vsel %vm1296_vm3, %v1289_v10, %v5237_v54 }
 0x404   :  { %v1285_v46 = vadd.f32 %v1281_v6, %v1256_v21  ;;  %v1286_v34 = vadd.f32 %v1282_v18, %v1257_v22  ;;  %v1301_v4 = vmul.f32 %v2191_v7, %v1299_v12 }
 0x406   :  { %v1309_v1 = vmul.f32 %v5240_v26, %v1301_v4  ;;  %v1293_v45 = vpop.permute.xlu1 %1292 }
 0x407   :  { %v1298_v8 = vsel %vm1296_vm3, %v5237_v54, %v1293_v45 }
 0x408   :  { %v1313_v62 = vadd.f32 %v1309_v1, %v1284_v35  ;;  %v1302_v32 = vmul.f32 %v2192_v44, %v1298_v8  ;;  %v5256_v44 = vld [vmem:[#allocation50_spill] sm:$0xff] }
 0x40a   :  { %v1310_v13 = vmul.f32 %v5240_v26, %v1302_v32  ;;  %v1295_v42 = vpop.permute.xlu1 %1294 }
 0x40b   :  { %v1297_v21 = vsel %vm1296_vm3, %v1293_v45, %v1295_v42  ;;  %v1300_v31 = vsel %vm1296_vm3, %v1295_v42, %v1289_v10  ;;  %vm5252_vm3 = vcmp.lt.s32.totalorder %v2878_v49, 112  ;;  %v5253_v10 = vld [vmem:[#allocation48_spill] sm:$0xff] }
 0x40c   :  { %v1314_v53 = vadd.f32 %v1310_v13, %v1285_v46  ;;  %v1303_v56 = vmul.f32 %v2193_v27, %v1297_v21  ;;  %v1304_v58 = vmul.f32 %v2194_v29, %v1300_v31  ;;  %vm5255_vm6 = vmmov %vm5252_vm3  ;;  %v5259_v27 = vld [vmem:[#allocation51_spill] sm:$0xff]  ;;  %v5260_v13 = vld [vmem:[#allocation40_spill] sm:$0xff] }
 0x40d   :  { %vm5257_vm13 = vmmov %vm5252_vm3 }
 0x40e   :  { %v1311_v51 = vmul.f32 %v5240_v26, %v1303_v56  ;;  %v1312_v2 = vmul.f32 %v5240_v26, %v1304_v58  ;;  %v1320_v55 = vpop.permute.xlu1 %1319  ;;  %vm5258_vm1 = vmmov %vm5252_vm3 }
 0x40f   :  { %v1326_v22 = vsel %vm5246_vm14, %v1320_v55, %v5245_v57  ;;  %v1327_v39 = vsel %vm5248_vm4, %v5247_v3, %v1320_v55  ;;  %vm4345_vm14 = vmand %vm5266_vm2, %vm5265_vm8  ;;  %vm4990_vm4 = vcmp.lt.s32.totalorder %v2997_v17, 14  ;;  %vm4991_vm2 = vcmp.lt.s32.totalorder %v3465_v48, 14 }
 0x410   :  { %v1315_v23 = vadd.f32 %v1311_v51, %v1286_v34  ;;  %v1316_v16 = vadd.f32 %v1312_v2, %v1287_v15  ;;  %v1329_v19 = vmul.f32 %v5249_v11, %v1327_v39  ;;  %v1330_v30 = vmul.f32 %v5250_v43, %v1326_v22  ;;  %v5254_v15 = vld [vmem:[#allocation14_spill] sm:$0xff]  ;;  %vm4374_vm8 = vmand %vm5274_vm0, %vm4990_vm4  ;;  %v5321_v43 = vld [vmem:[#allocation89_spill] sm:$0xff] }
 0x412   :  { %v1337_v63 = vmul.f32 %v5243_v52, %v1329_v19  ;;  %v1338_v61 = vmul.f32 %v5243_v52, %v1330_v30  ;;  %v1346_v28 = vpop.permute.xlu1 %1345  ;;  %v1343_v35 = vadd.f32 %v1339_v5, %v1315_v23  ;;  %v1344_v38 = vadd.f32 %v1340_v25, %v1316_v16  ;;  %v5320_v16 = vld [vmem:[#allocation88_spill] sm:$0xff] }
 0x413   :  { %v1355_v7 = vsel %vm5252_vm3, %v1346_v28, %v5251_v47  ;;  %vm5269_vm3 = vcmp.lt.s32.totalorder %v3063_v9, 15 }
 0x414   :  { %v1341_v6 = vadd.f32 %v1337_v63, %v1313_v62  ;;  %v1342_v18 = vadd.f32 %v1338_v61, %v1314_v53  ;;  %v1357_v54 = vmul.f32 %v5253_v10, %v1355_v7  ;;  %v2211_v10 = vsel %vm4374_vm8, 1.0, %v5019_v24 }
 0x416   :  { %v1365_v12 = vmul.f32 %v5254_v15, %v1357_v54  ;;  %v1350_v46 = vpop.permute.xlu1 %1349 }
 0x417   :  { %v1354_v34 = vsel %vm5255_vm6, %v5251_v47, %v1350_v46  ;;  %vm4356_vm6 = vmand %vm4986_vm5, %vm5269_vm3  ;;  %vm5277_vm3 = vcmp.ge.s32.totalorder %v2905_v36, 2  ;;  %vm5283_vm5 = vcmp.ge.s32.totalorder %v3463_v40, 2 }
 0x418   :  { %v4311_v4 = vadd.f32 %v1365_v12, %v1341_v6  ;;  %v1358_v26 = vmul.f32 %v5256_v44, %v1354_v34  ;;  %vm4401_vm11 = vmand %vm5283_vm5, %vm4991_vm2  ;;  %vm1409_vm5 = vcmp.lt.s32.totalorder %v2878_v49, 110  ;;  %v2209_v47 = vsel %vm4356_vm6, 1.0, %v5019_v24  ;;  %v5298_v6 = vld [vmem:[#allocation73_spill] sm:$0xff] }
 0x41a   :  { %v1366_v1 = vmul.f32 %v5254_v15, %v1358_v26  ;;  %v1352_v45 = vpop.permute.xlu1 %1351 }
 0x41b   :  { %v1353_v8 = vsel %vm5257_vm13, %v1350_v46, %v1352_v45  ;;  %v1356_v62 = vsel %vm5258_vm1, %v1352_v45, %v1346_v28  ;;  %vm4992_vm13 = vcmp.lt.s32.totalorder %v2907_v41, 14  ;;  %vm4365_vm1 = vmand %vm4985_vm9, %vm215_vm10  ;;  %vm5280_vm9 = vcmp.ge.s32.totalorder %v3052_v60, 2 }
 0x41c   :  { %v4319_v32 = vadd.f32 %v1366_v1, %v1342_v18  ;;  %v1359_v29 = vmul.f32 %v5259_v27, %v1353_v8  ;;  %v1360_v42 = vmul.f32 %v5260_v13, %v1356_v62  ;;  %vm4383_vm10 = vmand %vm5277_vm3, %vm4992_vm13  ;;  %vm5286_vm3 = vcmp.ge.s32.totalorder %v2995_v14, 1 }
 0x41d   :  { %vm4393_vm0 = vmand %vm5280_vm9, %vm4989_vm15  ;;  %vm5289_vm9 = vcmp.ge.s32.totalorder %v2905_v36, 1  ;;  %v2207_v28 = vsel %vm4337_vm12, 1.0, %v5019_v24  ;;  %v2210_v7 = vsel %vm4365_vm1, 1.0, %v5019_v24  ;;  %vm1438_vm12 = vcmp.lt.s32.totalorder %v2878_v49, 98 }
 0x41e   :  { %v1367_v21 = vmul.f32 %v5254_v15, %v1359_v29  ;;  %v1368_v31 = vmul.f32 %v5254_v15, %v1360_v42  ;;  %v1374_v53 = vpop.permute.xlu1 %1373  ;;  %vm4409_vm7 = vmand %vm5286_vm3, %vm4990_vm4  ;;  %vm5292_vm3 = vcmp.lt.s32.totalorder %v3063_v9, 14  ;;  %vm5293_vm4 = vcmp.ge.s32.totalorder %v3052_v60, 1  ;;  %v5307_v29 = vld [vmem:[#allocation53_spill] sm:$0xff]  ;;  %v5308_v42 = vld [vmem:[#allocation74_spill] sm:$0xff] }
 0x41f   :  { %vm4417_vm15 = vmand %vm5289_vm9, %vm4992_vm13  ;;  %vm5296_vm9 = vcmp.lt.s32.totalorder %v3465_v48, 14  ;;  %vm5299_vm13 = vcmp.lt.s32.totalorder %v2878_v49, 111  ;;  %v2212_v54 = vsel %vm4383_vm10, 1.0, %v5019_v24  ;;  %v2213_v15 = vsel %vm4393_vm0, 1.0, %v5019_v24 }
 0x420   :  { %v4325_v56 = vadd.f32 %v1367_v21, %v1343_v35  ;;  %v4327_v58 = vadd.f32 %v1368_v31, %v1344_v38  ;;  %vm4431_vm2 = vmand %vm5293_vm4, %vm5292_vm3  ;;  %v2208_v38 = vsel %vm4345_vm14, 1.0, %v5019_v24  ;;  %vm5297_vm4 = vcmp.ge.s32.totalorder %v3463_v40, 1  ;;  %v5326_v35 = vld [vmem:[#allocation75_spill] sm:$0xff] }
 0x421   :  { %vm291_vm3 = vmand %vm5297_vm4, %vm5296_vm9  ;;  %v1383_v18 = vsel %vm5299_vm13, %v1374_v53, %v5298_v6  ;;  %v4467_v46 = vsel %vm4401_vm11, 1.0, %v5019_v24  ;;  %v4472_v34 = vsel %vm4409_vm7, 1.0, %v5019_v24  ;;  %v4477_v44 = vsel %vm4417_vm15, 1.0, %v5019_v24 }
 0x422   :  { %v1378_v51 = vpop.permute.xlu1 %1377  ;;  %vm5300_vm14 = vmmov %vm5299_vm13  ;;  %vm1467_vm11 = vcmp.lt.s32.totalorder %v2878_v49, 97  ;;  %v4489_v8 = vsel %vm4431_vm2, 1.0, %v5019_v24  ;;  %v4492_v62 = vsel %vm291_vm3, 1.0, %v5019_v24  ;;  %vm5303_vm7 = vcmp.lt.s32.totalorder %v2997_v17, 14 }
 0x423   :  { %v1382_v12 = vsel %vm5300_vm14, %v5298_v6, %v1378_v51  ;;  %vm5301_vm6 = vmmov %vm5299_vm13  ;;  %vm5304_vm1 = vcmp.lt.s32.totalorder %v2995_v14, 15  ;;  %v1385_v13 = vmul.f32 %v5307_v29, %v1383_v18  ;;  %vm5312_vm0 = vcmp.lt.s32.totalorder %v3463_v40, 15 }
 0x424   :  { %vm5302_vm13 = vmmov %vm5301_vm6  ;;  %vm5316_vm4 = vcmp.lt.s32.totalorder %v2907_v41, 14  ;;  %vm5317_vm3 = vcmp.lt.s32.totalorder %v2905_v36, 15 }
 0x425   :  { %vm4498_vm15 = vmand %vm5304_vm1, %vm5303_vm7  ;;  %vm5325_vm1 = vcmp.lt.s32.totalorder %v3052_v60, 15 }
 0x426   :  { %v1380_v2 = vpop.permute.xlu1 %1379  ;;  %vm5309_vm8 = vmmov %vm5303_vm7  ;;  %v4566_v18 = vsel %vm4498_vm15, 1.0, %v5019_v24  ;;  %vm1525_vm15 = vcmp.lt.s32.totalorder %v2878_v49, 95 }
 0x427   :  { %v1381_v1 = vsel %vm5301_vm6, %v1378_v51, %v1380_v2  ;;  %v1384_v45 = vsel %vm5302_vm13, %v1380_v2, %v1374_v53  ;;  %v4509_v31 = vsel %vm5309_vm8, 1.0, %v5019_v24  ;;  %vm5310_vm2 = vmmov %vm5296_vm9  ;;  %v5315_v2 = vld [vmem:[#allocation55_spill] sm:$0xff]  ;;  %vm1496_vm6 = vcmp.lt.s32.totalorder %v2878_v49, 96 }
 0x428   :  { %v4514_v53 = vsel %vm5310_vm2, 1.0, %v5019_v24  ;;  %vm5311_vm10 = vmmov %vm5310_vm2  ;;  %v1386_v25 = vmul.f32 %v5315_v2, %v1382_v12  ;;  %v1387_v19 = vmul.f32 %v5320_v16, %v1381_v1  ;;  %v1388_v30 = vmul.f32 %v5321_v43, %v1384_v45 }
 0x429   :  { %vm4520_vm9 = vmand %vm5312_vm0, %vm5311_vm10  ;;  %vm5327_vm2 = vcmp.lt.s32.totalorder %v2997_v17, 14  ;;  %vm5328_vm10 = vcmp.lt.s32.totalorder %v2995_v14, 14  ;;  %v5333_v14 = vld [vmem:[#allocation13_spill] sm:$0xff] }
 0x42a   :  { %v1402_v55 = vpop.permute.xlu1 %1401  ;;  %vm4536_vm14 = vmand %vm5317_vm3, %vm5316_vm4  ;;  %v4571_v12 = vsel %vm4520_vm9, 1.0, %v5019_v24  ;;  %v1393_v17 = vmul.f32 %v5333_v14, %v1385_v13  ;;  %v5336_v13 = vld [vmem:[#allocation15_spill] sm:$0xff] }
 0x42b   :  { %v1412_v21 = vsel %vm1409_vm5, %v1402_v55, %v5308_v42  ;;  %vm5322_vm13 = vmmov %vm5316_vm4 }
 0x42c   :  { %vm4577_vm0 = vmand %vm5328_vm10, %vm5327_vm2  ;;  %vm5352_vm10 = vcmask 64512  }
 0x42d   :  { %vm5331_vm9 = vmmov %vm5316_vm4  ;;  %vm5332_vm4 = vcmp.lt.s32.totalorder %v2905_v36, 14 }
 0x42e   :  { %v1406_v20 = vpop.permute.xlu1 %1405  ;;  %vm321_vm3 = vmand %vm5332_vm4, %vm5331_vm9 }
 0x42f   :  { %v1411_v57 = vsel %vm1409_vm5, %v5308_v42, %v1406_v20  ;;  %v1394_v42 = vmul.f32 %v5333_v14, %v1386_v25 }
 0x430   :  { %v1415_v1 = vmul.f32 %v2208_v38, %v1411_v57  ;;  %v2224_v38 = vsel %vm4536_vm14, 1.0, %v5019_v24  ;;  %v2227_v57 = vsel %vm4577_vm0, 1.0, %v5019_v24  ;;  %vm1554_vm14 = vcmp.lt.s32.totalorder %v2878_v49, 94  ;;  %vm5353_vm0 = vmmov %vm5352_vm10 }
 0x432   :  { %v1408_v52 = vpop.permute.xlu1 %1407 }
 0x433   :  { %v1410_v3 = vsel %vm1409_vm5, %v1406_v20, %v1408_v52  ;;  %v1413_v39 = vsel %vm1409_vm5, %v1408_v52, %v1402_v55  ;;  %v4548_v55 = vsel %vm5322_vm13, 1.0, %v5019_v24  ;;  %vm5323_vm5 = vcmp.lt.s32.totalorder %v3063_v9, 14 }
 0x434   :  { %v4553_v20 = vsel %vm5323_vm5, 1.0, %v5019_v24  ;;  %vm5324_vm7 = vmmov %vm5323_vm5  ;;  %v1414_v52 = vmul.f32 %v2207_v28, %v1412_v21  ;;  %v1416_v45 = vmul.f32 %v2209_v47, %v1410_v3  ;;  %v1417_v29 = vmul.f32 %v2210_v7, %v1413_v39 }
 0x435   :  { %vm310_vm8 = vmand %vm5325_vm1, %vm5324_vm7  ;;  %v1395_v7 = vmul.f32 %v5333_v14, %v1387_v19  ;;  %v1396_v21 = vmul.f32 %v5333_v14, %v1388_v30  ;;  %v1423_v3 = vmul.f32 %v5336_v13, %v1415_v1  ;;  %vm5337_vm1 = vcmp.lt.s32.totalorder %v3465_v48, 14  ;;  %v5340_v30 = vld [vmem:[#allocation76_spill] sm:$0xff] }
 0x436   :  { %v4329_v5 = vpop.permute.xlu1 %1430  ;;  %v4596_v47 = vsel %vm310_vm8, 1.0, %v5019_v24  ;;  %vm5334_vm13 = vmmov %vm5323_vm5  ;;  %vm5335_vm5 = vcmp.lt.s32.totalorder %v3052_v60, 14  ;;  %v1422_v2 = vmul.f32 %v5336_v13, %v1414_v52  ;;  %v1425_v39 = vmul.f32 %v5336_v13, %v1417_v29 }
 0x437   :  { %v1441_v6 = vsel %vm1438_vm12, %v4329_v5, %v5326_v35  ;;  %vm322_vm7 = vmand %vm5335_vm5, %vm5334_vm13  ;;  %vm5338_vm8 = vcmp.lt.s32.totalorder %v3463_v40, 14  ;;  %v1397_v60 = vadd.f32 %v1393_v17, %v4311_v4  ;;  %v1399_v19 = vadd.f32 %v1395_v7, %v4325_v56 }
 0x438   :  { %v1443_v51 = vmul.f32 %v2211_v10, %v1441_v6  ;;  %v4613_v10 = vsel %vm321_vm3, 1.0, %v5019_v24  ;;  %vm323_vm2 = vmand %vm5338_vm8, %vm5337_vm1  ;;  %v4630_v16 = vsel %vm322_vm7, 1.0, %v5019_v24  ;;  %v1400_v43 = vadd.f32 %v1396_v21, %v4327_v58 }
 0x439   :  { %v4646_v56 = vsel %vm323_vm2, 1.0, %v5019_v24  ;;  %v1426_v58 = vadd.f32 %v1422_v2, %v1397_v60 }
 0x43a   :  { %v4331_v37 = vpop.permute.xlu1 %1434  ;;  %v1429_v6 = vadd.f32 %v1425_v39, %v1400_v43 }
 0x43b   :  { %v1440_v27 = vsel %vm1438_vm12, %v5326_v35, %v4331_v37 }
 0x43c   :  { %v1444_v25 = vmul.f32 %v2212_v54, %v1440_v27  ;;  %v1398_v54 = vadd.f32 %v1394_v42, %v4319_v32 }
 0x43e   :  { %v4350_v22 = vpop.permute.xlu1 %1436  ;;  %v1427_v52 = vadd.f32 %v1423_v3, %v1398_v54 }
 0x43f   :  { %v1439_v36 = vsel %vm1438_vm12, %v4331_v37, %v4350_v22  ;;  %v1424_v37 = vmul.f32 %v5336_v13, %v1416_v45  ;;  %v1442_v9 = vsel %vm1438_vm12, %v4350_v22, %v4329_v5  ;;  %v5339_v5 = vld [vmem:[#allocation16_spill] sm:$0xff]  ;;  %v5341_v45 = vld [vmem:[#allocation77_spill] sm:$0xff]  ;;  %vm2503_vm12 = vmmov 0  }
 0x440   :  { %v1445_v23 = vmul.f32 %v2213_v15, %v1439_v36  ;;  %v1451_v22 = vmul.f32 %v5339_v5, %v1443_v51  ;;  %v1452_v4 = vmul.f32 %v5339_v5, %v1444_v25  ;;  %v1446_v32 = vmul.f32 %v4467_v46, %v1442_v9  ;;  %v5342_v51 = vld [vmem:[#allocation84_spill] sm:$0xff]  ;;  %v5343_v13 = vld [vmem:[#allocation81_spill] sm:$0xff]  ;;  %2250 = vmatprep.mubr.msk.f32.mxu0 %vm2503_vm12, %v5019_v24 }
 0x441   :  { %v1428_v35 = vadd.f32 %v1424_v37, %v1399_v19  ;;  %v5344_v37 = vld [vmem:[#allocation18_spill] sm:$0xff] }
 0x442   :  { %v4387_v11 = vpop.permute.xlu1 %1459  ;;  %v1453_v28 = vmul.f32 %v5339_v5, %v1445_v23  ;;  %v1455_v27 = vadd.f32 %v1451_v22, %v1426_v58  ;;  %v1456_v7 = vadd.f32 %v1452_v4, %v1427_v52  ;;  %v1454_v21 = vmul.f32 %v5339_v5, %v1446_v32  ;;  %v5345_v23 = vld [vmem:[#allocation31_spill] sm:$0xff]  ;;  %v5348_v58 = vld [vmem:[#allocation22_spill] sm:$0xff] }
 0x443   :  { %v1470_v48 = vsel %vm1467_vm11, %v4387_v11, %v5340_v30  ;;  %v5346_v5 = vld [vmem:[#allocation47_spill] sm:$0xff] }
 0x444   :  { %v1472_v1 = vmul.f32 %v4472_v34, %v1470_v48  ;;  %v1457_v3 = vadd.f32 %v1453_v28, %v1428_v35  ;;  %v1458_v22 = vadd.f32 %v1454_v21, %v1429_v6 }
 0x446   :  { %v4421_v61 = vpop.permute.xlu1 %1463  ;;  %v1480_v39 = vmul.f32 %v5344_v37, %v1472_v1 }
 0x447   :  { %v1469_v15 = vsel %vm1467_vm11, %v5340_v30, %v4421_v61  ;;  %v5347_v30 = vld [vmem:[#allocation20_spill] sm:$0xff] }
 0x448   :  { %v1473_v14 = vmul.f32 %v4477_v44, %v1469_v15 }
 0x44a   :  { %v4479_v26 = vpop.permute.xlu1 %1465  ;;  %v1481_v54 = vmul.f32 %v5344_v37, %v1473_v14 }
 0x44b   :  { %v1468_v17 = vsel %vm1467_vm11, %v4421_v61, %v4479_v26  ;;  %v1471_v34 = vsel %vm1467_vm11, %v4479_v26, %v4387_v11  ;;  %vm1727_vm11 = vcmask 7168  }
 0x44c   :  { %v1579_v11 = vpop.xlane.xlu0 %1578  ;;  %v1474_v9 = vmul.f32 %v4489_v8, %v1468_v17  ;;  %v1475_v60 = vmul.f32 %v4492_v62, %v1471_v34  ;;  %v1485_v32 = vadd.f32 %v1481_v54, %v1456_v7 }
 0x44e   :  { %v4543_v63 = vpop.permute.xlu1 %1488  ;;  %v1482_v4 = vmul.f32 %v5344_v37, %v1474_v9 }
 0x44f   :  { %v1499_v46 = vsel %vm1496_vm6, %v4543_v63, %v5341_v45  ;;  %v1500_v61 = vsel %vm1496_vm6, %v5343_v13, %v4543_v63 }
 0x450   :  { %v1501_v2 = vmul.f32 %v4509_v31, %v1499_v46  ;;  %v1486_v34 = vadd.f32 %v1482_v4, %v1457_v3 }
 0x452   :  { %v1493_v41 = vpop.permute.xlu1 %1492  ;;  %v1509_v48 = vmul.f32 %v5347_v30, %v1501_v2  ;;  %v1597_v15 = vpop.xlane.xlu0 %1596 }
 0x453   :  { %v1498_v29 = vsel %vm1496_vm6, %v5341_v45, %v1493_v41  ;;  %v1497_v26 = vsel %vm1496_vm6, %v1493_v41, %v5343_v13  ;;  %v1504_v41 = vmul.f32 %v4514_v53, %v1500_v61  ;;  %v1483_v53 = vmul.f32 %v5344_v37, %v1475_v60 }
 0x454   :  { %v1502_v25 = vmul.f32 %v4548_v55, %v1498_v29  ;;  %v1503_v55 = vmul.f32 %v4553_v20, %v1497_v26  ;;  %v1603_v45 = vmul.f32 0.001953125, %v1579_v11  ;;  %vm1732_vm6 = vcmask 130048  }
 0x455   :  { %v1512_v1 = vmul.f32 %v5347_v30, %v1504_v41 }
 0x456   :  { %v1518_v40 = vpop.permute.xlu1 %1517 }
 0x457   :  { %v1528_v36 = vsel %vm1525_vm15, %v1518_v40, %v5342_v51  ;;  %v1529_v31 = vsel %vm1525_vm15, %v5345_v23, %v1518_v40  ;;  %v1510_v40 = vmul.f32 %v5347_v30, %v1502_v25 }
 0x458   :  { %v1530_v63 = vmul.f32 %v4566_v18, %v1528_v36  ;;  %v1533_v20 = vmul.f32 %v4571_v12, %v1529_v31 }
 0x459   :  { %v1514_v12 = vadd.f32 %v1510_v40, %v1485_v32 }
 0x45a   :  { %v1522_v42 = vpop.permute.xlu1 %1521  ;;  %v1538_v52 = vmul.f32 %v5348_v58, %v1530_v63  ;;  %v1541_v7 = vmul.f32 %v5348_v58, %v1533_v20 }
 0x45b   :  { %v1527_v44 = vsel %vm1525_vm15, %v5342_v51, %v1522_v42  ;;  %v1526_v8 = vsel %vm1525_vm15, %v1522_v42, %v5345_v23  ;;  %v1605_v42 = vmul.f32 0.001953125, %v1597_v15 }
 0x45c   :  { %v1531_v19 = vmul.f32 %v2224_v38, %v1527_v44  ;;  %v1484_v38 = vadd.f32 %v1480_v39, %v1455_v27  ;;  %v1532_v35 = vmul.f32 %v4596_v47, %v1526_v8  ;;  %v5349_v27 = vld [vmem:[#allocation24_spill] sm:$0xff]  ;;  %v1487_v47 = vadd.f32 %v1483_v53, %v1458_v22 }
 0x45d   :  { %v1607_v39 = vmul.f32 %v1603_v45, %v1603_v45 }
 0x45e   :  { %v1547_v43 = vpop.permute.xlu1 %1546  ;;  %v1539_v6 = vmul.f32 %v5348_v58, %v1531_v19  ;;  %v1513_v29 = vadd.f32 %v1509_v48, %v1484_v38  ;;  %v1540_v51 = vmul.f32 %v5348_v58, %v1532_v35  ;;  %v1516_v61 = vadd.f32 %v1512_v1, %v1487_v47 }
 0x45f   :  { %v1557_v62 = vsel %vm1554_vm14, %v1547_v43, %v5346_v5  ;;  %v1609_v49 = vsub.f32 %v1605_v42, %v1607_v39 }
 0x460   :  { %v1559_v18 = vmul.f32 %v2227_v57, %v1557_v62  ;;  %v1511_v57 = vmul.f32 %v5347_v30, %v1503_v55  ;;  %v1542_v21 = vadd.f32 %v1538_v52, %v1513_v29  ;;  %v1543_v36 = vadd.f32 %v1539_v6, %v1514_v12 }
 0x461   :  { %v1545_v9 = vadd.f32 %v1541_v7, %v1516_v61  ;;  %v1611_v8 = vmax.f32 %v1609_v49, 0.0 }
 0x462   :  { %v1551_v28 = vpop.permute.xlu1 %1550  ;;  %v1567_v14 = vmul.f32 %v5349_v27, %v1559_v18  ;;  %v1515_v2 = vadd.f32 %v1511_v57, %v1486_v34  ;;  %v4747_v18 = vld [vmem:[%s4852_s3] sm:$0xff]  ;;  %v5350_v57 = vmov 0  }
 0x463   :  { %v1556_v46 = vsel %vm1554_vm14, %v5346_v5, %v1551_v28  ;;  %v1613_v48 = vadd.f32 0.001, %v1611_v8 }
 0x464   :  { %v1560_v17 = vmul.f32 %v4613_v10, %v1556_v46  ;;  %v4720_v26 = vadd.f32 %v1567_v14, %v1542_v21  ;;  %v1544_v60 = vadd.f32 %v1540_v51, %v1515_v2 }
 0x465   :  { %2396 = vrsqrt.f32 %v1613_v48 }
 0x466   :  { %v1568_v44 = vmul.f32 %v5349_v27, %v1560_v17  ;;  %v1553_v13 = vpop.permute.xlu1 %1552 }
 0x467   :  { %v1555_v11 = vsel %vm1554_vm14, %v1551_v28, %v1553_v13  ;;  %v1558_v10 = vsel %vm1554_vm14, %v1553_v13, %v1547_v43 }
 0x468   :  { %v4722_v25 = vadd.f32 %v1568_v44, %v1543_v36  ;;  %v1561_v3 = vmul.f32 %v4630_v16, %v1555_v11  ;;  %v1562_v37 = vmul.f32 %v4646_v56, %v1558_v10  ;;  %v1589_v56 = vmul.f32 %v4720_v26, %v4720_v26 }
 0x46a   :  { %v1569_v54 = vmul.f32 %v5349_v27, %v1561_v3  ;;  %v1570_v23 = vmul.f32 %v5349_v27, %v1562_v37  ;;  %v1590_v31 = vmul.f32 %v4722_v25, %v4722_v25  ;;  %v1580_v16 = vadd.f32 %v4722_v25, %v4720_v26 }
 0x46b   :  { %v5351_v27 = vmov 3  }
 0x46c   :  { %v4730_v63 = vadd.f32 %v1569_v54, %v1544_v60  ;;  %v4732_v19 = vadd.f32 %v1570_v23, %v1545_v9  ;;  %v1598_v55 = vadd.f32 %v1590_v31, %v1589_v56 }
 0x46e   :  { %v1581_v43 = vadd.f32 %v1580_v16, %v4730_v63  ;;  %v1591_v41 = vmul.f32 %v4730_v63, %v4730_v63  ;;  %v1592_v62 = vmul.f32 %v4732_v19, %v4732_v19 }
 0x46f   :  { %v2397_v40 = vpop.eup %2396 }
 0x470   :  { %v1582_v5 = vadd.f32 %v1581_v43, %v4732_v19  ;;  %v1599_v22 = vadd.f32 %v1598_v55, %v1591_v41  ;;  %v1617_v38 = vmul.f32 %v4747_v18, %v2397_v40 }
 0x472   :  { %1583 = vadd.xlane.f32.xlu1 %v1582_v5  ;;  %v1600_v30 = vadd.f32 %v1599_v22, %v1592_v62  ;;  %v1619_v4 = vmul.f32 %v1617_v38, %v1603_v45  ;;  %v2447_v45 = vld [vmem:[%s4852_s3 + $0x8] sm:$0xff] }
 0x474   :  { %1601 = vadd.xlane.f32.xlu0 %v1600_v30 }
 0x48a   :  { %1623 = vrot.lane.b32.xlu0 %v1619_v4, %s2474_s8 }
 0x4ff   :  { %v1584_v53 = vpop.xlane.xlu1 %1583 }
 0x500   :  { %v1604_v20 = vmul.f32 0.001953125, %v1584_v53 }
 0x501   :  { %v1602_v32 = vpop.xlane.xlu0 %1601 }
 0x502   :  { %v1608_v15 = vmul.f32 %v1604_v20, %v1604_v20  ;;  %v1606_v58 = vmul.f32 0.001953125, %v1602_v32 }
 0x504   :  { %v1610_v52 = vsub.f32 %v1606_v58, %v1608_v15 }
 0x505   :  { %v1624_v35 = vpop.permute.xlu0 %1623 }
 0x506   :  { %v1612_v6 = vmax.f32 %v1610_v52, 0.0  ;;  %v1629_v28 = vsub.f32 %v4747_v18, %v1624_v35 }
 0x508   :  { %v1614_v1 = vadd.f32 0.001, %v1612_v6  ;;  %1651 = vperm.xlu0 %2351, %v1629_v28  }
 0x50a   :  { %2398 = vrsqrt.f32 %v1614_v1 }
 0x50c   :  { %2355 = vset.pattern.permute.xlu0 %v5350_v57 }
 0x514   :  { %v2399_v46 = vpop.eup %2398 }
 0x515   :  { %v1618_v29 = vmul.f32 %v2447_v45, %v2399_v46 }
 0x517   :  { %v1620_v12 = vmul.f32 %v1618_v29, %v1604_v20 }
 0x519   :  { %1625 = vrot.lane.b32.xlu1 %v1620_v12, %s2474_s8 }
 0x51d   :  { %1633 = vperm.xlu1 %2353, %v1617_v38  }
 0x521   :  { %1638 = vperm.xlu1 %2353, %v1618_v29  }
 0x525   :  { %2354 = vset.pattern.permute.xlu1 %v5351_v27 }
 0x587   :  { %v1652_v51 = vpop.permute.xlu0 %1651 }
 0x58b   :  { %v1626_v14 = vpop.permute.xlu1 %1625 }
 0x58c   :  { %v1630_v17 = vsub.f32 %v2447_v45, %v1626_v14 }
 0x58e   :  { %1656 = vperm.xlu1 %2354, %v1630_v17  }
 0x592   :  { %2356 = vset.pattern.permute.xlu1 %v5350_v57 }
 0x59c   :  { %v1634_v34 = vpop.permute.xlu1 %1633 }
 0x59d   :  { %v1641_v47 = vmul.f32 %v1634_v34, %v3349_v33  ;;  %v1642_v42 = vmul.f32 %v1634_v34, %v3367_v0  ;;  %v1643_v7 = vmul.f32 %v1634_v34, %v3898_v50  ;;  %v1644_v21 = vmul.f32 %v1634_v34, %v3905_v59 }
 0x59f   :  { %v1659_v36 = vadd.f32 %v1652_v51, %v1641_v47  ;;  %v1660_v44 = vadd.f32 %v1652_v51, %v1642_v42  ;;  %v1661_v13 = vadd.f32 %v1652_v51, %v1643_v7  ;;  %v1662_v61 = vadd.f32 %v1652_v51, %v1644_v21 }
 0x5a0   :  { %v1639_v48 = vpop.permute.xlu1 %1638 }
 0x5a1   :  { %v1667_v2 = vsub.f32 0.0, %v1659_v36  ;;  %v1668_v11 = vsub.f32 0.0, %v1660_v44  ;;  %v1669_v10 = vsub.f32 0.0, %v1661_v13  ;;  %v1670_v3 = vsub.f32 0.0, %v1662_v61 }
 0x5a2   :  { %v1645_v40 = vmul.f32 %v1639_v48, %v4720_v26  ;;  %v1646_v38 = vmul.f32 %v1639_v48, %v4722_v25  ;;  %v1647_v4 = vmul.f32 %v1639_v48, %v4730_v63  ;;  %v1648_v53 = vmul.f32 %v1639_v48, %v4732_v19 }
 0x5a3   :  { %v1675_v37 = vmul.f32 1.442695, %v1667_v2  ;;  %v1677_v39 = vmul.f32 1.442695, %v1668_v11  ;;  %v1679_v9 = vmul.f32 1.442695, %v1669_v10 }
 0x5a4   :  { %v1681_v60 = vmul.f32 1.442695, %v1670_v3  ;;  %v2502_v2 = vmov 0.0|0.0  }
 0x5a5   :  { %2400 = vpow2.f32 %v1675_v37  ;;  %2258 = vmatprep.subr.bf16.mxu0 %v2502_v2 }
 0x5a6   :  { %2402 = vpow2.f32 %v1677_v39 }
 0x5a7   :  { %2404 = vpow2.f32 %v1679_v9 }
 0x5a8   :  { %2406 = vpow2.f32 %v1681_v60 }
 0x5af   :  { %v2401_v33 = vpop.eup %2400 }
 0x5b0   :  { %v2403_v0 = vpop.eup %2402  ;;  %v1691_v59 = vadd.f32 1.0, %v2401_v33 }
 0x5b1   :  { %v2405_v50 = vpop.eup %2404  ;;  %v1692_v54 = vadd.f32 1.0, %v2403_v0 }
 0x5b2   :  { %v2407_v23 = vpop.eup %2406  ;;  %v1693_v31 = vadd.f32 1.0, %v2405_v50  ;;  %2408 = vrcp.f32 %v1691_v59  ;;  %v19_v59 = vld [vmem:[%s4850_s1 + $0x10] sm:$0xff]  ;;  %v20_v50 = vld [vmem:[%s4850_s1 + $0x18] sm:$0xff] }
 0x5b3   :  { %v1694_v49 = vadd.f32 1.0, %v2407_v23  ;;  %2410 = vrcp.f32 %v1692_v54  ;;  %2255 = vmatprep.mubr.msk.f32.mxu1 %vm5352_vm10, %v20_v50 }
 0x5b4   :  { %2412 = vrcp.f32 %v1693_v31 }
 0x5b5   :  { %2414 = vrcp.f32 %v1694_v49 }
 0x5bc   :  { %v2409_v16 = vpop.eup %2408 }
 0x5bd   :  { %v2411_v56 = vpop.eup %2410  ;;  %v4763_v43 = vmul.f32 %v2409_v16, %v1659_v36 }
 0x5be   :  { %v2413_v41 = vpop.eup %2412  ;;  %v4765_v55 = vmul.f32 %v2411_v56, %v1660_v44 }
 0x5bf   :  { %v2415_v8 = vpop.eup %2414  ;;  %v4767_v5 = vmul.f32 %v2413_v41, %v1661_v13 }
 0x5c0   :  { %v4769_v62 = vmul.f32 %v2415_v8, %v1662_v61  ;;  %v1715_v22 = vadd.f32 %v4765_v55, %v4763_v43 }
 0x5c2   :  { %v1721_v30 = vadd.f32 %v4769_v62, %v4767_v5  ;;  %1716 = vadd.xlane.f32.xlu1 %v1715_v22  ;;  %v21_v22 = vld [vmem:[%s4850_s1 + $0x20] sm:$0xff] }
 0x5c4   :  { %1722 = vadd.xlane.f32.xlu0 %v1721_v30 }
 0x60d   :  { %v1657_v20 = vpop.permute.xlu1 %1656 }
 0x60e   :  { %v1663_v32 = vadd.f32 %v1657_v20, %v1645_v40  ;;  %v1664_v15 = vadd.f32 %v1657_v20, %v1646_v38  ;;  %v1665_v58 = vadd.f32 %v1657_v20, %v1647_v4  ;;  %v1666_v52 = vadd.f32 %v1657_v20, %v1648_v53 }
 0x610   :  { %v1671_v35 = vsub.f32 0.0, %v1663_v32  ;;  %v1672_v6 = vsub.f32 0.0, %v1664_v15  ;;  %v1673_v28 = vsub.f32 0.0, %v1665_v58  ;;  %v1674_v1 = vsub.f32 0.0, %v1666_v52 }
 0x612   :  { %v1683_v57 = vmul.f32 1.442695, %v1671_v35  ;;  %v1685_v46 = vmul.f32 1.442695, %v1672_v6  ;;  %v1687_v45 = vmul.f32 1.442695, %v1673_v28 }
 0x613   :  { %v1689_v29 = vmul.f32 1.442695, %v1674_v1  ;;  %v5354_v6 = vmov 5   ;;  %v5356_v28 = vmov 4  }
 0x614   :  { %2416 = vpow2.f32 %v1683_v57 }
 0x615   :  { %2418 = vpow2.f32 %v1685_v46 }
 0x616   :  { %2420 = vpow2.f32 %v1687_v45 }
 0x617   :  { %2422 = vpow2.f32 %v1689_v29 }
 0x61e   :  { %v2417_v26 = vpop.eup %2416 }
 0x61f   :  { %v2419_v25 = vpop.eup %2418  ;;  %v1695_v63 = vadd.f32 1.0, %v2417_v26 }
 0x620   :  { %v2421_v19 = vpop.eup %2420  ;;  %v1696_v12 = vadd.f32 1.0, %v2419_v25 }
 0x621   :  { %v2423_v27 = vpop.eup %2422  ;;  %v1697_v14 = vadd.f32 1.0, %v2421_v19  ;;  %2424 = vrcp.f32 %v1695_v63 }
 0x622   :  { %v1698_v17 = vadd.f32 1.0, %v2423_v27  ;;  %2426 = vrcp.f32 %v1696_v12  ;;  %v22_v12 = vld [vmem:[%s4850_s1 + $0x28] sm:$0xff] }
 0x623   :  { %2428 = vrcp.f32 %v1697_v14 }
 0x624   :  { %2430 = vrcp.f32 %v1698_v17 }
 0x62b   :  { %v2425_v34 = vpop.eup %2424 }
 0x62c   :  { %v2427_v47 = vpop.eup %2426  ;;  %v4779_v42 = vmul.f32 %v2425_v34, %v1663_v32 }
 0x62d   :  { %v2429_v7 = vpop.eup %2428  ;;  %v4781_v21 = vmul.f32 %v2427_v47, %v1664_v15 }
 0x62e   :  { %v2431_v51 = vpop.eup %2430  ;;  %v4785_v44 = vmul.f32 %v2429_v7, %v1665_v58 }
 0x62f   :  { %v1718_v36 = vadd.f32 %v4781_v21, %v4779_v42  ;;  %v4787_v13 = vmul.f32 %v2431_v51, %v1666_v52 }
 0x631   :  { %1719 = vadd.xlane.f32.xlu0 %v1718_v36  ;;  %v1724_v61 = vadd.f32 %v4787_v13, %v4785_v44 }
 0x635   :  { %1725 = vadd.xlane.f32.xlu0 %v1724_v61 }
 0x64f   :  { %v1717_v10 = vpop.xlane.xlu1 %1716 }
 0x651   :  { %v1723_v11 = vpop.xlane.xlu0 %1722 }
 0x652   :  { %v1728_v37 = vsel %vm1727_vm11, %v1717_v10, %v1723_v11 }
 0x653   :  { %v1730_v60 = vmul.f32 0.00390625, %v1728_v37 }
 0x6be   :  { %v1720_v3 = vpop.xlane.xlu0 %1719 }
 0x6c2   :  { %v1726_v39 = vpop.xlane.xlu0 %1725 }
 0x6c3   :  { %v1729_v9 = vsel %vm1727_vm11, %v1720_v3, %v1726_v39 }
 0x6c4   :  { %v1731_v33 = vmul.f32 0.00390625, %v1729_v9 }
 0x6c6   :  { %v2259_v0 = vpack.c.bf16 %v1731_v33, %v1730_v60 }
 0x6c8   :  { %2260 = vmatpush3.bf16.msra.mxu0 %v2259_v0 }
 0x6cb   :  { %2251 = vmatmul.mubr.msk.f32.vlgmr.msra.gmra.mrb[4].mxu0 %vm1732_vm6, %v19_v59 }
 0x6cc   :  { %1999 = vmatprep.mubr.f32.mxu0 %v5019_v24 }
 0x79e   :  { %v1802_v54 = vpop.f32.mrb[4].mxu0 }
 0x79f   :  { %v1806_v23 = vsub.f32 0.0, %v1802_v54  ;;  %v2252_v31 = vpop.f32.mrb[5].mxu0 }
 0x7a1   :  { %v1807_v49 = vmul.f32 1.442695, %v1806_v23 }
 0x7a3   :  { %2432 = vpow2.f32 %v1807_v49 }
 0x7ad   :  { %v2433_v16 = vpop.eup %2432 }
 0x7ae   :  { %v1809_v56 = vadd.f32 1.0, %v2433_v16 }
 0x7b0   :  { %2434 = vrcp.f32 %v1809_v56 }
 0x7ba   :  { %v2435_v41 = vpop.eup %2434 }
 0x7bb   :  { %v1812_v8 = vmul.f32 %v2435_v41, %v1802_v54 }
 0x7bd   :  { %2253 = vmatprep.subr.mxu1 %v1812_v8 }
 0x7be   :  { %2254 = vmatpush3.msra.mxu1 %v1812_v8 }
 0x7bf   :  { %2256 = vmatmul.mubr.msk.f32.vlgmr.msra.gmra.mrb[4].mxu1 %vm5353_vm0, %v21_v22 }
 0x7c0   :  { %2070 = vmatprep.mubr.f32.mxu1 %v5019_v24  ;;  %v5355_v24 = vmov 1  }
 0x892   :  { %v2257_v30 = vpop.f32.mrb[4].mxu1 }
 0x893   :  { %v1895_v48 = vsub.f32 0.0, %v2257_v30  ;;  %v1885_v40 = vpop.f32.mrb[5].mxu1 }
 0x894   :  { %v1894_v38 = vsub.f32 0.0, %v1885_v40 }
 0x895   :  { %v1898_v4 = vmul.f32 1.442695, %v1895_v48 }
 0x896   :  { %v1896_v53 = vmul.f32 1.442695, %v1894_v38 }
 0x897   :  { %2436 = vpow2.f32 %v1898_v4 }
 0x898   :  { %2438 = vpow2.f32 %v1896_v53 }
 0x8a1   :  { %v2437_v20 = vpop.eup %2436 }
 0x8a2   :  { %v2439_v32 = vpop.eup %2438  ;;  %v1901_v15 = vadd.f32 1.0, %v2437_v20  ;;  %v2448_v20 = vld [vmem:[%s4849_s0] sm:$0xff] }
 0x8a3   :  { %v1900_v58 = vadd.f32 1.0, %v2439_v32 }
 0x8a4   :  { %2440 = vrcp.f32 %v1901_v15 }
 0x8a5   :  { %2442 = vrcp.f32 %v1900_v58  ;;  %v2450_v58 = vld [vmem:[%s4849_s0 + $0x10] sm:$0xff] }
 0x8ae   :  { %v2441_v52 = vpop.eup %2440 }
 0x8af   :  { %v2443_v35 = vpop.eup %2442  ;;  %1913 = vperm.xlu0 %2355, %v2441_v52  }
 0x8b0   :  { %1908 = vperm.xlu1 %2356, %v2443_v35  }
 0x8b3   :  { %2359 = vset.pattern.permute.xlu0 %v5354_v6 }
 0x8b4   :  { %2357 = vset.pattern.permute.xlu1 %v5355_v24 }
 0x8b5   :  { %1921 = vperm.xlu1 %2357, %v2443_v35   ;;  %v2451_v35 = vld [vmem:[%s4849_s0 + $0x18] sm:$0xff] }
 0x8b9   :  { %1925 = vperm.xlu1 %2357, %v2441_v52  }
 0x8bd   :  { %2358 = vset.pattern.permute.xlu1 %v5356_v28 }
 0x92e   :  { %v1914_v1 = vpop.permute.xlu0 %1913 }
 0x92f   :  { %v1918_v57 = vmul.f32 %v1914_v1, %v4779_v42  ;;  %v1919_v46 = vmul.f32 %v1914_v1, %v4781_v21  ;;  %v1909_v45 = vpop.permute.xlu1 %1908 }
 0x930   :  { %v1916_v29 = vmul.f32 %v1909_v45, %v4763_v43  ;;  %v1917_v26 = vmul.f32 %v1909_v45, %v4765_v55 }
 0x932   :  { %v2261_v25 = vpack.c.bf16 %v1919_v46, %v1917_v26  ;;  %v2263_v63 = vpack.c.bf16 %v1918_v57, %v1916_v29 }
 0x934   :  { %2262 = vmatprep.subr.bf16.mxu0 %v2261_v25  ;;  %v1922_v19 = vpop.permute.xlu1 %1921 }
 0x935   :  { %2264 = vmatpush1.bf16.msra.mxu0 %v2263_v63  ;;  %v1928_v14 = vmul.f32 %v1922_v19, %v4767_v5  ;;  %v1929_v17 = vmul.f32 %v1922_v19, %v4769_v62 }
 0x938   :  { %v1926_v27 = vpop.permute.xlu1 %1925  ;;  %2238 = vmatmul.mubr.msk.f32.vlgmr.msra.gmra.mrb[6].mxu0 %vm1732_vm6, %v22_v12 }
 0x939   :  { %v1930_v43 = vmul.f32 %v1926_v27, %v4785_v44  ;;  %v1931_v55 = vmul.f32 %v1926_v27, %v4787_v13 }
 0x93b   :  { %v2265_v34 = vpack.c.bf16 %v1931_v55, %v1929_v17  ;;  %v2267_v47 = vpack.c.bf16 %v1930_v43, %v1928_v14 }
 0x93d   :  { %2266 = vmatprep.subr.bf16.mxu1 %v2265_v34 }
 0x93e   :  { %2268 = vmatpush1.bf16.msra.mxu1 %v2267_v47 }
 0x941   :  { %2239 = vmatmul.mubr.msk.f32.vlgmr.msra.gmra.mrb[6].mxu1 %vm1732_vm6, %v22_v12 }
 0xa0b   :  { %v2001_v42 = vpop.f32.mrb[6].mxu0 }
 0xa0c   :  { %v2082_v7 = vmul.f32 %v2001_v42, %v2001_v42  ;;  %v2003_v21 = vpop.f32.mrb[7].mxu0 }
 0xa0d   :  { %v2077_v51 = vadd.f32 %v2003_v21, %v2001_v42  ;;  %v2083_v36 = vmul.f32 %v2003_v21, %v2003_v21 }
 0xa0f   :  { %v2086_v61 = vadd.f32 %v2083_v36, %v2082_v7 }
 0xa14   :  { %v2072_v2 = vpop.f32.mrb[6].mxu1 }
 0xa15   :  { %v2078_v5 = vadd.f32 %v2077_v51, %v2072_v2  ;;  %v2084_v11 = vmul.f32 %v2072_v2, %v2072_v2  ;;  %v2074_v62 = vpop.f32.mrb[7].mxu1 }
 0xa16   :  { %v2085_v10 = vmul.f32 %v2074_v62, %v2074_v62 }
 0xa17   :  { %v2087_v44 = vadd.f32 %v2086_v61, %v2084_v11  ;;  %v2079_v3 = vadd.f32 %v2078_v5, %v2074_v62 }
 0xa19   :  { %v2088_v13 = vadd.f32 %v2087_v44, %v2085_v10  ;;  %2080 = vadd.xlane.f32.xlu1 %v2079_v3 }
 0xa1b   :  { %2089 = vadd.xlane.f32.xlu0 %v2088_v13 }
 0xaa6   :  { %v2081_v37 = vpop.xlane.xlu1 %2080 }
 0xaa7   :  { %v2091_v39 = vmul.f32 0.001953125, %v2081_v37 }
 0xaa8   :  { %v2090_v9 = vpop.xlane.xlu0 %2089 }
 0xaa9   :  { %v2093_v60 = vmul.f32 %v2091_v39, %v2091_v39  ;;  %v2092_v33 = vmul.f32 0.001953125, %v2090_v9 }
 0xaab   :  { %v2094_v0 = vsub.f32 %v2092_v33, %v2093_v60 }
 0xaad   :  { %v2095_v59 = vmax.f32 %v2094_v0, 0.0 }
 0xaaf   :  { %v2096_v50 = vadd.f32 0.001, %v2095_v59 }
 0xab1   :  { %2444 = vrsqrt.f32 %v2096_v50 }
 0xabb   :  { %v2445_v54 = vpop.eup %2444 }
 0xabc   :  { %v2098_v23 = vmul.f32 %v4747_v18, %v2445_v54 }
 0xabe   :  { %v2099_v31 = vmul.f32 %v2098_v23, %v2091_v39 }
 0xac0   :  { %2101 = vrot.lane.b32.xlu1 %v2099_v31, %s2474_s8 }
 0xac4   :  { %2107 = vperm.xlu1 %2358, %v2098_v23  }
 0xb32   :  { %v2102_v49 = vpop.permute.xlu1 %2101 }
 0xb33   :  { %v2104_v16 = vsub.f32 %v4747_v18, %v2102_v49  ;;  %v2449_v18 = vld [vmem:[%s4849_s0 + $0x8] sm:$0xff] }
 0xb35   :  { %2116 = vperm.xlu0 %2359, %v2104_v16  }
 0xb43   :  { %v2108_v56 = vpop.permute.xlu1 %2107 }
 0xb44   :  { %v2110_v41 = vmul.f32 %v2108_v56, %v2001_v42  ;;  %v2111_v8 = vmul.f32 %v2108_v56, %v2003_v21  ;;  %v2112_v22 = vmul.f32 %v2108_v56, %v2072_v2  ;;  %v2113_v30 = vmul.f32 %v2108_v56, %v2074_v62 }
 0xbb4   :  { %v2117_v48 = vpop.permute.xlu0 %2116 }
 0xbb5   :  { %v2119_v40 = vadd.f32 %v2117_v48, %v2110_v41  ;;  %v2120_v38 = vadd.f32 %v2117_v48, %v2111_v8  ;;  %v2121_v4 = vadd.f32 %v2117_v48, %v2112_v22  ;;  %v2122_v53 = vadd.f32 %v2117_v48, %v2113_v30 }
 0xbb7   :  { %v2123_v32 = vadd.f32 %v2448_v20, %v2119_v40  ;;  %v2124_v15 = vadd.f32 %v2449_v18, %v2120_v38  ;;  %v2125_v52 = vadd.f32 %v2450_v58, %v2121_v4  ;;  %v2126_v6 = vadd.f32 %v2451_v35, %v2122_v53 }
 0xbb9   :  { %2127 = vst [vmem:[%s4853_s4] sm:$0xff] %v2123_v32  ;;  %2128 = vst [vmem:[%s4853_s4 + $0x8] sm:$0xff] %v2124_v15 }
 0xbba   :  { %2129 = vst [vmem:[%s4853_s4 + $0x10] sm:$0xff] %v2125_v52  ;;  %2130 = vst [vmem:[%s4853_s4 + $0x18] sm:$0xff] %v2126_v6 }

</bundles_post_ra>
